<compile_context>
chip_gen: v7x
topology: tpu7x:2x2x1
jax: 0.10.0
libtpu: 0.0.40
codegen_flags: <defaults>
</compile_context>

<pallas_src>
import math

import jax
import jax.numpy as jnp
from jax.experimental import pallas as pl
from jax.experimental.pallas import tpu as pltpu

HIDDEN = 512          # hidden_dim in the PyTorch module
BN_EPS = 1e-5


# ----------------------------------------------------------------------------
# Shared helpers
# ----------------------------------------------------------------------------
def _cost(flops, transcendentals, ins, outs):
    """pl.CostEstimate from operand / result shapes."""
    nbytes = 0
    for a in tuple(ins) + tuple(outs):
        nbytes += math.prod(a.shape) * jnp.dtype(a.dtype).itemsize
    return pl.CostEstimate(flops=int(flops),
                           transcendentals=int(transcendentals),
                           bytes_accessed=int(nbytes))


def _vmem_cap_bytes():
    """Usable scoped-VMEM cap = physical VMEM minus compiler/IO headroom."""
    try:
        phys = int(pltpu.get_tpu_info().vmem_capacity_bytes)
    except Exception:
        phys = 64 << 20                      # conservative: v7x physical VMEM
    headroom = (16 << 20) if phys <= (64 << 20) else (24 << 20)
    return max(phys - headroom, 16 << 20)    # ~48 MiB v7x, ~104 MiB v5e/v6e


def _fused_vmem_need_bytes(batch, params):
    """Rough whole-batch-resident footprint (activations + temporaries + params)."""
    act_rows = HIDDEN + HIDDEN // 2 + HIDDEN // 4 + HIDDEN // 2 + HIDDEN
    act_bytes = batch * act_rows * 4
    param_bytes = sum(math.prod(p.shape) * jnp.dtype(p.dtype).itemsize
                      for p in params.values())
    return 3 * act_bytes + param_bytes + (2 << 20)


# ----------------------------------------------------------------------------
# Fused (whole-batch-resident) path
# ----------------------------------------------------------------------------
def _bn_relu(h, gamma, beta):
    """Train-mode BatchNorm1d folded to one scale/shift, then ReLU.

    Single fused reduce over [h | h*h] gives sum and sumsq in one pass; the
    batch mean uses a precomputed 1/B multiply (no divides).  Single-pass
    variance E[h^2]-mu^2 is clamped at 0 (matches previous version; low
    cancellation risk at these activation scales).
    """
    b, c = h.shape                                   # static at trace time
    inv_b = 1.0 / b
    s = jnp.sum(jnp.concatenate([h, h * h], axis=1), axis=0,
                keepdims=True) * inv_b               # (1, 2C)
    mu = s[:, :c]
    var = jnp.maximum(s[:, c:] - mu * mu, 0.0)
    scale = gamma * jax.lax.rsqrt(var + BN_EPS)      # (1, C)
    shift = beta - mu * scale                        # (1, C)
    return jnp.maximum(h * scale + shift, 0.0)


def _ae_fused_kernel(x_ref,
                     w1_ref, g1_ref, e1_ref,
                     w2_ref, g2_ref, e2_ref,
                     w3_ref, g3_ref, e3_ref,
                     w4_ref, b4_ref,
                     out_ref):
    x = x_ref[...].astype(jnp.bfloat16)
    h = jnp.dot(x, w1_ref[...], preferred_element_type=jnp.float32)
    h = _bn_relu(h, g1_ref[...], e1_ref[...])

    h = jnp.dot(h.astype(jnp.bfloat16), w2_ref[...],
                preferred_element_type=jnp.float32)
    h = _bn_relu(h, g2_ref[...], e2_ref[...])

    h = jnp.dot(h.astype(jnp.bfloat16), w3_ref[...],
                preferred_element_type=jnp.float32)
    h = _bn_relu(h, g3_ref[...], e3_ref[...])

    out = jnp.dot(h.astype(jnp.bfloat16), w4_ref[...],
                  preferred_element_type=jnp.float32) + b4_ref[...]
    out_ref[...] = out.astype(out_ref.dtype)


def _ae_fused(x, params, need_bytes, cap_bytes):
    batch = x.shape[0]
    operands = (
        x,
        params["w1"], params["g1"], params["be1"],
        params["w2"], params["g2"], params["be2"],
        params["w3"], params["g3"], params["be3"],
        params["w4"], params["b4"],
    )
    vmem_spec = pl.BlockSpec(memory_space=pltpu.MemorySpace.VMEM)

    compiler_params = None
    if need_bytes > (32 << 20):      # only raise above the scoped default
        compiler_params = pltpu.CompilerParams(
            vmem_limit_bytes=int(min(need_bytes, cap_bytes)))

    out_shape = jax.ShapeDtypeStruct((batch, HIDDEN), jnp.float32)
    flops = 2 * batch * sum(math.prod(params[f"w{i}"].shape)
                            for i in range(1, 5))
    transcendentals = HIDDEN // 2 + HIDDEN // 4 + HIDDEN // 2   # 3x rsqrt(C)

    return pl.pallas_call(
        _ae_fused_kernel,
        out_shape=out_shape,
        in_specs=[vmem_spec] * len(operands),
        out_specs=vmem_spec,
        compiler_params=compiler_params,
        cost_estimate=_cost(flops, transcendentals, operands, (out_shape,)),
    )(*operands)


# ----------------------------------------------------------------------------
# Batch-tiled (large-batch / megacore) path
# ----------------------------------------------------------------------------
def _stage_first_kernel(x_ref, w_ref, h_ref, stats_ref):
    h = jnp.dot(x_ref[...].astype(jnp.bfloat16), w_ref[...],
                preferred_element_type=jnp.float32)
    h_ref[...] = h.astype(h_ref.dtype)
    stats_ref[0] = jnp.sum(jnp.concatenate([h, h * h], axis=1),
                           axis=0, keepdims=True)


def _stage_mid_kernel(h_ref, sc_ref, sh_ref, w_ref, o_ref, stats_ref):
    a = jnp.maximum(h_ref[...].astype(jnp.float32) * sc_ref[...] + sh_ref[...],
                    0.0)
    h = jnp.dot(a.astype(jnp.bfloat16), w_ref[...],
                preferred_element_type=jnp.float32)
    o_ref[...] = h.astype(o_ref.dtype)
    stats_ref[0] = jnp.sum(jnp.concatenate([h, h * h], axis=1),
                           axis=0, keepdims=True)


def _stage_last_kernel(h_ref, sc_ref, sh_ref, w_ref, b_ref, o_ref):
    a = jnp.maximum(h_ref[...].astype(jnp.float32) * sc_ref[...] + sh_ref[...],
                    0.0)
    out = jnp.dot(a.astype(jnp.bfloat16), w_ref[...],
                  preferred_element_type=jnp.float32) + b_ref[...]
    o_ref[...] = out.astype(o_ref.dtype)


def _fold_bn(stats, gamma, beta, inv_b):
    """Plain-JAX cross-tile BN fold: tiny (1, 2C) math between pallas_calls."""
    s = jnp.sum(stats, axis=0) * inv_b               # (1, 2C)
    c = gamma.shape[-1]
    mu = s[:, :c]
    var = jnp.maximum(s[:, c:] - mu * mu, 0.0)
    scale = gamma * jax.lax.rsqrt(var + BN_EPS)
    shift = beta - mu * scale
    return scale, shift


def _pick_tile(batch):
    for tb in (512, 256, 128, 64, 32, 16, 8):
        if batch % tb == 0 and batch // tb >= 2:
            return tb
    return batch        # single tile; caller guarantees batch % 8 == 0


def _ae_tiled(x, params, tb):
    batch = x.shape[0]
    nt = batch // tb
    inv_b = 1.0 / batch
    act_dt = jnp.bfloat16        # bf16 HBM round-trip for pre-BN intermediates
    cp = pltpu.CompilerParams(dimension_semantics=("parallel",))

    def tile_spec(cols):
        return pl.BlockSpec((tb, cols), lambda i: (i, 0))

    def resident_spec(arr):      # constant block index -> DMA'd once per call
        return pl.BlockSpec(arr.shape, lambda i: (0, 0))

    def stats_spec(cols):
        return pl.BlockSpec((1, 1, 2 * cols), lambda i: (i, 0, 0))

    w1, w2, w3, w4 = params["w1"], params["w2"], params["w3"], params["w4"]
    g1, g2, g3 = params["g1"], params["g2"], params["g3"]
    e1, e2, e3 = params["be1"], params["be2"], params["be3"]
    b4 = params["b4"]

    # ---- layer 1: x @ W1, per-tile BN partials ------------------------------
    k, n = w1.shape
    outs = (jax.ShapeDtypeStruct((batch, n), act_dt),
            jax.ShapeDtypeStruct((nt, 1, 2 * n), jnp.float32))
    h, st = pl.pallas_call(
        _stage_first_kernel,
        grid=(nt,),
        in_specs=[tile_spec(k), resident_spec(w1)],
        out_specs=[tile_spec(n), stats_spec(n)],
        out_shape=outs,
        compiler_params=cp,
        cost_estimate=_cost(2 * batch * k * n, 0, (x, w1), outs),
    )(x, w1)
    sc, sh = _fold_bn(st, g1, e1, inv_b)

    # ---- layers 2 and 3: bn-relu(prev) @ W, per-tile BN partials ------------
    for w, g, e in ((w2, g2, e2), (w3, g3, e3)):
        k, n = w.shape
        outs = (jax.ShapeDtypeStruct((batch, n), act_dt),
                jax.ShapeDtypeStruct((nt, 1, 2 * n), jnp.float32))
        h, st = pl.pallas_call(
            _stage_mid_kernel,
            grid=(nt,),
            in_specs=[tile_spec(k), resident_spec(sc), resident_spec(sh),
                      resident_spec(w)],
            out_specs=[tile_spec(n), stats_spec(n)],
            out_shape=outs,
            compiler_params=cp,
            cost_estimate=_cost(2 * batch * k * n, 0, (h, sc, sh, w), outs),
        )(h, sc, sh, w)
        sc, sh = _fold_bn(st, g, e, inv_b)

    # ---- layer 4: bn-relu(prev) @ W4 + b4 -----------------------------------
    k, n = w4.shape
    out4 = jax.ShapeDtypeStruct((batch, n), jnp.float32)
    return pl.pallas_call(
        _stage_last_kernel,
        grid=(nt,),
        in_specs=[tile_spec(k), resident_spec(sc), resident_spec(sh),
                  resident_spec(w4), resident_spec(b4)],
        out_specs=tile_spec(n),
        out_shape=out4,
        compiler_params=cp,
        cost_estimate=_cost(2 * batch * k * n, 0, (h, sc, sh, w4, b4), (out4,)),
    )(h, sc, sh, w4, b4)


# ----------------------------------------------------------------------------
# Public forward + params
# ----------------------------------------------------------------------------
def ae_forward(x, params, *, force_tiled=False):
    """x: (B, 512) float32 (or bfloat16).  Returns (B, 512) float32."""
    batch = x.shape[0]
    cap = _vmem_cap_bytes()
    need = _fused_vmem_need_bytes(batch, params)
    if not force_tiled and need <= cap:
        return _ae_fused(x, params, need, cap)
    if batch % 8 != 0:
        # TODO(synk): masked tail tile for batch sizes not a multiple of 8.
        raise ValueError("batch-tiled path requires batch % 8 == 0")
    return _ae_tiled(x, params, _pick_tile(batch))


def init_params(key):
    """Deterministic init matching the PyTorch module's shapes.

    nn.Linear(in, out): weight (out, in) -> stored transposed (in, out) bf16;
    bias (out,) -> (1, out) f32 (b1..b3 cancelled by train-mode BN, kept for
    parity).  nn.BatchNorm1d(C): gamma=ones, beta=zeros as (1, C) f32.
    """
    dims = [(HIDDEN, HIDDEN // 2),
            (HIDDEN // 2, HIDDEN // 4),
            (HIDDEN // 4, HIDDEN // 2),
            (HIDDEN // 2, HIDDEN)]
    params = {}
    keys = jax.random.split(key, 2 * len(dims))
    for i, (fan_in, fan_out) in enumerate(dims, start=1):
        bound = 1.0 / jnp.sqrt(fan_in)
        w = jax.random.uniform(keys[2 * (i - 1)], (fan_in, fan_out),
                               jnp.float32, -bound, bound)
        b = jax.random.uniform(keys[2 * (i - 1) + 1], (1, fan_out),
                               jnp.float32, -bound, bound)
        params[f"w{i}"] = w.astype(jnp.bfloat16)    # MXU operand dtype
        params[f"b{i}"] = b
        if i <= 3:                                  # BN follows Linear 1..3
            params[f"g{i}"] = jnp.ones((1, fan_out), jnp.float32)
            params[f"be{i}"] = jnp.zeros((1, fan_out), jnp.float32)
    return params


if __name__ == "__main__":
    key = jax.random.PRNGKey(0)
    k_param, k_x = jax.random.split(key)
    params = init_params(k_param)

    # B=256: amortizes weight DMA and MXU fill/drain (review: prefer >=256)
    # and gives the tiled path 2 batch tiles to exercise the megacore layout.
    B = 256
    x = jax.random.normal(k_x, (B, HIDDEN), jnp.float32)

    out_fused = ae_forward(x, params)                     # single fused call
    out_tiled = ae_forward(x, params, force_tiled=True)   # batch-tiled path
    jax.block_until_ready((out_fused, out_tiled))

    assert out_fused.shape == (B, HIDDEN) and out_fused.dtype == jnp.float32
    assert out_tiled.shape == (B, HIDDEN) and out_tiled.dtype == jnp.float32
    assert bool(jnp.all(jnp.isfinite(out_fused)))
    assert bool(jnp.all(jnp.isfinite(out_tiled)))
    # Paths differ only by bf16 rounding of the HBM round-trip and the BN
    # partial-sum reduction order.
    assert float(jnp.max(jnp.abs(out_fused - out_tiled))) < 1e-1
    print("KERNEL_OK")
</pallas_src>

<mosaic_0001>
module attributes {stable_mosaic.version = 11 : i64} {
  func.func @_ae_fused_kernel(%arg0: memref<256x512xf32, #tpu.memory_space<vmem>>, %arg1: memref<512x256xbf16, #tpu.memory_space<vmem>>, %arg2: memref<1x256xf32, #tpu.memory_space<vmem>>, %arg3: memref<1x256xf32, #tpu.memory_space<vmem>>, %arg4: memref<256x128xbf16, #tpu.memory_space<vmem>>, %arg5: memref<1x128xf32, #tpu.memory_space<vmem>>, %arg6: memref<1x128xf32, #tpu.memory_space<vmem>>, %arg7: memref<128x256xbf16, #tpu.memory_space<vmem>>, %arg8: memref<1x256xf32, #tpu.memory_space<vmem>>, %arg9: memref<1x256xf32, #tpu.memory_space<vmem>>, %arg10: memref<256x512xbf16, #tpu.memory_space<vmem>>, %arg11: memref<1x512xf32, #tpu.memory_space<vmem>>, %arg12: memref<256x512xf32, #tpu.memory_space<vmem>>) attributes {dimension_semantics = [], scalar_prefetch = 0 : i64, scratch_operands = 0 : i64, tpu.core_type = #tpu.core_type<tc>} {
    %c0 = arith.constant 0 : index
    %c0_0 = arith.constant 0 : index
    %0 = vector.load %arg0[%c0, %c0_0] : memref<256x512xf32, #tpu.memory_space<vmem>>, vector<256x512xf32>
    %1 = arith.truncf %0 : vector<256x512xf32> to vector<256x512xbf16>
    %c0_1 = arith.constant 0 : index
    %c0_2 = arith.constant 0 : index
    %2 = vector.load %arg1[%c0_1, %c0_2] : memref<512x256xbf16, #tpu.memory_space<vmem>>, vector<512x256xbf16>
    %cst = arith.constant dense<0.000000e+00> : vector<256x256xf32>
    %3 = tpu.matmul %1, %2, %cst {dimension_numbers = #tpu.dot_dimension_numbers<[1], [0], [0], [1], [0, 0, 1, 1], [], []>} : vector<256x512xbf16>, vector<512x256xbf16>, vector<256x256xf32> -> vector<256x256xf32>
    %c0_3 = arith.constant 0 : index
    %c0_4 = arith.constant 0 : index
    %4 = vector.load %arg2[%c0_3, %c0_4] : memref<1x256xf32, #tpu.memory_space<vmem>>, vector<1x256xf32>
    %c0_5 = arith.constant 0 : index
    %c0_6 = arith.constant 0 : index
    %5 = vector.load %arg3[%c0_5, %c0_6] : memref<1x256xf32, #tpu.memory_space<vmem>>, vector<1x256xf32>
    %6 = arith.mulf %3, %3 : vector<256x256xf32>
    %7 = tpu.concatenate %3, %6 in 1 : vector<256x256xf32>, vector<256x256xf32> -> vector<256x512xf32>
    %cst_7 = arith.constant dense<0.000000e+00> : vector<512xf32>
    %8 = vector.multi_reduction <add>, %7, %cst_7 [0] : vector<256x512xf32> to vector<512xf32>
    %9 = vector.shape_cast %8 : vector<512xf32> to vector<1x512xf32>
    %cst_8 = arith.constant 3.906250e-03 : f32
    %10 = vector.broadcast %cst_8 : f32 to vector<1x512xf32>
    %11 = arith.mulf %9, %10 : vector<1x512xf32>
    %12 = vector.extract_strided_slice %11 {offsets = [0, 0], sizes = [1, 256], strides = [1, 1]} : vector<1x512xf32> to vector<1x256xf32>
    %13 = vector.extract_strided_slice %11 {offsets = [0, 256], sizes = [1, 256], strides = [1, 1]} : vector<1x512xf32> to vector<1x256xf32>
    %14 = arith.mulf %12, %12 : vector<1x256xf32>
    %15 = arith.subf %13, %14 : vector<1x256xf32>
    %cst_9 = arith.constant 0.000000e+00 : f32
    %16 = vector.broadcast %cst_9 : f32 to vector<1x256xf32>
    %17 = arith.maximumf %15, %16 : vector<1x256xf32>
    %cst_10 = arith.constant 9.99999974E-6 : f32
    %18 = vector.broadcast %cst_10 : f32 to vector<1x256xf32>
    %19 = arith.addf %17, %18 : vector<1x256xf32>
    %20 = math.rsqrt %19 : vector<1x256xf32>
    %21 = arith.mulf %4, %20 : vector<1x256xf32>
    %22 = arith.mulf %12, %21 : vector<1x256xf32>
    %23 = arith.subf %5, %22 : vector<1x256xf32>
    %24 = vector.broadcast %21 : vector<1x256xf32> to vector<256x256xf32>
    %25 = arith.mulf %3, %24 : vector<256x256xf32>
    %26 = vector.broadcast %23 : vector<1x256xf32> to vector<256x256xf32>
    %27 = arith.addf %25, %26 : vector<256x256xf32>
    %cst_11 = arith.constant 0.000000e+00 : f32
    %28 = vector.broadcast %cst_11 : f32 to vector<256x256xf32>
    %29 = arith.maximumf %27, %28 : vector<256x256xf32>
    %30 = arith.truncf %29 : vector<256x256xf32> to vector<256x256xbf16>
    %c0_12 = arith.constant 0 : index
    %c0_13 = arith.constant 0 : index
    %31 = vector.load %arg4[%c0_12, %c0_13] : memref<256x128xbf16, #tpu.memory_space<vmem>>, vector<256x128xbf16>
    %cst_14 = arith.constant dense<0.000000e+00> : vector<256x128xf32>
    %32 = tpu.matmul %30, %31, %cst_14 {dimension_numbers = #tpu.dot_dimension_numbers<[1], [0], [0], [1], [0, 0, 1, 1], [], []>} : vector<256x256xbf16>, vector<256x128xbf16>, vector<256x128xf32> -> vector<256x128xf32>
    %c0_15 = arith.constant 0 : index
    %c0_16 = arith.constant 0 : index
    %33 = vector.load %arg5[%c0_15, %c0_16] : memref<1x128xf32, #tpu.memory_space<vmem>>, vector<1x128xf32>
    %c0_17 = arith.constant 0 : index
    %c0_18 = arith.constant 0 : index
    %34 = vector.load %arg6[%c0_17, %c0_18] : memref<1x128xf32, #tpu.memory_space<vmem>>, vector<1x128xf32>
    %35 = arith.mulf %32, %32 : vector<256x128xf32>
    %36 = tpu.concatenate %32, %35 in 1 : vector<256x128xf32>, vector<256x128xf32> -> vector<256x256xf32>
    %cst_19 = arith.constant dense<0.000000e+00> : vector<256xf32>
    %37 = vector.multi_reduction <add>, %36, %cst_19 [0] : vector<256x256xf32> to vector<256xf32>
    %38 = vector.shape_cast %37 : vector<256xf32> to vector<1x256xf32>
    %cst_20 = arith.constant 3.906250e-03 : f32
    %39 = vector.broadcast %cst_20 : f32 to vector<1x256xf32>
    %40 = arith.mulf %38, %39 : vector<1x256xf32>
    %41 = vector.extract_strided_slice %40 {offsets = [0, 0], sizes = [1, 128], strides = [1, 1]} : vector<1x256xf32> to vector<1x128xf32>
    %42 = vector.extract_strided_slice %40 {offsets = [0, 128], sizes = [1, 128], strides = [1, 1]} : vector<1x256xf32> to vector<1x128xf32>
    %43 = arith.mulf %41, %41 : vector<1x128xf32>
    %44 = arith.subf %42, %43 : vector<1x128xf32>
    %cst_21 = arith.constant 0.000000e+00 : f32
    %45 = vector.broadcast %cst_21 : f32 to vector<1x128xf32>
    %46 = arith.maximumf %44, %45 : vector<1x128xf32>
    %cst_22 = arith.constant 9.99999974E-6 : f32
    %47 = vector.broadcast %cst_22 : f32 to vector<1x128xf32>
    %48 = arith.addf %46, %47 : vector<1x128xf32>
    %49 = math.rsqrt %48 : vector<1x128xf32>
    %50 = arith.mulf %33, %49 : vector<1x128xf32>
    %51 = arith.mulf %41, %50 : vector<1x128xf32>
    %52 = arith.subf %34, %51 : vector<1x128xf32>
    %53 = vector.broadcast %50 : vector<1x128xf32> to vector<256x128xf32>
    %54 = arith.mulf %32, %53 : vector<256x128xf32>
    %55 = vector.broadcast %52 : vector<1x128xf32> to vector<256x128xf32>
    %56 = arith.addf %54, %55 : vector<256x128xf32>
    %cst_23 = arith.constant 0.000000e+00 : f32
    %57 = vector.broadcast %cst_23 : f32 to vector<256x128xf32>
    %58 = arith.maximumf %56, %57 : vector<256x128xf32>
    %59 = arith.truncf %58 : vector<256x128xf32> to vector<256x128xbf16>
    %c0_24 = arith.constant 0 : index
    %c0_25 = arith.constant 0 : index
    %60 = vector.load %arg7[%c0_24, %c0_25] : memref<128x256xbf16, #tpu.memory_space<vmem>>, vector<128x256xbf16>
    %cst_26 = arith.constant dense<0.000000e+00> : vector<256x256xf32>
    %61 = tpu.matmul %59, %60, %cst_26 {dimension_numbers = #tpu.dot_dimension_numbers<[1], [0], [0], [1], [0, 0, 1, 1], [], []>} : vector<256x128xbf16>, vector<128x256xbf16>, vector<256x256xf32> -> vector<256x256xf32>
    %c0_27 = arith.constant 0 : index
    %c0_28 = arith.constant 0 : index
    %62 = vector.load %arg8[%c0_27, %c0_28] : memref<1x256xf32, #tpu.memory_space<vmem>>, vector<1x256xf32>
    %c0_29 = arith.constant 0 : index
    %c0_30 = arith.constant 0 : index
    %63 = vector.load %arg9[%c0_29, %c0_30] : memref<1x256xf32, #tpu.memory_space<vmem>>, vector<1x256xf32>
    %64 = arith.mulf %61, %61 : vector<256x256xf32>
    %65 = tpu.concatenate %61, %64 in 1 : vector<256x256xf32>, vector<256x256xf32> -> vector<256x512xf32>
    %cst_31 = arith.constant dense<0.000000e+00> : vector<512xf32>
    %66 = vector.multi_reduction <add>, %65, %cst_31 [0] : vector<256x512xf32> to vector<512xf32>
    %67 = vector.shape_cast %66 : vector<512xf32> to vector<1x512xf32>
    %cst_32 = arith.constant 3.906250e-03 : f32
    %68 = vector.broadcast %cst_32 : f32 to vector<1x512xf32>
    %69 = arith.mulf %67, %68 : vector<1x512xf32>
    %70 = vector.extract_strided_slice %69 {offsets = [0, 0], sizes = [1, 256], strides = [1, 1]} : vector<1x512xf32> to vector<1x256xf32>
    %71 = vector.extract_strided_slice %69 {offsets = [0, 256], sizes = [1, 256], strides = [1, 1]} : vector<1x512xf32> to vector<1x256xf32>
    %72 = arith.mulf %70, %70 : vector<1x256xf32>
    %73 = arith.subf %71, %72 : vector<1x256xf32>
    %cst_33 = arith.constant 0.000000e+00 : f32
    %74 = vector.broadcast %cst_33 : f32 to vector<1x256xf32>
    %75 = arith.maximumf %73, %74 : vector<1x256xf32>
    %cst_34 = arith.constant 9.99999974E-6 : f32
    %76 = vector.broadcast %cst_34 : f32 to vector<1x256xf32>
    %77 = arith.addf %75, %76 : vector<1x256xf32>
    %78 = math.rsqrt %77 : vector<1x256xf32>
    %79 = arith.mulf %62, %78 : vector<1x256xf32>
    %80 = arith.mulf %70, %79 : vector<1x256xf32>
    %81 = arith.subf %63, %80 : vector<1x256xf32>
    %82 = vector.broadcast %79 : vector<1x256xf32> to vector<256x256xf32>
    %83 = arith.mulf %61, %82 : vector<256x256xf32>
    %84 = vector.broadcast %81 : vector<1x256xf32> to vector<256x256xf32>
    %85 = arith.addf %83, %84 : vector<256x256xf32>
    %cst_35 = arith.constant 0.000000e+00 : f32
    %86 = vector.broadcast %cst_35 : f32 to vector<256x256xf32>
    %87 = arith.maximumf %85, %86 : vector<256x256xf32>
    %88 = arith.truncf %87 : vector<256x256xf32> to vector<256x256xbf16>
    %c0_36 = arith.constant 0 : index
    %c0_37 = arith.constant 0 : index
    %89 = vector.load %arg10[%c0_36, %c0_37] : memref<256x512xbf16, #tpu.memory_space<vmem>>, vector<256x512xbf16>
    %cst_38 = arith.constant dense<0.000000e+00> : vector<256x512xf32>
    %90 = tpu.matmul %88, %89, %cst_38 {dimension_numbers = #tpu.dot_dimension_numbers<[1], [0], [0], [1], [0, 0, 1, 1], [], []>} : vector<256x256xbf16>, vector<256x512xbf16>, vector<256x512xf32> -> vector<256x512xf32>
    %c0_39 = arith.constant 0 : index
    %c0_40 = arith.constant 0 : index
    %91 = vector.load %arg11[%c0_39, %c0_40] : memref<1x512xf32, #tpu.memory_space<vmem>>, vector<1x512xf32>
    %92 = vector.broadcast %91 : vector<1x512xf32> to vector<256x512xf32>
    %93 = arith.addf %90, %92 : vector<256x512xf32>
    %c0_41 = arith.constant 0 : index
    %c0_42 = arith.constant 0 : index
    %94 = vector.load %arg12[%c0_41, %c0_42] : memref<256x512xf32, #tpu.memory_space<vmem>>, vector<256x512xf32>
    tpu.vector_store %arg12[%c0_41, %c0_42], %93 {strides = array<i32>} : memref<256x512xf32, #tpu.memory_space<vmem>>, vector<256x512xf32>,
    return
  }
}

</mosaic_0001>

<bundles_post_ra>
// kernel: tpu_custom_call.1
= control target key start
LH: loop header
LB: loop body
LE: loop exit
PB: predicated region body
PF: predicated region fallthrough
CT: control target
= control target key end

     0   :  { %17 = vsyncpa [#allocation3], 0  ;;  %s7142_s0 = inlined_call_operand.hbm [shape: f32[256,512], index: 0, kind: input, shape index: {}]   ;;  %s7143_s1 = inlined_call_operand.hbm [shape: bf16[512,256], index: 1, kind: input, shape index: {}]   ;;  %s7144_s2 = inlined_call_operand.vmem [shape: f32[1,256], index: 2, kind: input, shape index: {}]   ;;  %s7145_s3 = inlined_call_operand.vmem [shape: f32[1,256], index: 3, kind: input, shape index: {}]   ;;  %s7146_s4 = inlined_call_operand.hbm [shape: bf16[256,128], index: 4, kind: input, shape index: {}]   ;;  %s7147_s5 = inlined_call_operand.vmem [shape: f32[1,128], index: 5, kind: input, shape index: {}]   ;;  %s7148_s6 = inlined_call_operand.vmem [shape: f32[1,128], index: 6, kind: input, shape index: {}]   ;;  %s7149_s7 = inlined_call_operand.hbm [shape: bf16[128,256], index: 7, kind: input, shape index: {}]   ;;  %s7150_s8 = inlined_call_operand.vmem [shape: f32[1,256], index: 8, kind: input, shape index: {}]   ;;  %s7151_s9 = inlined_call_operand.vmem [shape: f32[1,256], index: 9, kind: input, shape index: {}]   ;;  %s7152_s10 = inlined_call_operand.hbm [shape: bf16[256,512], index: 10, kind: input, shape index: {}]   ;;  %s7153_s11 = inlined_call_operand.vmem [shape: f32[1,512], index: 11, kind: input, shape index: {}]   ;;  %s7154_s12 = inlined_call_operand.hbm [shape: f32[256,512], index: 12, kind: output, shape index: {}]  }
   0x1   :  { %18 = vsyncpa [#allocation6], 0 }
   0x2   :  { %19 = vsyncpa [#allocation9], 0 }
   0x3   :  { %20 = vsyncpa [#allocation4], 0  ;;  %s4647_s21 = smov [#allocation5]   ;;  %s4507_s25 = scalar_lea.hbm %s7143_s1, 8192 }
   0x4   :  { %s38_s22 = sshll.u32 %s4647_s21, 4  ;;  %p4508_p0 = scmp.ne.s32.totalorder %s7143_s1, %s4507_s25  ;;  %s39_s22 = int_to_ptr.vmem [resolvable:$true] %s38_s22 }
   0x5   :  { %p4511_p1 = scmp.lt.u32.totalorder %s4507_s25, %s7143_s1 }
   0x7   :  { %p4513_p2 = pnand %p4511_p1, %p4508_p0 }
   0x9   :  { %4516 = shalt.err (!%p4513_p2)
}
   0xa   :  { %s4517_s30 = scalar_lea.vmem %s39_s22, 8192  ;;  %p4522_p4 = scmp.lt.s32.totalorder %s39_s22, %s39_s22 }
   0xb   :  { %p4518_p3 = scmp.ne.s32.totalorder %s39_s22, %s4517_s30  ;;  %p4523_p5 = scmp.lt.s32.totalorder %s4517_s30, %s4517_s30 }
   0xd   :  { %p4524_p6 = por %p4523_p5, %p4522_p4 }
   0xf   :  { %p4525_p7 = pnand %p4524_p6, %p4518_p3 }
  0x11   :  { %4528 = shalt.err (!%p4525_p7)
}
  0x12   :  { %s4648_s13 = smov 128   ;;  %s4649_s14 = smov 8  }
  0x13   :  { %44 = dma.hbm_to_vmem [thread:$0]  %s7143_s1, 8192, %s39_s22, [#allocation6], %s4648_s13, %s4648_s13, %s4649_s14  }
  0x14   :  { %s4650_s17 = smov [#allocation8]   ;;  %s4651_s19 = smov [#allocation2]  }
  0x15   :  { %s70_s18 = sshll.u32 %s4650_s17, 4  ;;  %s26_s20 = sshll.u32 %s4651_s19, 4  ;;  %s71_s18 = int_to_ptr.vmem [resolvable:$true] %s70_s18  ;;  %s27_s20 = int_to_ptr.vmem [resolvable:$true] %s26_s20 }
  0x16   :  { %s4529_s24 = scalar_lea.hbm %s7149_s7, 2048 }
  0x17   :  { %p4530_p8 = scmp.ne.s32.totalorder %s7149_s7, %s4529_s24  ;;  %p4533_p9 = scmp.lt.u32.totalorder %s4529_s24, %s7149_s7 }
  0x19   :  { %p4535_p10 = pnand %p4533_p9, %p4530_p8 }
  0x1b   :  { %4538 = shalt.err (!%p4535_p10)
}
  0x1c   :  { %s4539_s1 = scalar_lea.vmem %s71_s18, 2048  ;;  %p4544_p12 = scmp.lt.s32.totalorder %s71_s18, %s71_s18 }
  0x1d   :  { %p4540_p11 = scmp.ne.s32.totalorder %s71_s18, %s4539_s1  ;;  %p4545_p13 = scmp.lt.s32.totalorder %s4539_s1, %s4539_s1 }
  0x1f   :  { %p4546_p0 = por %p4545_p13, %p4544_p12 }
  0x21   :  { %p4547_p1 = pnand %p4546_p0, %p4540_p11 }
  0x23   :  { %4550 = shalt.err (!%p4547_p1)
}
  0x24   :  { %76 = dma.hbm_to_vmem [thread:$0]  %s7149_s7, 2048, %s71_s18, [#allocation9], %s4648_s13, %s4648_s13, %s4649_s14  }
  0x25   :  { %s4551_s16 = scalar_lea.hbm %s7142_s0, 16384 }
  0x26   :  { %p4552_p2 = scmp.ne.s32.totalorder %s7142_s0, %s4551_s16  ;;  %p4555_p3 = scmp.lt.u32.totalorder %s4551_s16, %s7142_s0 }
  0x28   :  { %p4557_p4 = pnand %p4555_p3, %p4552_p2 }
  0x2a   :  { %4560 = shalt.err (!%p4557_p4)
}
  0x2b   :  { %s4561_s24 = scalar_lea.vmem %s27_s20, 16384  ;;  %p4566_p6 = scmp.lt.s32.totalorder %s27_s20, %s27_s20 }
  0x2c   :  { %p4562_p5 = scmp.ne.s32.totalorder %s27_s20, %s4561_s24  ;;  %p4567_p7 = scmp.lt.s32.totalorder %s4561_s24, %s4561_s24 }
  0x2e   :  { %p4568_p8 = por %p4567_p7, %p4566_p6 }
  0x30   :  { %p4569_p9 = pnand %p4568_p8, %p4562_p5 }
  0x32   :  { %4572 = shalt.err (!%p4569_p9)
}
  0x33   :  { %s4652_s7 = smov 512   ;;  %s4653_s13 = smov 32  }
  0x34   :  { %32 = dma.hbm_to_vmem [thread:$0]  %s7142_s0, 16384, %s27_s20, [#allocation3], %s4652_s7, %s4652_s7, %s4653_s13  }
  0x35   :  { %s4654_s25 = smov [#allocation7]   ;;  %s4573_s1 = scalar_lea.hbm %s7146_s4, 2048 }
  0x36   :  { %s54_s26 = sshll.u32 %s4654_s25, 4  ;;  %p4574_p10 = scmp.ne.s32.totalorder %s7146_s4, %s4573_s1  ;;  %s55_s26 = int_to_ptr.vmem [resolvable:$true] %s54_s26 }
  0x37   :  { %p4577_p11 = scmp.lt.u32.totalorder %s4573_s1, %s7146_s4 }
  0x39   :  { %p4579_p12 = pnand %p4577_p11, %p4574_p10 }
  0x3b   :  { %4582 = shalt.err (!%p4579_p12)
}
  0x3c   :  { %s4583_s16 = scalar_lea.vmem %s55_s26, 2048  ;;  %p4588_p0 = scmp.lt.s32.totalorder %s55_s26, %s55_s26 }
  0x3d   :  { %p4584_p13 = scmp.ne.s32.totalorder %s55_s26, %s4583_s16  ;;  %p4589_p1 = scmp.lt.s32.totalorder %s4583_s16, %s4583_s16 }
  0x3f   :  { %p4590_p2 = por %p4589_p1, %p4588_p0 }
  0x41   :  { %p4591_p3 = pnand %p4590_p2, %p4584_p13 }
  0x43   :  { %4594 = shalt.err (!%p4591_p3)
}
  0x44   :  { %s4655_s0 = smov 64   ;;  %s4656_s20 = smov 4  }
  0x45   :  { %60 = dma.hbm_to_vmem [thread:$0]  %s7146_s4, 2048, %s55_s26, [#allocation6], %s4655_s0, %s4655_s0, %s4656_s20  }
  0x46   :  { %s4657_s21 = smov [#allocation10]   ;;  %s4595_s18 = scalar_lea.hbm %s7152_s10, 8192 }
  0x47   :  { %s86_s23 = sshll.u32 %s4657_s21, 4  ;;  %p4596_p4 = scmp.ne.s32.totalorder %s7152_s10, %s4595_s18  ;;  %s87_s23 = int_to_ptr.vmem [resolvable:$true] %s86_s23 }
  0x48   :  { %p4599_p5 = scmp.lt.u32.totalorder %s4595_s18, %s7152_s10 }
  0x4a   :  { %p4601_p6 = pnand %p4599_p5, %p4596_p4 }
  0x4c   :  { %4604 = shalt.err (!%p4601_p6)
}
  0x4d   :  { %s4605_s22 = scalar_lea.vmem %s87_s23, 8192  ;;  %p4610_p8 = scmp.lt.s32.totalorder %s87_s23, %s87_s23 }
  0x4e   :  { %p4606_p7 = scmp.ne.s32.totalorder %s87_s23, %s4605_s22  ;;  %p4611_p9 = scmp.lt.s32.totalorder %s4605_s22, %s4605_s22 }
  0x50   :  { %p4612_p10 = por %p4611_p9, %p4610_p8 }
  0x52   :  { %p4613_p11 = pnand %p4612_p10, %p4606_p7 }
  0x54   :  { %4616 = shalt.err (!%p4613_p11)
}
  0x55   :  { %s4658_s4 = smov 256   ;;  %s4659_s26 = smov 16  }
  0x56   :  { %92 = dma.hbm_to_vmem [thread:$0]  %s7152_s10, 8192, %s87_s23, [#allocation9], %s4658_s4, %s4658_s4, %s4659_s26  }
  0x57   :  { %4639 = dma.done.wait [#allocation3], 16384  }
  0x58   :  { %4640 = vsyncadd [#allocation3], 4294950912 }
  0x59   :  { %4641 = dma.done.wait [#allocation6], 10240  }
  0x5a   :  { %4642 = vsyncadd [#allocation6], 4294957056 }
  0x5b   :  { %4643 = dma.done.wait [#allocation9], 10240  }
  0x5c   :  { %4644 = vsyncadd [#allocation9], 4294957056  ;;  %v4244_v0 = vld [vmem:[#allocation5 + $0x4] ss:$8 sps:$4 sm:$0xff]   ;;  %v4246_v1 = vld [vmem:[#allocation5] ss:$8 sps:$4 sm:$0xff]  }
  0x5d   :  { %687 = vmatprep.subr.bf16.mxu0 %v4244_v0  ;;  %v4247_v2 = vld [vmem:[#allocation5 + $0x14] ss:$8 sps:$4 sm:$0xff]   ;;  %v4249_v3 = vld [vmem:[#allocation5 + $0x10] ss:$8 sps:$4 sm:$0xff]   ;;  %v4250_v4 = vld [vmem:[#allocation5 + $0x24] ss:$8 sps:$4 sm:$0xff]  }
  0x5e   :  { %688 = vmatpush1.bf16.msra.mxu0 %v4246_v1  ;;  %v4252_v5 = vld [vmem:[#allocation5 + $0x20] ss:$8 sps:$4 sm:$0xff]   ;;  %v4253_v6 = vld [vmem:[#allocation5 + $0x34] ss:$8 sps:$4 sm:$0xff]   ;;  %v4255_v7 = vld [vmem:[#allocation5 + $0x30] ss:$8 sps:$4 sm:$0xff]  }
  0x5f   :  { %689 = vmatprep.subr.bf16.mxu0 %v4247_v2  ;;  %v4256_v8 = vld [vmem:[#allocation5 + $0x44] ss:$8 sps:$4 sm:$0xff]   ;;  %v4258_v9 = vld [vmem:[#allocation5 + $0x40] ss:$8 sps:$4 sm:$0xff]   ;;  %v4259_v10 = vld [vmem:[#allocation5 + $0x54] ss:$8 sps:$4 sm:$0xff]  }
  0x60   :  { %v4261_v11 = vld [vmem:[#allocation5 + $0x50] ss:$8 sps:$4 sm:$0xff]   ;;  %v4262_v12 = vld [vmem:[#allocation5 + $0x64] ss:$8 sps:$4 sm:$0xff]   ;;  %v4264_v16 = vld [vmem:[#allocation5 + $0x60] ss:$8 sps:$4 sm:$0xff]  }
  0x61   :  { %v112_v13 = vld [vmem:[#allocation2 + $0x8] sm:$0xff]  ;;  %v4265_v17 = vld [vmem:[#allocation5 + $0x74] ss:$8 sps:$4 sm:$0xff]   ;;  %v4267_v18 = vld [vmem:[#allocation5 + $0x70] ss:$8 sps:$4 sm:$0xff]  }
  0x62   :  { %690 = vmatpush1.bf16.msra.mxu0 %v4249_v3  ;;  %v116_v14 = vld [vmem:[#allocation2 + $0x28] sm:$0xff]  ;;  %v4271_v21 = vld [vmem:[#allocation5 + $0x94] ss:$8 sps:$4 sm:$0xff]   ;;  %v4273_v22 = vld [vmem:[#allocation5 + $0x90] ss:$8 sps:$4 sm:$0xff]  }
  0x63   :  { %691 = vmatprep.subr.bf16.mxu0 %v4250_v4  ;;  %v240_v15 = vpack.c.bf16 %v116_v14, %v112_v13  ;;  %v4268_v19 = vld [vmem:[#allocation5 + $0x84] ss:$8 sps:$4 sm:$0xff]   ;;  %v4270_v20 = vld [vmem:[#allocation5 + $0x80] ss:$8 sps:$4 sm:$0xff]   ;;  %v4277_v25 = vld [vmem:[#allocation5 + $0xb4] ss:$8 sps:$4 sm:$0xff]  }
  0x64   :  { %v4274_v23 = vld [vmem:[#allocation5 + $0xa4] ss:$8 sps:$4 sm:$0xff]   ;;  %v4276_v24 = vld [vmem:[#allocation5 + $0xa0] ss:$8 sps:$4 sm:$0xff]   ;;  %v4279_v26 = vld [vmem:[#allocation5 + $0xb0] ss:$8 sps:$4 sm:$0xff]  }
  0x65   :  { %719 = vmatprep.mubr.bf16.mxu0 %v240_v15  ;;  %v4280_v27 = vld [vmem:[#allocation5 + $0xc4] ss:$8 sps:$4 sm:$0xff]   ;;  %v4282_v28 = vld [vmem:[#allocation5 + $0xc0] ss:$8 sps:$4 sm:$0xff]   ;;  %v4283_v29 = vld [vmem:[#allocation5 + $0xd4] ss:$8 sps:$4 sm:$0xff]  }
  0x66   :  { %692 = vmatpush1.bf16.msra.mxu0 %v4252_v5  ;;  %v4285_v30 = vld [vmem:[#allocation5 + $0xd0] ss:$8 sps:$4 sm:$0xff]   ;;  %v4286_v31 = vld [vmem:[#allocation5 + $0xe4] ss:$8 sps:$4 sm:$0xff]   ;;  %v4288_v32 = vld [vmem:[#allocation5 + $0xe0] ss:$8 sps:$4 sm:$0xff]  }
  0x67   :  { %693 = vmatprep.subr.bf16.mxu0 %v4253_v6  ;;  %v4289_v33 = vld [vmem:[#allocation5 + $0xf4] ss:$8 sps:$4 sm:$0xff]   ;;  %v4291_v34 = vld [vmem:[#allocation5 + $0xf0] ss:$8 sps:$4 sm:$0xff]   ;;  %v111_v35 = vld [vmem:[#allocation2] sm:$0xff] }
  0x68   :  { %v115_v36 = vld [vmem:[#allocation2 + $0x20] sm:$0xff]  ;;  %v120_v38 = vld [vmem:[#allocation2 + $0x48] sm:$0xff]  ;;  %v4297_v43 = vld [vmem:[#allocation5 + $0x114] ss:$8 sps:$4 sm:$0xff]  }
  0x69   :  { %v4294_v37 = vld [vmem:[#allocation5 + $0x104] ss:$8 sps:$4 sm:$0xff]   ;;  %v239_v40 = vpack.c.bf16 %v115_v36, %v111_v35  ;;  %v4292_v41 = vld [vmem:[#allocation5 + $0x100] ss:$8 sps:$4 sm:$0xff]   ;;  %v4295_v46 = vld [vmem:[#allocation5 + $0x110] ss:$8 sps:$4 sm:$0xff]  }
  0x6a   :  { %694 = vmatpush1.bf16.msra.mxu0 %v4255_v7  ;;  %v124_v39 = vld [vmem:[#allocation2 + $0x68] sm:$0xff]  ;;  %v119_v44 = vld [vmem:[#allocation2 + $0x40] sm:$0xff]  ;;  %v4303_v52 = vld [vmem:[#allocation5 + $0x134] ss:$8 sps:$4 sm:$0xff]  }
  0x6b   :  { %695 = vmatprep.subr.bf16.mxu0 %v4256_v8  ;;  %v244_v42 = vpack.c.bf16 %v124_v39, %v120_v38  ;;  %v123_v45 = vld [vmem:[#allocation2 + $0x60] sm:$0xff]  ;;  %v128_v47 = vld [vmem:[#allocation2 + $0x88] sm:$0xff]  ;;  %v4301_v58 = vld [vmem:[#allocation5 + $0x130] ss:$8 sps:$4 sm:$0xff]  }
  0x6c   :  { %v132_v48 = vld [vmem:[#allocation2 + $0xa8] sm:$0xff]  ;;  %v243_v51 = vpack.c.bf16 %v123_v45, %v119_v44  ;;  %v127_v54 = vld [vmem:[#allocation2 + $0x80] sm:$0xff]  ;;  %v4309_v62 = vld [vmem:[#allocation5 + $0x154] ss:$8 sps:$4 sm:$0xff]  }
  0x6d   :  { %v4300_v49 = vld [vmem:[#allocation5 + $0x124] ss:$8 sps:$4 sm:$0xff]   ;;  %v4298_v50 = vld [vmem:[#allocation5 + $0x120] ss:$8 sps:$4 sm:$0xff]   ;;  %v248_v53 = vpack.c.bf16 %v132_v48, %v128_v47  ;;  %v4307_v4 = vld [vmem:[#allocation5 + $0x150] ss:$8 sps:$4 sm:$0xff]  }
  0x6e   :  { %696 = vmatpush1.bf16.msra.mxu0 %v4258_v9  ;;  %v131_v55 = vld [vmem:[#allocation2 + $0xa0] sm:$0xff]  ;;  %v136_v56 = vld [vmem:[#allocation2 + $0xc8] sm:$0xff]  ;;  %v4315_v8 = vld [vmem:[#allocation5 + $0x174] ss:$8 sps:$4 sm:$0xff]  }
  0x6f   :  { %697 = vmatprep.subr.bf16.mxu0 %v4259_v10  ;;  %v140_v57 = vld [vmem:[#allocation2 + $0xe8] sm:$0xff]  ;;  %v247_v61 = vpack.c.bf16 %v131_v55, %v127_v54  ;;  %v135_v0 = vld [vmem:[#allocation2 + $0xc0] sm:$0xff]  ;;  %v4313_v14 = vld [vmem:[#allocation5 + $0x170] ss:$8 sps:$4 sm:$0xff]  }
  0x70   :  { %v4306_v59 = vld [vmem:[#allocation5 + $0x144] ss:$8 sps:$4 sm:$0xff]   ;;  %v4304_v60 = vld [vmem:[#allocation5 + $0x140] ss:$8 sps:$4 sm:$0xff]   ;;  %v252_v63 = vpack.c.bf16 %v140_v57, %v136_v56  ;;  %v4333_v39 = vld [vmem:[#allocation5 + $0x1d4] ss:$8 sps:$4 sm:$0xff]  }
  0x71   :  { %v139_v1 = vld [vmem:[#allocation2 + $0xe0] sm:$0xff]  ;;  %v144_v2 = vld [vmem:[#allocation2 + $0x108] sm:$0xff] }
  0x72   :  { %698 = vmatpush1.bf16.msra.mxu0 %v4261_v11  ;;  %v148_v3 = vld [vmem:[#allocation2 + $0x128] sm:$0xff]  ;;  %v251_v7 = vpack.c.bf16 %v139_v1, %v135_v0  ;;  %v143_v10 = vld [vmem:[#allocation2 + $0x100] sm:$0xff] }
  0x73   :  { %699 = vmatprep.subr.bf16.mxu0 %v4262_v12  ;;  %v4312_v5 = vld [vmem:[#allocation5 + $0x164] ss:$8 sps:$4 sm:$0xff]   ;;  %v4310_v6 = vld [vmem:[#allocation5 + $0x160] ss:$8 sps:$4 sm:$0xff]   ;;  %v256_v9 = vpack.c.bf16 %v148_v3, %v144_v2 }
  0x74   :  { %v147_v11 = vld [vmem:[#allocation2 + $0x120] sm:$0xff]  ;;  %v152_v12 = vld [vmem:[#allocation2 + $0x148] sm:$0xff] }
  0x75   :  { %v156_v13 = vld [vmem:[#allocation2 + $0x168] sm:$0xff]  ;;  %v183_v57 = vld [vmem:[#allocation2 + $0x240] sm:$0xff] }
  0x76   :  { %700 = vmatpush1.bf16.msra.mxu0 %v4264_v16  ;;  %v4318_v15 = vld [vmem:[#allocation5 + $0x184] ss:$8 sps:$4 sm:$0xff]   ;;  %v4316_v16 = vld [vmem:[#allocation5 + $0x180] ss:$8 sps:$4 sm:$0xff]  }
  0x77   :  { %701 = vmatprep.subr.bf16.mxu0 %v4265_v17  ;;  %v255_v17 = vpack.c.bf16 %v147_v11, %v143_v10  ;;  %v4330_v35 = vld [vmem:[#allocation5 + $0x1c4] ss:$8 sps:$4 sm:$0xff]   ;;  %v4328_v38 = vld [vmem:[#allocation5 + $0x1c0] ss:$8 sps:$4 sm:$0xff]  }
  0x78   :  { %v180_v44 = vld [vmem:[#allocation2 + $0x228] sm:$0xff]  ;;  %v195_v0 = vld [vmem:[#allocation2 + $0x2a0] sm:$0xff] }
  0x79   :  { %v4336_v45 = vld [vmem:[#allocation5 + $0x1e4] ss:$8 sps:$4 sm:$0xff]   ;;  %v4334_v48 = vld [vmem:[#allocation5 + $0x1e0] ss:$8 sps:$4 sm:$0xff]  }
  0x7a   :  { %702 = vmatpush1.bf16.msra.mxu0 %v4267_v18  ;;  %v4321_v18 = vld [vmem:[#allocation5 + $0x194] ss:$8 sps:$4 sm:$0xff]   ;;  %v188_v54 = vld [vmem:[#allocation2 + $0x268] sm:$0xff]  ;;  %v207_v11 = vld [vmem:[#allocation2 + $0x300] sm:$0xff] }
  0x7b   :  { %703 = vmatprep.subr.bf16.mxu0 %v4268_v19  ;;  %v260_v19 = vpack.c.bf16 %v156_v13, %v152_v12  ;;  %v200_v1 = vld [vmem:[#allocation2 + $0x2c8] sm:$0xff]  ;;  %v211_v12 = vld [vmem:[#allocation2 + $0x320] sm:$0xff] }
  0x7c   :  { %v204_v2 = vld [vmem:[#allocation2 + $0x2e8] sm:$0xff] }
  0x7d   :  { %v216_v13 = vld [vmem:[#allocation2 + $0x348] sm:$0xff] }
  0x7e   :  { %704 = vmatpush1.bf16.msra.mxu0 %v4270_v20  ;;  %v151_v20 = vld [vmem:[#allocation2 + $0x140] sm:$0xff] }
  0x7f   :  { %705 = vmatprep.subr.bf16.mxu0 %v4271_v21  ;;  %v155_v21 = vld [vmem:[#allocation2 + $0x160] sm:$0xff] }
  0x82   :  { %706 = vmatpush1.bf16.msra.mxu0 %v4273_v22  ;;  %v160_v22 = vld [vmem:[#allocation2 + $0x188] sm:$0xff] }
  0x83   :  { %707 = vmatprep.subr.bf16.mxu0 %v4274_v23  ;;  %v164_v23 = vld [vmem:[#allocation2 + $0x1a8] sm:$0xff] }
  0x86   :  { %708 = vmatpush1.bf16.msra.mxu0 %v4276_v24  ;;  %v4319_v24 = vld [vmem:[#allocation5 + $0x190] ss:$8 sps:$4 sm:$0xff]  }
  0x87   :  { %709 = vmatprep.subr.bf16.mxu0 %v4277_v25  ;;  %v4324_v25 = vld [vmem:[#allocation5 + $0x1a4] ss:$8 sps:$4 sm:$0xff]  }
  0x8a   :  { %710 = vmatpush1.bf16.msra.mxu0 %v4279_v26  ;;  %v4322_v26 = vld [vmem:[#allocation5 + $0x1a0] ss:$8 sps:$4 sm:$0xff]  }
  0x8b   :  { %711 = vmatprep.subr.bf16.mxu0 %v4280_v27  ;;  %v259_v27 = vpack.c.bf16 %v155_v21, %v151_v20  ;;  %v228_v20 = vld [vmem:[#allocation2 + $0x3a8] sm:$0xff] }
  0x8e   :  { %712 = vmatpush1.bf16.msra.mxu0 %v4282_v28  ;;  %v4327_v28 = vld [vmem:[#allocation5 + $0x1b4] ss:$8 sps:$4 sm:$0xff]  }
  0x8f   :  { %713 = vmatprep.subr.bf16.mxu0 %v4283_v29  ;;  %v264_v29 = vpack.c.bf16 %v164_v23, %v160_v22  ;;  %v223_v23 = vld [vmem:[#allocation2 + $0x380] sm:$0xff] }
  0x92   :  { %714 = vmatpush1.bf16.msra.mxu0 %v4285_v30  ;;  %v159_v30 = vld [vmem:[#allocation2 + $0x180] sm:$0xff] }
  0x93   :  { %715 = vmatprep.subr.bf16.mxu0 %v4286_v31  ;;  %v163_v31 = vld [vmem:[#allocation2 + $0x1a0] sm:$0xff] }
  0x94   :  { %v263_v36 = vpack.c.bf16 %v163_v31, %v159_v30  ;;  %v235_v30 = vld [vmem:[#allocation2 + $0x3e0] sm:$0xff]  ;;  %v114_v31 = vld [vmem:[#allocation2 + $0x18] sm:$0xff] }
  0x96   :  { %716 = vmatpush1.bf16.msra.mxu0 %v4288_v32  ;;  %v168_v32 = vld [vmem:[#allocation2 + $0x1c8] sm:$0xff] }
  0x97   :  { %717 = vmatprep.subr.bf16.mxu0 %v4289_v33  ;;  %v172_v33 = vld [vmem:[#allocation2 + $0x1e8] sm:$0xff] }
  0x9a   :  { %718 = vmatpush1.bf16.msra.mxu0 %v4291_v34  ;;  %v4325_v34 = vld [vmem:[#allocation5 + $0x1b0] ss:$8 sps:$4 sm:$0xff]  }
  0x9b   :  { %880 = vmatprep.subr.bf16.mxu0 %v4294_v37  ;;  %v268_v37 = vpack.c.bf16 %v172_v33, %v168_v32  ;;  %v118_v32 = vld [vmem:[#allocation2 + $0x38] sm:$0xff] }
  0x9d   :  { %720 = vmatmul.mubr.bf16.vlgmr.msra.gmra.mrb[0].mxu0 %v239_v40  ;;  %v167_v40 = vld [vmem:[#allocation2 + $0x1c0] sm:$0xff] }
  0x9e   :  { %881 = vmatpush1.bf16.msra.mxu0 %v4292_v41  ;;  %729 = vmatprep.mubr.bf16.mxu0 %v244_v42  ;;  %v171_v41 = vld [vmem:[#allocation2 + $0x1e0] sm:$0xff]  ;;  %v4331_v42 = vld [vmem:[#allocation5 + $0x1d0] ss:$8 sps:$4 sm:$0xff]  }
  0x9f   :  { %882 = vmatprep.subr.bf16.mxu0 %v4297_v43  ;;  %v176_v43 = vld [vmem:[#allocation2 + $0x208] sm:$0xff] }
  0xa0   :  { %v272_v47 = vpack.c.bf16 %v180_v44, %v176_v43  ;;  %v130_v43 = vld [vmem:[#allocation2 + $0x98] sm:$0xff] }
  0xa1   :  { %v134_v44 = vld [vmem:[#allocation2 + $0xb8] sm:$0xff] }
  0xa2   :  { %883 = vmatpush1.bf16.msra.mxu0 %v4295_v46  ;;  %v267_v46 = vpack.c.bf16 %v171_v41, %v167_v40  ;;  %v121_v41 = vld [vmem:[#allocation2 + $0x50] sm:$0xff] }
  0xa3   :  { %884 = vmatprep.subr.bf16.mxu0 %v4300_v49  ;;  %v4339_v49 = vld [vmem:[#allocation5 + $0x1f4] ss:$8 sps:$4 sm:$0xff]  }
  0xa5   :  { %730 = vmatmul.mubr.bf16.gmra.mrb[4].mxu0 %v243_v51  ;;  %v179_v51 = vld [vmem:[#allocation2 + $0x220] sm:$0xff] }
  0xa6   :  { %739 = vmatprep.mubr.bf16.mxu0 %v248_v53  ;;  %885 = vmatpush1.bf16.msra.mxu0 %v4298_v50  ;;  %v175_v50 = vld [vmem:[#allocation2 + $0x200] sm:$0xff]  ;;  %v184_v53 = vld [vmem:[#allocation2 + $0x248] sm:$0xff] }
  0xa7   :  { %886 = vmatprep.subr.bf16.mxu0 %v4303_v52  ;;  %v4337_v52 = vld [vmem:[#allocation5 + $0x1f0] ss:$8 sps:$4 sm:$0xff]   ;;  %v271_v55 = vpack.c.bf16 %v179_v51, %v175_v50  ;;  %v276_v56 = vpack.c.bf16 %v188_v54, %v184_v53 }
  0xa8   :  { %v142_v50 = vld [vmem:[#allocation2 + $0xf8] sm:$0xff]  ;;  %v137_v53 = vld [vmem:[#allocation2 + $0xd0] sm:$0xff] }
  0xa9   :  { %v141_v54 = vld [vmem:[#allocation2 + $0xf0] sm:$0xff] }
  0xaa   :  { %887 = vmatpush1.bf16.msra.mxu0 %v4301_v58  ;;  %v187_v58 = vld [vmem:[#allocation2 + $0x260] sm:$0xff] }
  0xab   :  { %888 = vmatprep.subr.bf16.mxu0 %v4306_v59  ;;  %v192_v59 = vld [vmem:[#allocation2 + $0x288] sm:$0xff] }
  0xad   :  { %740 = vmatmul.mubr.bf16.gmra.mrb[8].mxu0 %v247_v61  ;;  %v275_v61 = vpack.c.bf16 %v187_v58, %v183_v57  ;;  %v253_v57 = vpack.c.bf16 %v141_v54, %v137_v53 }
  0xae   :  { %749 = vmatprep.mubr.bf16.mxu0 %v252_v63  ;;  %889 = vmatpush1.bf16.msra.mxu0 %v4304_v60  ;;  %v196_v60 = vld [vmem:[#allocation2 + $0x2a8] sm:$0xff]  ;;  %v191_v63 = vld [vmem:[#allocation2 + $0x280] sm:$0xff] }
  0xaf   :  { %890 = vmatprep.subr.bf16.mxu0 %v4309_v62  ;;  %v280_v62 = vpack.c.bf16 %v196_v60, %v192_v59  ;;  %v279_v3 = vpack.c.bf16 %v195_v0, %v191_v63  ;;  %v145_v59 = vld [vmem:[#allocation2 + $0x110] sm:$0xff] }
  0xb0   :  { %v149_v60 = vld [vmem:[#allocation2 + $0x130] sm:$0xff] }
  0xb1   :  { %v257_v63 = vpack.c.bf16 %v149_v60, %v145_v59 }
  0xb2   :  { %891 = vmatpush1.bf16.msra.mxu0 %v4307_v4  ;;  %v284_v4 = vpack.c.bf16 %v204_v2, %v200_v1  ;;  %v153_v1 = vld [vmem:[#allocation2 + $0x150] sm:$0xff] }
  0xb3   :  { %892 = vmatprep.subr.bf16.mxu0 %v4312_v5  ;;  %v199_v5 = vld [vmem:[#allocation2 + $0x2c0] sm:$0xff]  ;;  %v157_v2 = vld [vmem:[#allocation2 + $0x170] sm:$0xff] }
  0xb5   :  { %750 = vmatmul.mubr.bf16.gmra.mrb[12].mxu0 %v251_v7  ;;  %v208_v7 = vld [vmem:[#allocation2 + $0x308] sm:$0xff] }
  0xb6   :  { %759 = vmatprep.mubr.bf16.mxu0 %v256_v9  ;;  %893 = vmatpush1.bf16.msra.mxu0 %v4310_v6  ;;  %v203_v6 = vld [vmem:[#allocation2 + $0x2e0] sm:$0xff] }
  0xb7   :  { %894 = vmatprep.subr.bf16.mxu0 %v4315_v8  ;;  %v212_v8 = vld [vmem:[#allocation2 + $0x328] sm:$0xff]  ;;  %v283_v9 = vpack.c.bf16 %v203_v6, %v199_v5  ;;  %v261_v5 = vpack.c.bf16 %v157_v2, %v153_v1 }
  0xb8   :  { %v288_v10 = vpack.c.bf16 %v212_v8, %v208_v7  ;;  %v161_v7 = vld [vmem:[#allocation2 + $0x190] sm:$0xff] }
  0xb9   :  { %v165_v8 = vld [vmem:[#allocation2 + $0x1b0] sm:$0xff] }
  0xba   :  { %895 = vmatpush1.bf16.msra.mxu0 %v4313_v14  ;;  %v220_v14 = vld [vmem:[#allocation2 + $0x368] sm:$0xff] }
  0xbb   :  { %896 = vmatprep.subr.bf16.mxu0 %v4318_v15  ;;  %v287_v15 = vpack.c.bf16 %v211_v12, %v207_v11  ;;  %v265_v11 = vpack.c.bf16 %v165_v8, %v161_v7 }
  0xbd   :  { %760 = vmatmul.mubr.bf16.gmra.mrb[16].mxu0 %v255_v17  ;;  %v215_v17 = vld [vmem:[#allocation2 + $0x340] sm:$0xff] }
  0xbe   :  { %769 = vmatprep.mubr.bf16.mxu0 %v260_v19  ;;  %897 = vmatpush1.bf16.msra.mxu0 %v4316_v16  ;;  %v292_v16 = vpack.c.bf16 %v220_v14, %v216_v13  ;;  %v224_v19 = vld [vmem:[#allocation2 + $0x388] sm:$0xff]  ;;  %v169_v13 = vld [vmem:[#allocation2 + $0x1d0] sm:$0xff] }
  0xbf   :  { %898 = vmatprep.subr.bf16.mxu0 %v4321_v18  ;;  %v219_v18 = vld [vmem:[#allocation2 + $0x360] sm:$0xff]  ;;  %v296_v22 = vpack.c.bf16 %v228_v20, %v224_v19  ;;  %v173_v14 = vld [vmem:[#allocation2 + $0x1f0] sm:$0xff] }
  0xc0   :  { %v291_v21 = vpack.c.bf16 %v219_v18, %v215_v17  ;;  %v269_v17 = vpack.c.bf16 %v173_v14, %v169_v13  ;;  %v177_v19 = vld [vmem:[#allocation2 + $0x210] sm:$0xff] }
  0xc1   :  { %v181_v20 = vld [vmem:[#allocation2 + $0x230] sm:$0xff] }
  0xc2   :  { %899 = vmatpush1.bf16.msra.mxu0 %v4319_v24  ;;  %v227_v24 = vld [vmem:[#allocation2 + $0x3a0] sm:$0xff] }
  0xc3   :  { %900 = vmatprep.subr.bf16.mxu0 %v4324_v25  ;;  %v232_v25 = vld [vmem:[#allocation2 + $0x3c8] sm:$0xff] }
  0xc5   :  { %770 = vmatmul.mubr.bf16.gmra.mrb[20].mxu0 %v259_v27  ;;  %v295_v27 = vpack.c.bf16 %v227_v24, %v223_v23  ;;  %v273_v23 = vpack.c.bf16 %v181_v20, %v177_v19 }
  0xc6   :  { %779 = vmatprep.mubr.bf16.mxu0 %v264_v29  ;;  %901 = vmatpush1.bf16.msra.mxu0 %v4322_v26  ;;  %v236_v26 = vld [vmem:[#allocation2 + $0x3e8] sm:$0xff]  ;;  %v231_v29 = vld [vmem:[#allocation2 + $0x3c0] sm:$0xff] }
  0xc7   :  { %902 = vmatprep.subr.bf16.mxu0 %v4327_v28  ;;  %v300_v28 = vpack.c.bf16 %v236_v26, %v232_v25  ;;  %v299_v33 = vpack.c.bf16 %v235_v30, %v231_v29  ;;  %v185_v25 = vld [vmem:[#allocation2 + $0x250] sm:$0xff] }
  0xc8   :  { %v189_v26 = vld [vmem:[#allocation2 + $0x270] sm:$0xff] }
  0xc9   :  { %v277_v29 = vpack.c.bf16 %v189_v26, %v185_v25 }
  0xca   :  { %903 = vmatpush1.bf16.msra.mxu0 %v4325_v34  ;;  %v242_v34 = vpack.c.bf16 %v118_v32, %v114_v31  ;;  %v193_v31 = vld [vmem:[#allocation2 + $0x290] sm:$0xff] }
  0xcb   :  { %904 = vmatprep.subr.bf16.mxu0 %v4330_v35  ;;  %v113_v35 = vld [vmem:[#allocation2 + $0x10] sm:$0xff] }
  0xcc   :  { %v197_v32 = vld [vmem:[#allocation2 + $0x2b0] sm:$0xff] }
  0xcd   :  { %780 = vmatmul.mubr.bf16.gmra.mrb[24].mxu0 %v263_v36  ;;  %v117_v36 = vld [vmem:[#allocation2 + $0x30] sm:$0xff] }
  0xce   :  { %789 = vmatprep.mubr.bf16.mxu0 %v268_v37  ;;  %905 = vmatpush1.bf16.msra.mxu0 %v4328_v38  ;;  %v122_v37 = vld [vmem:[#allocation2 + $0x58] sm:$0xff] }
  0xcf   :  { %906 = vmatprep.subr.bf16.mxu0 %v4333_v39  ;;  %v126_v38 = vld [vmem:[#allocation2 + $0x78] sm:$0xff]  ;;  %v241_v39 = vpack.c.bf16 %v117_v36, %v113_v35  ;;  %v281_v35 = vpack.c.bf16 %v197_v32, %v193_v31 }
  0xd0   :  { %v246_v40 = vpack.c.bf16 %v126_v38, %v122_v37  ;;  %v201_v37 = vld [vmem:[#allocation2 + $0x2d0] sm:$0xff] }
  0xd1   :  { %v205_v38 = vld [vmem:[#allocation2 + $0x2f0] sm:$0xff] }
  0xd2   :  { %907 = vmatpush1.bf16.msra.mxu0 %v4331_v42  ;;  %v125_v42 = vld [vmem:[#allocation2 + $0x70] sm:$0xff] }
  0xd3   :  { %908 = vmatprep.subr.bf16.mxu0 %v4336_v45  ;;  %v245_v45 = vpack.c.bf16 %v125_v42, %v121_v41  ;;  %v285_v41 = vpack.c.bf16 %v205_v38, %v201_v37 }
  0xd5   :  { %790 = vmatmul.mubr.bf16.gmra.mrb[28].mxu0 %v267_v46  ;;  %v250_v46 = vpack.c.bf16 %v134_v44, %v130_v43  ;;  %v209_v43 = vld [vmem:[#allocation2 + $0x310] sm:$0xff] }
  0xd6   :  { %799 = vmatprep.mubr.bf16.mxu0 %v272_v47  ;;  %909 = vmatpush1.bf16.msra.mxu0 %v4334_v48  ;;  %v129_v47 = vld [vmem:[#allocation2 + $0x90] sm:$0xff] }
  0xd7   :  { %910 = vmatprep.subr.bf16.mxu0 %v4339_v49  ;;  %v133_v48 = vld [vmem:[#allocation2 + $0xb0] sm:$0xff]  ;;  %v138_v49 = vld [vmem:[#allocation2 + $0xd8] sm:$0xff] }
  0xd8   :  { %v249_v51 = vpack.c.bf16 %v133_v48, %v129_v47  ;;  %v213_v44 = vld [vmem:[#allocation2 + $0x330] sm:$0xff] }
  0xd9   :  { %v289_v47 = vpack.c.bf16 %v213_v44, %v209_v43 }
  0xda   :  { %911 = vmatpush1.bf16.msra.mxu0 %v4337_v52  ;;  %v254_v52 = vpack.c.bf16 %v142_v50, %v138_v49  ;;  %v217_v49 = vld [vmem:[#allocation2 + $0x350] sm:$0xff] }
  0xdb   :  { %v221_v50 = vld [vmem:[#allocation2 + $0x370] sm:$0xff] }
  0xdc   :  { %v293_v53 = vpack.c.bf16 %v221_v50, %v217_v49 }
  0xdd   :  { %800 = vmatmul.mubr.bf16.gmra.mrb[32].mxu0 %v271_v55  ;;  %v146_v55 = vld [vmem:[#allocation2 + $0x118] sm:$0xff] }
  0xde   :  { %809 = vmatprep.mubr.bf16.mxu0 %v276_v56  ;;  %v150_v56 = vld [vmem:[#allocation2 + $0x138] sm:$0xff] }
  0xdf   :  { %v258_v58 = vpack.c.bf16 %v150_v56, %v146_v55  ;;  %v225_v55 = vld [vmem:[#allocation2 + $0x390] sm:$0xff] }
  0xe0   :  { %v229_v56 = vld [vmem:[#allocation2 + $0x3b0] sm:$0xff] }
  0xe1   :  { %v297_v59 = vpack.c.bf16 %v229_v56, %v225_v55 }
  0xe5   :  { %810 = vmatmul.mubr.bf16.gmra.mrb[36].mxu0 %v275_v61  ;;  %v154_v61 = vld [vmem:[#allocation2 + $0x158] sm:$0xff] }
  0xe6   :  { %819 = vmatprep.mubr.bf16.mxu0 %v280_v62  ;;  %v158_v62 = vld [vmem:[#allocation2 + $0x178] sm:$0xff] }
  0xe7   :  { %v262_v0 = vpack.c.bf16 %v158_v62, %v154_v61  ;;  %v233_v61 = vld [vmem:[#allocation2 + $0x3d0] sm:$0xff] }
  0xe8   :  { %v237_v62 = vld [vmem:[#allocation2 + $0x3f0] sm:$0xff] }
  0xed   :  { %820 = vmatmul.mubr.bf16.gmra.mrb[40].mxu0 %v279_v3  ;;  %v162_v3 = vld [vmem:[#allocation2 + $0x198] sm:$0xff] }
  0xee   :  { %829 = vmatprep.mubr.bf16.mxu0 %v284_v4  ;;  %v166_v4 = vld [vmem:[#allocation2 + $0x1b8] sm:$0xff] }
  0xef   :  { %v266_v6 = vpack.c.bf16 %v166_v4, %v162_v3 }
  0xf5   :  { %830 = vmatmul.mubr.bf16.gmra.mrb[44].mxu0 %v283_v9  ;;  %v170_v9 = vld [vmem:[#allocation2 + $0x1d8] sm:$0xff] }
  0xf6   :  { %839 = vmatprep.mubr.bf16.mxu0 %v288_v10  ;;  %v174_v10 = vld [vmem:[#allocation2 + $0x1f8] sm:$0xff] }
  0xf7   :  { %v270_v12 = vpack.c.bf16 %v174_v10, %v170_v9 }
  0xfd   :  { %840 = vmatmul.mubr.bf16.gmra.mrb[48].mxu0 %v287_v15  ;;  %v178_v15 = vld [vmem:[#allocation2 + $0x218] sm:$0xff] }
  0xfe   :  { %849 = vmatprep.mubr.bf16.mxu0 %v292_v16  ;;  %v182_v16 = vld [vmem:[#allocation2 + $0x238] sm:$0xff] }
  0xff   :  { %v274_v18 = vpack.c.bf16 %v182_v16, %v178_v15 }
 0x105   :  { %850 = vmatmul.mubr.bf16.gmra.mrb[52].mxu0 %v291_v21  ;;  %v186_v21 = vld [vmem:[#allocation2 + $0x258] sm:$0xff] }
 0x106   :  { %859 = vmatprep.mubr.bf16.mxu0 %v296_v22  ;;  %v190_v22 = vld [vmem:[#allocation2 + $0x278] sm:$0xff] }
 0x107   :  { %v278_v24 = vpack.c.bf16 %v190_v22, %v186_v21 }
 0x10d   :  { %860 = vmatmul.mubr.bf16.gmra.mrb[56].mxu0 %v295_v27  ;;  %v194_v27 = vld [vmem:[#allocation2 + $0x298] sm:$0xff] }
 0x10e   :  { %869 = vmatprep.mubr.bf16.mxu0 %v300_v28  ;;  %v198_v28 = vld [vmem:[#allocation2 + $0x2b8] sm:$0xff] }
 0x10f   :  { %v282_v30 = vpack.c.bf16 %v198_v28, %v194_v27 }
 0x115   :  { %870 = vmatmul.mubr.bf16.gmra.mrb[60].mxu0 %v299_v33  ;;  %v202_v33 = vld [vmem:[#allocation2 + $0x2d8] sm:$0xff] }
 0x116   :  { %912 = vmatprep.mubr.bf16.mxu0 %v242_v34  ;;  %v206_v34 = vld [vmem:[#allocation2 + $0x2f8] sm:$0xff] }
 0x117   :  { %v286_v36 = vpack.c.bf16 %v206_v34, %v202_v33 }
 0x11d   :  { %913 = vmatmul.mubr.bf16.vlgmr.msra.gmra.mrb[0].mxu0 %v241_v39  ;;  %v210_v39 = vld [vmem:[#allocation2 + $0x318] sm:$0xff] }
 0x11e   :  { %922 = vmatprep.mubr.bf16.mxu0 %v246_v40  ;;  %v214_v40 = vld [vmem:[#allocation2 + $0x338] sm:$0xff] }
 0x11f   :  { %v290_v42 = vpack.c.bf16 %v214_v40, %v210_v39 }
 0x125   :  { %923 = vmatmul.mubr.bf16.gmra.mrb[4].mxu0 %v245_v45  ;;  %v218_v45 = vld [vmem:[#allocation2 + $0x358] sm:$0xff] }
 0x126   :  { %932 = vmatprep.mubr.bf16.mxu0 %v250_v46  ;;  %v222_v46 = vld [vmem:[#allocation2 + $0x378] sm:$0xff] }
 0x127   :  { %v294_v48 = vpack.c.bf16 %v222_v46, %v218_v45 }
 0x12d   :  { %933 = vmatmul.mubr.bf16.gmra.mrb[8].mxu0 %v249_v51  ;;  %v226_v51 = vld [vmem:[#allocation2 + $0x398] sm:$0xff] }
 0x12e   :  { %942 = vmatprep.mubr.bf16.mxu0 %v254_v52  ;;  %v230_v52 = vld [vmem:[#allocation2 + $0x3b8] sm:$0xff] }
 0x12f   :  { %v298_v54 = vpack.c.bf16 %v230_v52, %v226_v51 }
 0x135   :  { %943 = vmatmul.mubr.bf16.gmra.mrb[12].mxu0 %v253_v57  ;;  %v234_v57 = vld [vmem:[#allocation2 + $0x3d8] sm:$0xff] }
 0x136   :  { %952 = vmatprep.mubr.bf16.mxu0 %v258_v58  ;;  %v238_v58 = vld [vmem:[#allocation2 + $0x3f8] sm:$0xff] }
 0x137   :  { %v302_v60 = vpack.c.bf16 %v238_v58, %v234_v57 }
 0x13d   :  { %953 = vmatmul.mubr.bf16.gmra.mrb[16].mxu0 %v257_v63  ;;  %v301_v63 = vpack.c.bf16 %v237_v62, %v233_v61 }
 0x13e   :  { %962 = vmatprep.mubr.bf16.mxu0 %v262_v0 }
 0x145   :  { %963 = vmatmul.mubr.bf16.gmra.mrb[20].mxu0 %v261_v5 }
 0x146   :  { %972 = vmatprep.mubr.bf16.mxu0 %v266_v6 }
 0x14d   :  { %973 = vmatmul.mubr.bf16.gmra.mrb[24].mxu0 %v265_v11 }
 0x14e   :  { %982 = vmatprep.mubr.bf16.mxu0 %v270_v12 }
 0x155   :  { %983 = vmatmul.mubr.bf16.gmra.mrb[28].mxu0 %v269_v17 }
 0x156   :  { %992 = vmatprep.mubr.bf16.mxu0 %v274_v18 }
 0x15d   :  { %993 = vmatmul.mubr.bf16.gmra.mrb[32].mxu0 %v273_v23 }
 0x15e   :  { %1002 = vmatprep.mubr.bf16.mxu0 %v278_v24 }
 0x165   :  { %1003 = vmatmul.mubr.bf16.gmra.mrb[36].mxu0 %v277_v29 }
 0x166   :  { %1012 = vmatprep.mubr.bf16.mxu0 %v282_v30 }
 0x16d   :  { %1013 = vmatmul.mubr.bf16.gmra.mrb[40].mxu0 %v281_v35 }
 0x16e   :  { %1022 = vmatprep.mubr.bf16.mxu0 %v286_v36 }
 0x175   :  { %1023 = vmatmul.mubr.bf16.gmra.mrb[44].mxu0 %v285_v41 }
 0x176   :  { %1032 = vmatprep.mubr.bf16.mxu0 %v290_v42 }
 0x17d   :  { %1033 = vmatmul.mubr.bf16.gmra.mrb[48].mxu0 %v289_v47 }
 0x17e   :  { %1042 = vmatprep.mubr.bf16.mxu0 %v294_v48 }
 0x185   :  { %1043 = vmatmul.mubr.bf16.gmra.mrb[52].mxu0 %v293_v53 }
 0x186   :  { %1052 = vmatprep.mubr.bf16.mxu0 %v298_v54 }
 0x18d   :  { %1053 = vmatmul.mubr.bf16.gmra.mrb[56].mxu0 %v297_v59 }
 0x18e   :  { %1062 = vmatprep.mubr.bf16.mxu0 %v302_v60 }
 0x195   :  { %1063 = vmatmul.mubr.bf16.gmra.mrb[60].mxu0 %v301_v63 }
 0x1f0   :  { %v4791_v0 = vpop.f32.mrb[0].mxu0 }
 0x1f1   :  { %v4793_v1 = vpop.f32.mrb[1].mxu0  ;;  %v1075_v3 = vmul.f32 %v4791_v0, %v4791_v0 }
 0x1f2   :  { %v4795_v2 = vpop.f32.mrb[2].mxu0  ;;  %v1076_v7 = vmul.f32 %v4793_v1, %v4793_v1 }
 0x1f3   :  { %v1077_v4 = vmul.f32 %v4795_v2, %v4795_v2  ;;  %v1139_v5 = vadd.f32 %v4795_v2, %v4791_v0  ;;  %v4803_v6 = vpop.f32.mrb[3].mxu0 }
 0x1f4   :  { %v1078_v8 = vmul.f32 %v4803_v6, %v4803_v6  ;;  %v1176_v9 = vadd.f32 %v4803_v6, %v4793_v1 }
 0x1f5   :  { %v1213_v10 = vadd.f32 %v1077_v4, %v1075_v3 }
 0x1f6   :  { %v1250_v11 = vadd.f32 %v1078_v8, %v1076_v7 }
 0x1f8   :  { %v4811_v12 = vpop.f32.mrb[4].mxu0 }
 0x1f9   :  { %v1079_v13 = vmul.f32 %v4811_v12, %v4811_v12  ;;  %v1140_v14 = vadd.f32 %v1139_v5, %v4811_v12  ;;  %v4816_v15 = vpop.f32.mrb[5].mxu0 }
 0x1fa   :  { %v1080_v16 = vmul.f32 %v4816_v15, %v4816_v15  ;;  %v1177_v17 = vadd.f32 %v1176_v9, %v4816_v15  ;;  %v4821_v18 = vpop.f32.mrb[6].mxu0 }
 0x1fb   :  { %v1214_v19 = vadd.f32 %v1213_v10, %v1079_v13  ;;  %v1081_v20 = vmul.f32 %v4821_v18, %v4821_v18  ;;  %v1141_v21 = vadd.f32 %v1140_v14, %v4821_v18  ;;  %v4826_v22 = vpop.f32.mrb[7].mxu0 }
 0x1fc   :  { %v1251_v23 = vadd.f32 %v1250_v11, %v1080_v16  ;;  %v1082_v24 = vmul.f32 %v4826_v22, %v4826_v22  ;;  %v1178_v25 = vadd.f32 %v1177_v17, %v4826_v22 }
 0x1fd   :  { %v1215_v26 = vadd.f32 %v1214_v19, %v1081_v20 }
 0x1fe   :  { %v1252_v27 = vadd.f32 %v1251_v23, %v1082_v24 }
 0x200   :  { %v4831_v28 = vpop.f32.mrb[8].mxu0 }
 0x201   :  { %v1083_v29 = vmul.f32 %v4831_v28, %v4831_v28  ;;  %v1142_v30 = vadd.f32 %v1141_v21, %v4831_v28  ;;  %v4836_v31 = vpop.f32.mrb[9].mxu0 }
 0x202   :  { %v1084_v32 = vmul.f32 %v4836_v31, %v4836_v31  ;;  %v1179_v33 = vadd.f32 %v1178_v25, %v4836_v31  ;;  %v4841_v34 = vpop.f32.mrb[10].mxu0 }
 0x203   :  { %v1216_v35 = vadd.f32 %v1215_v26, %v1083_v29  ;;  %v1085_v36 = vmul.f32 %v4841_v34, %v4841_v34  ;;  %v1143_v37 = vadd.f32 %v1142_v30, %v4841_v34  ;;  %v4846_v38 = vpop.f32.mrb[11].mxu0 }
 0x204   :  { %v1253_v39 = vadd.f32 %v1252_v27, %v1084_v32  ;;  %v1086_v40 = vmul.f32 %v4846_v38, %v4846_v38  ;;  %v1180_v41 = vadd.f32 %v1179_v33, %v4846_v38 }
 0x205   :  { %v1217_v42 = vadd.f32 %v1216_v35, %v1085_v36 }
 0x206   :  { %v1254_v43 = vadd.f32 %v1253_v39, %v1086_v40  ;;  %v4340_v40 = vld [vmem:[#allocation7 + $0x40] sm:$0xff]  }
 0x207   :  { %4020 = vmatprep.subr.bf16.mxu1 %v4340_v40  ;;  %v4348_v40 = vld [vmem:[#allocation7 + $0x60] sm:$0xff]  }
 0x208   :  { %v4851_v44 = vpop.f32.mrb[12].mxu0 }
 0x209   :  { %v1087_v45 = vmul.f32 %v4851_v44, %v4851_v44  ;;  %v1144_v46 = vadd.f32 %v1143_v37, %v4851_v44  ;;  %v4856_v47 = vpop.f32.mrb[13].mxu0 }
 0x20a   :  { %v1088_v48 = vmul.f32 %v4856_v47, %v4856_v47  ;;  %v1181_v49 = vadd.f32 %v1180_v41, %v4856_v47  ;;  %v4861_v50 = vpop.f32.mrb[14].mxu0 }
 0x20b   :  { %v1218_v51 = vadd.f32 %v1217_v42, %v1087_v45  ;;  %v1089_v52 = vmul.f32 %v4861_v50, %v4861_v50  ;;  %v1145_v53 = vadd.f32 %v1144_v46, %v4861_v50  ;;  %v4866_v54 = vpop.f32.mrb[15].mxu0  ;;  %v4341_v42 = vld [vmem:[#allocation7] sm:$0xff]  }
 0x20c   :  { %v1255_v55 = vadd.f32 %v1254_v43, %v1088_v48  ;;  %v1090_v56 = vmul.f32 %v4866_v54, %v4866_v54  ;;  %v1182_v57 = vadd.f32 %v1181_v49, %v4866_v54  ;;  %4021 = vmatpush3.bf16.msra.mxu1 %v4341_v42 }
 0x20d   :  { %v1219_v58 = vadd.f32 %v1218_v51, %v1089_v52 }
 0x20e   :  { %v1256_v59 = vadd.f32 %v1255_v55, %v1090_v56 }
 0x210   :  { %v4871_v60 = vpop.f32.mrb[16].mxu0 }
 0x211   :  { %v1091_v61 = vmul.f32 %v4871_v60, %v4871_v60  ;;  %v1146_v62 = vadd.f32 %v1145_v53, %v4871_v60  ;;  %v4876_v63 = vpop.f32.mrb[17].mxu0 }
 0x212   :  { %v1092_v3 = vmul.f32 %v4876_v63, %v4876_v63  ;;  %v1183_v4 = vadd.f32 %v1182_v57, %v4876_v63  ;;  %v4881_v5 = vpop.f32.mrb[18].mxu0  ;;  %v4342_v57 = vld [vmem:[#allocation7 + $0x48] sm:$0xff]  }
 0x213   :  { %v1220_v7 = vadd.f32 %v1219_v58, %v1091_v61  ;;  %v1093_v8 = vmul.f32 %v4881_v5, %v4881_v5  ;;  %v1147_v9 = vadd.f32 %v1146_v62, %v4881_v5  ;;  %v4886_v10 = vpop.f32.mrb[19].mxu0  ;;  %v4343_v62 = vld [vmem:[#allocation7 + $0x8] sm:$0xff]   ;;  %4022 = vmatprep.subr.bf16.mxu1 %v4342_v57 }
 0x214   :  { %v1257_v11 = vadd.f32 %v1256_v59, %v1092_v3  ;;  %v1094_v13 = vmul.f32 %v4886_v10, %v4886_v10  ;;  %v1184_v14 = vadd.f32 %v1183_v4, %v4886_v10  ;;  %4023 = vmatpush3.bf16.msra.mxu1 %v4343_v62  ;;  %v4350_v62 = vld [vmem:[#allocation7 + $0x68] sm:$0xff]  }
 0x215   :  { %v1221_v16 = vadd.f32 %v1220_v7, %v1093_v8  ;;  %v4344_v7 = vld [vmem:[#allocation7 + $0x50] sm:$0xff]  }
 0x216   :  { %v1258_v17 = vadd.f32 %v1257_v11, %v1094_v13  ;;  %4024 = vmatprep.subr.bf16.mxu1 %v4344_v7 }
 0x218   :  { %v4891_v19 = vpop.f32.mrb[20].mxu0 }
 0x219   :  { %v1095_v20 = vmul.f32 %v4891_v19, %v4891_v19  ;;  %v1148_v21 = vadd.f32 %v1147_v9, %v4891_v19  ;;  %v4896_v23 = vpop.f32.mrb[21].mxu0  ;;  %v4345_v9 = vld [vmem:[#allocation7 + $0x10] sm:$0xff]  }
 0x21a   :  { %v1096_v24 = vmul.f32 %v4896_v23, %v4896_v23  ;;  %v1185_v25 = vadd.f32 %v1184_v14, %v4896_v23  ;;  %v4901_v26 = vpop.f32.mrb[22].mxu0  ;;  %4025 = vmatpush3.bf16.msra.mxu1 %v4345_v9  ;;  %v4351_v9 = vld [vmem:[#allocation7 + $0x28] sm:$0xff]  }
 0x21b   :  { %v1222_v27 = vadd.f32 %v1221_v16, %v1095_v20  ;;  %v1097_v29 = vmul.f32 %v4901_v26, %v4901_v26  ;;  %v1149_v30 = vadd.f32 %v1148_v21, %v4901_v26  ;;  %v4906_v32 = vpop.f32.mrb[23].mxu0 }
 0x21c   :  { %v1259_v33 = vadd.f32 %v1258_v17, %v1096_v24  ;;  %v1098_v35 = vmul.f32 %v4906_v32, %v4906_v32  ;;  %v1186_v36 = vadd.f32 %v1185_v25, %v4906_v32 }
 0x21d   :  { %v1223_v37 = vadd.f32 %v1222_v27, %v1097_v29  ;;  %v4346_v29 = vld [vmem:[#allocation7 + $0x58] sm:$0xff]  }
 0x21e   :  { %v1260_v39 = vadd.f32 %v1259_v33, %v1098_v35  ;;  %4026 = vmatprep.subr.bf16.mxu1 %v4346_v29 }
 0x220   :  { %v4911_v41 = vpop.f32.mrb[24].mxu0 }
 0x221   :  { %v1099_v43 = vmul.f32 %v4911_v41, %v4911_v41  ;;  %v1150_v45 = vadd.f32 %v1149_v30, %v4911_v41  ;;  %v4916_v46 = vpop.f32.mrb[25].mxu0 }
 0x222   :  { %v1100_v48 = vmul.f32 %v4916_v46, %v4916_v46  ;;  %v1187_v49 = vadd.f32 %v1186_v36, %v4916_v46  ;;  %v4921_v51 = vpop.f32.mrb[26].mxu0  ;;  %v4347_v36 = vld [vmem:[#allocation7 + $0x18] sm:$0xff]  }
 0x223   :  { %v1224_v52 = vadd.f32 %v1223_v37, %v1099_v43  ;;  %v1101_v53 = vmul.f32 %v4921_v51, %v4921_v51  ;;  %v1151_v55 = vadd.f32 %v1150_v45, %v4921_v51  ;;  %v4926_v56 = vpop.f32.mrb[27].mxu0  ;;  %4027 = vmatpush3.bf16.msra.mxu1 %v4347_v36  ;;  %v4349_v43 = vld [vmem:[#allocation7 + $0x20] sm:$0xff]   ;;  %v4354_v36 = vld [vmem:[#allocation7 + $0x78] sm:$0xff]  }
 0x224   :  { %v1261_v58 = vadd.f32 %v1260_v39, %v1100_v48  ;;  %v1102_v59 = vmul.f32 %v4926_v56, %v4926_v56  ;;  %v1188_v61 = vadd.f32 %v1187_v49, %v4926_v56  ;;  %4028 = vmatprep.subr.bf16.mxu1 %v4348_v40 }
 0x225   :  { %v1225_v3 = vadd.f32 %v1224_v52, %v1101_v53 }
 0x226   :  { %v1262_v4 = vadd.f32 %v1261_v58, %v1102_v59 }
 0x227   :  { %4029 = vmatpush3.bf16.msra.mxu1 %v4349_v43 }
 0x228   :  { %v4931_v8 = vpop.f32.mrb[28].mxu0  ;;  %4030 = vmatprep.subr.bf16.mxu1 %v4350_v62 }
 0x229   :  { %v1103_v11 = vmul.f32 %v4931_v8, %v4931_v8  ;;  %v1152_v13 = vadd.f32 %v1151_v55, %v4931_v8  ;;  %v4936_v14 = vpop.f32.mrb[29].mxu0 }
 0x22a   :  { %v1104_v16 = vmul.f32 %v4936_v14, %v4936_v14  ;;  %v1189_v17 = vadd.f32 %v1188_v61, %v4936_v14  ;;  %v4941_v20 = vpop.f32.mrb[30].mxu0 }
 0x22b   :  { %v1226_v21 = vadd.f32 %v1225_v3, %v1103_v11  ;;  %v1105_v24 = vmul.f32 %v4941_v20, %v4941_v20  ;;  %v1153_v25 = vadd.f32 %v1152_v13, %v4941_v20  ;;  %v4946_v27 = vpop.f32.mrb[31].mxu0  ;;  %4031 = vmatpush3.bf16.msra.mxu1 %v4351_v9 }
 0x22c   :  { %v1263_v30 = vadd.f32 %v1262_v4, %v1104_v16  ;;  %v1106_v33 = vmul.f32 %v4946_v27, %v4946_v27  ;;  %v1190_v35 = vadd.f32 %v1189_v17, %v4946_v27  ;;  %v4352_v16 = vld [vmem:[#allocation7 + $0x70] sm:$0xff]  }
 0x22d   :  { %v1227_v37 = vadd.f32 %v1226_v21, %v1105_v24  ;;  %v4353_v21 = vld [vmem:[#allocation7 + $0x30] sm:$0xff]   ;;  %4032 = vmatprep.subr.bf16.mxu1 %v4352_v16 }
 0x22e   :  { %v1264_v39 = vadd.f32 %v1263_v30, %v1106_v33 }
 0x22f   :  { %4033 = vmatpush3.bf16.msra.mxu1 %v4353_v21 }
 0x230   :  { %v4951_v42 = vpop.f32.mrb[32].mxu0  ;;  %4034 = vmatprep.subr.bf16.mxu1 %v4354_v36 }
 0x231   :  { %v1107_v45 = vmul.f32 %v4951_v42, %v4951_v42  ;;  %v1154_v48 = vadd.f32 %v1153_v25, %v4951_v42  ;;  %v4956_v49 = vpop.f32.mrb[33].mxu0 }
 0x232   :  { %v1108_v52 = vmul.f32 %v4956_v49, %v4956_v49  ;;  %v1191_v53 = vadd.f32 %v1190_v35, %v4956_v49  ;;  %v4961_v55 = vpop.f32.mrb[34].mxu0 }
 0x233   :  { %v1228_v57 = vadd.f32 %v1227_v37, %v1107_v45  ;;  %v1109_v58 = vmul.f32 %v4961_v55, %v4961_v55  ;;  %v1155_v59 = vadd.f32 %v1154_v48, %v4961_v55  ;;  %v4966_v61 = vpop.f32.mrb[35].mxu0  ;;  %v4355_v37 = vld [vmem:[#allocation7 + $0x38] sm:$0xff]  }
 0x234   :  { %v1265_v3 = vadd.f32 %v1264_v39, %v1108_v52  ;;  %v1110_v4 = vmul.f32 %v4966_v61, %v4966_v61  ;;  %v1192_v7 = vadd.f32 %v1191_v53, %v4966_v61  ;;  %4035 = vmatpush3.bf16.msra.mxu1 %v4355_v37 }
 0x235   :  { %v1229_v11 = vadd.f32 %v1228_v57, %v1109_v58 }
 0x236   :  { %v1266_v13 = vadd.f32 %v1265_v3, %v1110_v4 }
 0x238   :  { %v4971_v17 = vpop.f32.mrb[36].mxu0 }
 0x239   :  { %7230 = vst [vmem:[#allocation16_spill] sm:$0xff] %v4971_v17  ;;  %v1111_v24 = vmul.f32 %v4971_v17, %v4971_v17  ;;  %v1156_v25 = vadd.f32 %v1155_v59, %v4971_v17  ;;  %v4976_v29 = vpop.f32.mrb[37].mxu0 }
 0x23a   :  { %7231 = vst [vmem:[#allocation17_spill] sm:$0xff] %v4976_v29  ;;  %v1112_v30 = vmul.f32 %v4976_v29, %v4976_v29  ;;  %v1193_v33 = vadd.f32 %v1192_v7, %v4976_v29  ;;  %v4981_v35 = vpop.f32.mrb[38].mxu0 }
 0x23b   :  { %7232 = vst [vmem:[#allocation18_spill] sm:$0xff] %v4981_v35  ;;  %v1230_v39 = vadd.f32 %v1229_v11, %v1111_v24  ;;  %v1113_v40 = vmul.f32 %v4981_v35, %v4981_v35  ;;  %v1157_v43 = vadd.f32 %v1156_v25, %v4981_v35  ;;  %v4986_v45 = vpop.f32.mrb[39].mxu0 }
 0x23c   :  { %7233 = vst [vmem:[#allocation19_spill] sm:$0xff] %v4986_v45  ;;  %v1267_v48 = vadd.f32 %v1266_v13, %v1112_v30  ;;  %v1114_v52 = vmul.f32 %v4986_v45, %v4986_v45  ;;  %v1194_v53 = vadd.f32 %v1193_v33, %v4986_v45 }
 0x23d   :  { %v1231_v57 = vadd.f32 %v1230_v39, %v1113_v40 }
 0x23e   :  { %v1268_v58 = vadd.f32 %v1267_v48, %v1114_v52 }
 0x240   :  { %v4991_v59 = vpop.f32.mrb[40].mxu0 }
 0x241   :  { %7234 = vst [vmem:[#allocation20_spill] sm:$0xff] %v4991_v59  ;;  %v1115_v62 = vmul.f32 %v4991_v59, %v4991_v59  ;;  %v1158_v3 = vadd.f32 %v1157_v43, %v4991_v59  ;;  %v4996_v4 = vpop.f32.mrb[41].mxu0 }
 0x242   :  { %7235 = vst [vmem:[#allocation21_spill] sm:$0xff] %v4996_v4  ;;  %v1116_v7 = vmul.f32 %v4996_v4, %v4996_v4  ;;  %v1195_v9 = vadd.f32 %v1194_v53, %v4996_v4  ;;  %v5001_v11 = vpop.f32.mrb[42].mxu0 }
 0x243   :  { %7236 = vst [vmem:[#allocation22_spill] sm:$0xff] %v5001_v11  ;;  %v1232_v13 = vadd.f32 %v1231_v57, %v1115_v62  ;;  %v1117_v16 = vmul.f32 %v5001_v11, %v5001_v11  ;;  %v1159_v21 = vadd.f32 %v1158_v3, %v5001_v11  ;;  %v5006_v24 = vpop.f32.mrb[43].mxu0 }
 0x244   :  { %7237 = vst [vmem:[#allocation23_spill] sm:$0xff] %v5006_v24  ;;  %v1269_v25 = vadd.f32 %v1268_v58, %v1116_v7  ;;  %v1118_v30 = vmul.f32 %v5006_v24, %v5006_v24  ;;  %v1196_v33 = vadd.f32 %v1195_v9, %v5006_v24 }
 0x245   :  { %v1233_v36 = vadd.f32 %v1232_v13, %v1117_v16 }
 0x246   :  { %v1270_v37 = vadd.f32 %v1269_v25, %v1118_v30 }
 0x248   :  { %v5011_v39 = vpop.f32.mrb[44].mxu0 }
 0x249   :  { %7238 = vst [vmem:[#allocation24_spill] sm:$0xff] %v5011_v39  ;;  %v1119_v40 = vmul.f32 %v5011_v39, %v5011_v39  ;;  %v1160_v43 = vadd.f32 %v1159_v21, %v5011_v39  ;;  %v5016_v48 = vpop.f32.mrb[45].mxu0 }
 0x24a   :  { %7239 = vst [vmem:[#allocation25_spill] sm:$0xff] %v5016_v48  ;;  %v1120_v52 = vmul.f32 %v5016_v48, %v5016_v48  ;;  %v1197_v53 = vadd.f32 %v1196_v33, %v5016_v48  ;;  %v5021_v57 = vpop.f32.mrb[46].mxu0 }
 0x24b   :  { %7240 = vst [vmem:[#allocation26_spill] sm:$0xff] %v5021_v57  ;;  %v1234_v58 = vadd.f32 %v1233_v36, %v1119_v40  ;;  %v1121_v62 = vmul.f32 %v5021_v57, %v5021_v57  ;;  %v1161_v3 = vadd.f32 %v1160_v43, %v5021_v57  ;;  %v5026_v7 = vpop.f32.mrb[47].mxu0 }
 0x24c   :  { %7241 = vst [vmem:[#allocation27_spill] sm:$0xff] %v5026_v7  ;;  %v1271_v9 = vadd.f32 %v1270_v37, %v1120_v52  ;;  %v1122_v13 = vmul.f32 %v5026_v7, %v5026_v7  ;;  %v1198_v16 = vadd.f32 %v1197_v53, %v5026_v7 }
 0x24d   :  { %v1235_v21 = vadd.f32 %v1234_v58, %v1121_v62 }
 0x24e   :  { %v1272_v25 = vadd.f32 %v1271_v9, %v1122_v13 }
 0x250   :  { %v5031_v30 = vpop.f32.mrb[48].mxu0 }
 0x251   :  { %7242 = vst [vmem:[#allocation28_spill] sm:$0xff] %v5031_v30  ;;  %v1123_v33 = vmul.f32 %v5031_v30, %v5031_v30  ;;  %v1162_v36 = vadd.f32 %v1161_v3, %v5031_v30  ;;  %v5036_v40 = vpop.f32.mrb[49].mxu0 }
 0x252   :  { %7243 = vst [vmem:[#allocation29_spill] sm:$0xff] %v5036_v40  ;;  %v1124_v43 = vmul.f32 %v5036_v40, %v5036_v40  ;;  %v1199_v37 = vadd.f32 %v1198_v16, %v5036_v40  ;;  %v5041_v52 = vpop.f32.mrb[50].mxu0 }
 0x253   :  { %7244 = vst [vmem:[#allocation30_spill] sm:$0xff] %v5041_v52  ;;  %v1236_v57 = vadd.f32 %v1235_v21, %v1123_v33  ;;  %v1125_v53 = vmul.f32 %v5041_v52, %v5041_v52  ;;  %v1163_v58 = vadd.f32 %v1162_v36, %v5041_v52  ;;  %v5046_v62 = vpop.f32.mrb[51].mxu0 }
 0x254   :  { %7245 = vst [vmem:[#allocation31_spill] sm:$0xff] %v5046_v62  ;;  %v1273_v9 = vadd.f32 %v1272_v25, %v1124_v43  ;;  %v1126_v3 = vmul.f32 %v5046_v62, %v5046_v62  ;;  %v1200_v13 = vadd.f32 %v1199_v37, %v5046_v62 }
 0x255   :  { %v1237_v30 = vadd.f32 %v1236_v57, %v1125_v53 }
 0x256   :  { %v1274_v7 = vadd.f32 %v1273_v9, %v1126_v3 }
 0x258   :  { %v5051_v48 = vpop.f32.mrb[52].mxu0 }
 0x259   :  { %7246 = vst [vmem:[#allocation32_spill] sm:$0xff] %v5051_v48  ;;  %v1127_v16 = vmul.f32 %v5051_v48, %v5051_v48  ;;  %v1164_v21 = vadd.f32 %v1163_v58, %v5051_v48  ;;  %v5056_v33 = vpop.f32.mrb[53].mxu0 }
 0x25a   :  { %7247 = vst [vmem:[#allocation33_spill] sm:$0xff] %v5056_v33  ;;  %v1128_v36 = vmul.f32 %v5056_v33, %v5056_v33  ;;  %v1201_v25 = vadd.f32 %v1200_v13, %v5056_v33  ;;  %v5061_v43 = vpop.f32.mrb[54].mxu0 }
 0x25b   :  { %7248 = vst [vmem:[#allocation34_spill] sm:$0xff] %v5061_v43  ;;  %v1238_v52 = vadd.f32 %v1237_v30, %v1127_v16  ;;  %v1129_v57 = vmul.f32 %v5061_v43, %v5061_v43  ;;  %v1165_v37 = vadd.f32 %v1164_v21, %v5061_v43  ;;  %v5066_v53 = vpop.f32.mrb[55].mxu0 }
 0x25c   :  { %7249 = vst [vmem:[#allocation35_spill] sm:$0xff] %v5066_v53  ;;  %v1275_v9 = vadd.f32 %v1274_v7, %v1128_v36  ;;  %v1130_v58 = vmul.f32 %v5066_v53, %v5066_v53  ;;  %v1202_v3 = vadd.f32 %v1201_v25, %v5066_v53 }
 0x25d   :  { %v1239_v48 = vadd.f32 %v1238_v52, %v1129_v57 }
 0x25e   :  { %v1276_v62 = vadd.f32 %v1275_v9, %v1130_v58 }
 0x260   :  { %v5071_v40 = vpop.f32.mrb[56].mxu0 }
 0x261   :  { %7250 = vst [vmem:[#allocation36_spill] sm:$0xff] %v5071_v40  ;;  %v1131_v30 = vmul.f32 %v5071_v40, %v5071_v40  ;;  %v1166_v13 = vadd.f32 %v1165_v37, %v5071_v40  ;;  %v5076_v16 = vpop.f32.mrb[57].mxu0 }
 0x262   :  { %7251 = vst [vmem:[#allocation37_spill] sm:$0xff] %v5076_v16  ;;  %v1132_v21 = vmul.f32 %v5076_v16, %v5076_v16  ;;  %v1203_v7 = vadd.f32 %v1202_v3, %v5076_v16  ;;  %v5081_v36 = vpop.f32.mrb[58].mxu0 }
 0x263   :  { %7252 = vst [vmem:[#allocation38_spill] sm:$0xff] %v5081_v36  ;;  %v1240_v43 = vadd.f32 %v1239_v48, %v1131_v30  ;;  %v1133_v52 = vmul.f32 %v5081_v36, %v5081_v36  ;;  %v1167_v25 = vadd.f32 %v1166_v13, %v5081_v36  ;;  %v5086_v57 = vpop.f32.mrb[59].mxu0 }
 0x264   :  { %7253 = vst [vmem:[#allocation39_spill] sm:$0xff] %v5086_v57  ;;  %v1277_v9 = vadd.f32 %v1276_v62, %v1132_v21  ;;  %v1134_v37 = vmul.f32 %v5086_v57, %v5086_v57  ;;  %v1204_v58 = vadd.f32 %v1203_v7, %v5086_v57 }
 0x265   :  { %v1241_v40 = vadd.f32 %v1240_v43, %v1133_v52 }
 0x266   :  { %v1278_v53 = vadd.f32 %v1277_v9, %v1134_v37 }
 0x268   :  { %v5091_v33 = vpop.f32.mrb[60].mxu0 }
 0x269   :  { %7254 = vst [vmem:[#allocation40_spill] sm:$0xff] %v5091_v33  ;;  %v1135_v48 = vmul.f32 %v5091_v33, %v5091_v33  ;;  %v1168_v3 = vadd.f32 %v1167_v25, %v5091_v33  ;;  %v5096_v30 = vpop.f32.mrb[61].mxu0 }
 0x26a   :  { %7255 = vst [vmem:[#allocation41_spill] sm:$0xff] %v5096_v30  ;;  %v1136_v13 = vmul.f32 %v5096_v30, %v5096_v30  ;;  %v1205_v62 = vadd.f32 %v1204_v58, %v5096_v30  ;;  %v5101_v21 = vpop.f32.mrb[62].mxu0 }
 0x26b   :  { %7256 = vst [vmem:[#allocation42_spill] sm:$0xff] %v5101_v21  ;;  %v1242_v36 = vadd.f32 %v1241_v40, %v1135_v48  ;;  %v1137_v43 = vmul.f32 %v5101_v21, %v5101_v21  ;;  %v1169_v7 = vadd.f32 %v1168_v3, %v5101_v21  ;;  %v5106_v52 = vpop.f32.mrb[63].mxu0 }
 0x26c   :  { %v1279_v9 = vadd.f32 %v1278_v53, %v1136_v13  ;;  %v1138_v25 = vmul.f32 %v5106_v52, %v5106_v52  ;;  %v1206_v37 = vadd.f32 %v1205_v62, %v5106_v52 }
 0x26d   :  { %v1170_v33 = vrot.slane %v1169_v7, 4  ;;  %v1243_v57 = vadd.f32 %v1242_v36, %v1137_v43 }
 0x26e   :  { %v1207_v16 = vrot.slane %v1206_v37, 4  ;;  %v1280_v58 = vadd.f32 %v1279_v9, %v1138_v25 }
 0x26f   :  { %v1171_v30 = vadd.f32 %v1170_v33, %v1169_v7  ;;  %v1244_v39 = vrot.slane %v1243_v57, 4 }
 0x270   :  { %v1208_v40 = vadd.f32 %v1207_v16, %v1206_v37  ;;  %v1281_v48 = vrot.slane %v1280_v58, 4 }
 0x271   :  { %v1172_v24 = vrot.slane %v1171_v30, 2  ;;  %v1245_v11 = vadd.f32 %v1244_v39, %v1243_v57 }
 0x272   :  { %v1209_v4 = vrot.slane %v1208_v40, 2  ;;  %v1282_v3 = vadd.f32 %v1281_v48, %v1280_v58 }
 0x273   :  { %v1173_v21 = vadd.f32 %v1172_v24, %v1171_v30  ;;  %v1246_v59 = vrot.slane %v1245_v11, 2 }
 0x274   :  { %v1210_v53 = vadd.f32 %v1209_v4, %v1208_v40  ;;  %v1283_v13 = vrot.slane %v1282_v3, 2 }
 0x275   :  { %v1174_v45 = vrot.slane %v1173_v21, 1  ;;  %v1247_v35 = vadd.f32 %v1246_v59, %v1245_v11 }
 0x276   :  { %v1211_v29 = vrot.slane %v1210_v53, 1  ;;  %v1284_v62 = vadd.f32 %v1283_v13, %v1282_v3 }
 0x277   :  { %v1175_v17 = vadd.f32 %v1174_v45, %v1173_v21  ;;  %v1248_v36 = vrot.slane %v1247_v35, 1  ;;  %v4660_v45 = vmov 1966171168  }
 0x278   :  { %v1212_v43 = vadd.f32 %v1211_v29, %v1210_v53  ;;  %v1285_v9 = vrot.slane %v1284_v62, 1  ;;  %v1305_v11 = vunpack.c.l.s4 %v4660_v45  ;;  %v1307_v29 = vlaneseq }
 0x279   :  { %v1249_v33 = vadd.f32 %v1248_v36, %v1247_v35  ;;  %v1287_v7 = vmul.f32 0.00390625, %v1175_v17  ;;  %v1073_v36 = vld [vmem:[%s7144_s2] sm:$0x3] }
 0x27a   :  { %v1286_v16 = vadd.f32 %v1285_v9, %v1284_v62  ;;  %v1288_v25 = vmul.f32 0.00390625, %v1212_v43  ;;  %v1306_v21 = vunpack.c.0.s8 %v1305_v11  ;;  %v5111_v35 = vshrl.u32 %v1307_v29, 7 }
 0x27b   :  { %v1289_v37 = vmul.f32 0.00390625, %v1249_v33  ;;  %v1291_v39 = vmul.f32 %v1287_v7, %v1287_v7 }
 0x27c   :  { %v1290_v57 = vmul.f32 0.00390625, %v1286_v16  ;;  %v1292_v58 = vmul.f32 %v1288_v25, %v1288_v25  ;;  %7257 = vst [vmem:[#allocation43_spill] sm:$0xff] %v5111_v35  ;;  %v5114_v3 = vsub.s32 %v1306_v21, %v5111_v35  ;;  %v5122_v9 = vsub.s32 0, %v5111_v35  ;;  %v7271_v21 = vld [vmem:[#allocation16_spill] sm:$0xff] }
 0x27d   :  { %v1293_v24 = vsub.f32 %v1289_v37, %v1291_v39  ;;  %v5125_v33 = vsub.s32 1, %v5111_v35  ;;  %v7284_v35 = vld [vmem:[#allocation28_spill] sm:$0xff] }
 0x27e   :  { %v1294_v30 = vsub.f32 %v1290_v57, %v1292_v58  ;;  %7258 = vst [vmem:[#allocation44_spill] sm:$0xff] %v5114_v3  ;;  %7259 = vst [vmem:[#allocation45_spill] sm:$0xff] %v5122_v9 }
 0x27f   :  { %v1295_v4 = vmax.f32 %v1293_v24, 0.0  ;;  %7260 = vst [vmem:[#allocation46_spill] sm:$0xff] %v5125_v33 }
 0x280   :  { %v1296_v40 = vmax.f32 %v1294_v30, 0.0 }
 0x281   :  { %v1297_v48 = vadd.f32 1e-05, %v1295_v4 }
 0x282   :  { %v1298_v59 = vadd.f32 1e-05, %v1296_v40 }
 0x283   :  { %4476 = vrsqrt.f32 %v1297_v48 }
 0x284   :  { %4478 = vrsqrt.f32 %v1298_v59 }
 0x28d   :  { %v4477_v17 = vpop.eup %4476 }
 0x28e   :  { %v4479_v53 = vpop.eup %4478 }
 0x28f   :  { %v1303_v13 = vcombine.low %v4477_v17, %v4479_v53 }
 0x291   :  { %v1310_v62 = vrot.slane %v1303_v13, %v5114_v3  ;;  %v7273_v13 = vld [vmem:[#allocation18_spill] sm:$0xff] }
 0x293   :  { %v1317_v43 = vrot.slane %v1310_v62, %v5114_v3 }
 0x295   :  { %v1319_v16 = vmul.f32 %v1317_v43, %v1073_v36  ;;  %v7275_v43 = vld [vmem:[#allocation19_spill] sm:$0xff] }
 0x297   :  { %v5128_v37 = vrot.slane %v1319_v16, %v5122_v9  ;;  %v5131_v39 = vrot.slane %v1319_v16, %v5125_v33  ;;  %v7276_v16 = vld [vmem:[#allocation20_spill] sm:$0xff] }
 0x299   :  { %v1331_v57 = vmul.f32 %v5128_v37, %v1287_v7  ;;  %v1332_v58 = vmul.f32 %v5131_v39, %v1288_v25  ;;  %v1415_v24 = vmul.f32 %v5131_v39, %v5106_v52  ;;  %v5139_v30 = vmul.f32 %v5128_v37, %v4791_v0 }
 0x29a   :  { %v5143_v4 = vmul.f32 %v5131_v39, %v4793_v1  ;;  %v5147_v40 = vmul.f32 %v5128_v37, %v4795_v2  ;;  %v5151_v7 = vmul.f32 %v5131_v39, %v4803_v6  ;;  %v5155_v25 = vmul.f32 %v5128_v37, %v4811_v12 }
 0x29b   :  { %v1335_v52 = vcombine.low %v1331_v57, %v1332_v58  ;;  %v5159_v0 = vmul.f32 %v5131_v39, %v4816_v15  ;;  %v5163_v1 = vmul.f32 %v5128_v37, %v4821_v18  ;;  %v5167_v2 = vmul.f32 %v5131_v39, %v4826_v22  ;;  %v7277_v57 = vld [vmem:[#allocation21_spill] sm:$0xff]  ;;  %v7278_v58 = vld [vmem:[#allocation22_spill] sm:$0xff] }
 0x29c   :  { %7261 = vst [vmem:[#allocation47_spill] sm:$0xff] %v5143_v4  ;;  %7262 = vst [vmem:[#allocation48_spill] sm:$0xff] %v5151_v7  ;;  %v5171_v6 = vmul.f32 %v5128_v37, %v4831_v28  ;;  %v5175_v12 = vmul.f32 %v5131_v39, %v4836_v31  ;;  %v5179_v15 = vmul.f32 %v5128_v37, %v4841_v34  ;;  %v1074_v34 = vld [vmem:[%s7145_s3] sm:$0x3]  ;;  %v7289_v7 = vld [vmem:[#allocation33_spill] sm:$0xff] }
 0x29d   :  { %v5183_v18 = vmul.f32 %v5131_v39, %v4846_v38  ;;  %v1342_v48 = vrot.slane %v1335_v52, %v5114_v3  ;;  %v5188_v22 = vmul.f32 %v5128_v37, %v4851_v44  ;;  %v5192_v28 = vmul.f32 %v5131_v39, %v4856_v47  ;;  %v7290_v4 = vld [vmem:[#allocation34_spill] sm:$0xff] }
 0x29e   :  { %v5196_v31 = vmul.f32 %v5128_v37, %v4861_v50  ;;  %v5203_v38 = vmul.f32 %v5131_v39, %v4866_v54  ;;  %v5207_v44 = vmul.f32 %v5128_v37, %v4871_v60  ;;  %v5211_v47 = vmul.f32 %v5131_v39, %v4876_v63 }
 0x29f   :  { %v5215_v50 = vmul.f32 %v5128_v37, %v4881_v5  ;;  %v1349_v59 = vrot.slane %v1342_v48, %v5114_v3  ;;  %v5220_v45 = vmul.f32 %v5131_v39, %v4886_v10  ;;  %v5224_v54 = vmul.f32 %v5128_v37, %v4891_v19  ;;  %v7279_v48 = vld [vmem:[#allocation23_spill] sm:$0xff]  ;;  %v7286_v3 = vld [vmem:[#allocation30_spill] sm:$0xff] }
 0x2a0   :  { %v5228_v60 = vmul.f32 %v5131_v39, %v4896_v23  ;;  %v5232_v63 = vmul.f32 %v5128_v37, %v4901_v26  ;;  %v5236_v5 = vmul.f32 %v5131_v39, %v4906_v32  ;;  %v5240_v10 = vmul.f32 %v5128_v37, %v4911_v41 }
 0x2a1   :  { %v5244_v19 = vmul.f32 %v5131_v39, %v4916_v46  ;;  %v1351_v11 = vsub.f32 %v1074_v34, %v1349_v59  ;;  %v5248_v23 = vmul.f32 %v5128_v37, %v4921_v51  ;;  %v5252_v26 = vmul.f32 %v5131_v39, %v4926_v56  ;;  %v7280_v59 = vld [vmem:[#allocation24_spill] sm:$0xff] }
 0x2a2   :  { %v5256_v32 = vmul.f32 %v5128_v37, %v4931_v8  ;;  %v5260_v41 = vmul.f32 %v5131_v39, %v4936_v14  ;;  %v5264_v46 = vmul.f32 %v5128_v37, %v4941_v20  ;;  %v5268_v51 = vmul.f32 %v5131_v39, %v4946_v27 }
 0x2a3   :  { %7263 = vst [vmem:[#allocation49_spill] sm:$0xff] %v5244_v19  ;;  %7264 = vst [vmem:[#allocation50_spill] sm:$0xff] %v5248_v23  ;;  %v5272_v56 = vmul.f32 %v5128_v37, %v4951_v42  ;;  %v5275_v29 = vrot.slane %v1351_v11, %v5122_v9  ;;  %v5278_v8 = vrot.slane %v1351_v11, %v5125_v33  ;;  %v7272_v42 = vld [vmem:[#allocation17_spill] sm:$0xff]  ;;  %v7287_v9 = vld [vmem:[#allocation31_spill] sm:$0xff] }
 0x2a4   :  { %7265 = vst [vmem:[#allocation51_spill] sm:$0xff] %v5252_v26  ;;  %7266 = vst [vmem:[#allocation52_spill] sm:$0xff] %v5256_v32  ;;  %v1385_v14 = vmul.f32 %v5131_v39, %v4956_v49  ;;  %v1386_v20 = vmul.f32 %v5128_v37, %v4961_v55  ;;  %v1387_v27 = vmul.f32 %v5131_v39, %v4966_v61  ;;  %v7285_v33 = vld [vmem:[#allocation29_spill] sm:$0xff]  ;;  %v7295_v32 = vld [vmem:[#allocation39_spill] sm:$0xff] }
 0x2a5   :  { %7267 = vst [vmem:[#allocation53_spill] sm:$0xff] %v5260_v41  ;;  %7268 = vst [vmem:[#allocation54_spill] sm:$0xff] %v5264_v46  ;;  %v1388_v17 = vmul.f32 %v5128_v37, %v7271_v21  ;;  %v1389_v53 = vmul.f32 %v5131_v39, %v7272_v42  ;;  %v1390_v62 = vmul.f32 %v5128_v37, %v7273_v13  ;;  %v7282_v42 = vld [vmem:[#allocation26_spill] sm:$0xff]  ;;  %v7293_v46 = vld [vmem:[#allocation37_spill] sm:$0xff] }
 0x2a6   :  { %7269 = vst [vmem:[#allocation55_spill] sm:$0xff] %v5268_v51  ;;  %7270 = vst [vmem:[#allocation56_spill] sm:$0xff] %v5272_v56  ;;  %v5293_v36 = vadd.f32 %v5278_v8, %v1415_v24  ;;  %v1391_v49 = vmul.f32 %v5131_v39, %v7275_v43  ;;  %v1392_v55 = vmul.f32 %v5128_v37, %v7276_v16  ;;  %v7281_v24 = vld [vmem:[#allocation25_spill] sm:$0xff]  ;;  %v7283_v43 = vld [vmem:[#allocation27_spill] sm:$0xff] }
 0x2a7   :  { %v1393_v61 = vmul.f32 %v5131_v39, %v7277_v57  ;;  %v1394_v52 = vmul.f32 %v5128_v37, %v7278_v58  ;;  %v1395_v34 = vmul.f32 %v5131_v39, %v7279_v48  ;;  %v1396_v11 = vmul.f32 %v5128_v37, %v7280_v59  ;;  %v7291_v56 = vld [vmem:[#allocation35_spill] sm:$0xff]  ;;  %v7292_v51 = vld [vmem:[#allocation36_spill] sm:$0xff]  ;;  %v7294_v41 = vld [vmem:[#allocation38_spill] sm:$0xff] }
 0x2a8   :  { %7274 = vst [vmem:[#allocation16_spill] sm:$0xff] %v5293_v36  ;;  %v1397_v21 = vmul.f32 %v5131_v39, %v7281_v24  ;;  %v1398_v13 = vmul.f32 %v5128_v37, %v7282_v42  ;;  %v1399_v16 = vmul.f32 %v5131_v39, %v7283_v43  ;;  %v1400_v57 = vmul.f32 %v5128_v37, %v7284_v35  ;;  %v7288_v36 = vld [vmem:[#allocation32_spill] sm:$0xff]  ;;  %v7297_v23 = vld [vmem:[#allocation41_spill] sm:$0xff]  ;;  %v7298_v19 = vld [vmem:[#allocation42_spill] sm:$0xff] }
 0x2a9   :  { %v1401_v58 = vmul.f32 %v5131_v39, %v7285_v33  ;;  %v1402_v48 = vmul.f32 %v5128_v37, %v7286_v3  ;;  %v1403_v59 = vmul.f32 %v5131_v39, %v7287_v9  ;;  %v1404_v24 = vmul.f32 %v5128_v37, %v7288_v36  ;;  %v7296_v26 = vld [vmem:[#allocation40_spill] sm:$0xff] }
 0x2aa   :  { %v1405_v42 = vmul.f32 %v5131_v39, %v7289_v7  ;;  %v1406_v43 = vmul.f32 %v5128_v37, %v7290_v4  ;;  %v1407_v35 = vmul.f32 %v5131_v39, %v7291_v56  ;;  %v1408_v33 = vmul.f32 %v5128_v37, %v7292_v51 }
 0x2ab   :  { %v1409_v3 = vmul.f32 %v5131_v39, %v7293_v46  ;;  %v1410_v9 = vmul.f32 %v5128_v37, %v7294_v41  ;;  %v1411_v36 = vmul.f32 %v5131_v39, %v7295_v32  ;;  %v1412_v7 = vmul.f32 %v5128_v37, %v7296_v26  ;;  %v7307_v41 = vld [vmem:[#allocation52_spill] sm:$0xff] }
 0x2ac   :  { %v1413_v4 = vmul.f32 %v5131_v39, %v7297_v23  ;;  %v1414_v56 = vmul.f32 %v5128_v37, %v7298_v19  ;;  %v5345_v51 = vadd.f32 %v5275_v29, %v5139_v30  ;;  %v5349_v46 = vadd.f32 %v5275_v29, %v5147_v40  ;;  %v7303_v19 = vld [vmem:[#allocation50_spill] sm:$0xff]  ;;  %v7305_v23 = vld [vmem:[#allocation51_spill] sm:$0xff] }
 0x2ad   :  { %v5353_v32 = vadd.f32 %v5275_v29, %v5155_v25  ;;  %v5357_v26 = vadd.f32 %v5278_v8, %v5159_v0  ;;  %v5361_v39 = vadd.f32 %v5275_v29, %v5163_v1  ;;  %v5365_v37 = vadd.f32 %v5278_v8, %v5167_v2 }
 0x2ae   :  { %v5369_v30 = vadd.f32 %v5275_v29, %v5171_v6  ;;  %v5373_v40 = vadd.f32 %v5278_v8, %v5175_v12  ;;  %v5377_v25 = vadd.f32 %v5275_v29, %v5179_v15  ;;  %v5381_v0 = vadd.f32 %v5278_v8, %v5183_v18 }
 0x2af   :  { %v5385_v1 = vadd.f32 %v5275_v29, %v5188_v22  ;;  %v5389_v2 = vadd.f32 %v5278_v8, %v5192_v28  ;;  %v5393_v6 = vadd.f32 %v5275_v29, %v5196_v31  ;;  %v5397_v12 = vadd.f32 %v5278_v8, %v5203_v38 }
 0x2b0   :  { %v5401_v15 = vadd.f32 %v5275_v29, %v5207_v44  ;;  %v5405_v18 = vadd.f32 %v5278_v8, %v5211_v47  ;;  %v5409_v22 = vadd.f32 %v5275_v29, %v5215_v50  ;;  %v5413_v28 = vadd.f32 %v5278_v8, %v5220_v45  ;;  %v7301_v45 = vld [vmem:[#allocation49_spill] sm:$0xff] }
 0x2b1   :  { %v5417_v31 = vadd.f32 %v5275_v29, %v5224_v54  ;;  %v5421_v38 = vadd.f32 %v5278_v8, %v5228_v60  ;;  %v5425_v44 = vadd.f32 %v5275_v29, %v5232_v63  ;;  %v5429_v47 = vadd.f32 %v5278_v8, %v5236_v5 }
 0x2b2   :  { %v5433_v50 = vadd.f32 %v5275_v29, %v5240_v10  ;;  %v5437_v54 = vadd.f32 %v5278_v8, %v7301_v45  ;;  %v5441_v60 = vadd.f32 %v5275_v29, %v7303_v19  ;;  %v5445_v63 = vadd.f32 %v5278_v8, %v7305_v23 }
 0x2b3   :  { %7299 = vst [vmem:[#allocation17_spill] sm:$0xff] %v5425_v44  ;;  %v5449_v5 = vadd.f32 %v5275_v29, %v7307_v41  ;;  %v7308_v44 = vld [vmem:[#allocation53_spill] sm:$0xff]  ;;  %v5471_v41 = vadd.f32 %v5275_v29, %v1386_v20  ;;  %v5492_v20 = vadd.f32 %v5278_v8, %v1393_v61  ;;  %v5513_v61 = vadd.f32 %v5275_v29, %v1400_v57 }
 0x2b4   :  { %7300 = vst [vmem:[#allocation18_spill] sm:$0xff] %v5433_v50  ;;  %7302 = vst [vmem:[#allocation19_spill] sm:$0xff] %v5437_v54  ;;  %v5453_v10 = vadd.f32 %v5278_v8, %v7308_v44  ;;  %v7309_v50 = vld [vmem:[#allocation54_spill] sm:$0xff]  ;;  %v7311_v54 = vld [vmem:[#allocation55_spill] sm:$0xff]  ;;  %v5474_v44 = vadd.f32 %v5278_v8, %v1387_v27  ;;  %v5495_v27 = vadd.f32 %v5275_v29, %v1394_v52 }
 0x2b5   :  { %7304 = vst [vmem:[#allocation20_spill] sm:$0xff] %v5441_v60  ;;  %7306 = vst [vmem:[#allocation21_spill] sm:$0xff] %v5445_v63  ;;  %v5457_v45 = vadd.f32 %v5275_v29, %v7309_v50  ;;  %v5461_v19 = vadd.f32 %v5278_v8, %v7311_v54  ;;  %v7312_v60 = vld [vmem:[#allocation56_spill] sm:$0xff]  ;;  %v5468_v63 = vadd.f32 %v5278_v8, %v1385_v14 }
 0x2b6   :  { %v5465_v23 = vadd.f32 %v5275_v29, %v7312_v60  ;;  %v5477_v50 = vadd.f32 %v5275_v29, %v1388_v17  ;;  %v5483_v54 = vadd.f32 %v5275_v29, %v1390_v62  ;;  %v5486_v60 = vadd.f32 %v5278_v8, %v1391_v49 }
 0x2b7   :  { %7310 = vst [vmem:[#allocation22_spill] sm:$0xff] %v5457_v45  ;;  %v5480_v45 = vadd.f32 %v5278_v8, %v1389_v53  ;;  %v5489_v14 = vadd.f32 %v5275_v29, %v1392_v55  ;;  %v5498_v17 = vadd.f32 %v5278_v8, %v1395_v34  ;;  %v5501_v53 = vadd.f32 %v5275_v29, %v1396_v11 }
 0x2b8   :  { %v5504_v62 = vadd.f32 %v5278_v8, %v1397_v21  ;;  %v5507_v49 = vadd.f32 %v5275_v29, %v1398_v13  ;;  %v5510_v55 = vadd.f32 %v5278_v8, %v1399_v16  ;;  %v5516_v52 = vadd.f32 %v5278_v8, %v1401_v58 }
 0x2b9   :  { %v5519_v34 = vadd.f32 %v5275_v29, %v1402_v48  ;;  %v5522_v11 = vadd.f32 %v5278_v8, %v1403_v59  ;;  %v5525_v21 = vadd.f32 %v5275_v29, %v1404_v24  ;;  %v5528_v13 = vadd.f32 %v5278_v8, %v1405_v42 }
 0x2ba   :  { %v5531_v16 = vadd.f32 %v5275_v29, %v1406_v43  ;;  %v5534_v57 = vadd.f32 %v5278_v8, %v1407_v35  ;;  %v5537_v58 = vadd.f32 %v5275_v29, %v1408_v33  ;;  %v5540_v48 = vadd.f32 %v5278_v8, %v1409_v3  ;;  %v7320_v33 = vld [vmem:[#allocation47_spill] sm:$0xff]  ;;  %v7321_v3 = vld [vmem:[#allocation48_spill] sm:$0xff] }
 0x2bb   :  { %v5543_v59 = vadd.f32 %v5275_v29, %v1410_v9  ;;  %v5546_v24 = vadd.f32 %v5278_v8, %v1411_v36  ;;  %v5549_v42 = vadd.f32 %v5275_v29, %v1412_v7  ;;  %v5552_v43 = vadd.f32 %v5278_v8, %v1413_v4 }
 0x2bc   :  { %7313 = vst [vmem:[#allocation23_spill] sm:$0xff] %v5537_v58  ;;  %7314 = vst [vmem:[#allocation24_spill] sm:$0xff] %v5540_v48  ;;  %v5555_v35 = vadd.f32 %v5275_v29, %v1414_v56  ;;  %v1428_v58 = vadd.f32 %v5278_v8, %v7320_v33  ;;  %v1430_v48 = vadd.f32 %v5278_v8, %v7321_v3  ;;  %v1491_v9 = vmax.f32 %v5345_v51, 0.0 }
 0x2bd   :  { %7315 = vst [vmem:[#allocation25_spill] sm:$0xff] %v5543_v59  ;;  %7316 = vst [vmem:[#allocation26_spill] sm:$0xff] %v5546_v24  ;;  %v1493_v36 = vmax.f32 %v5349_v46, 0.0  ;;  %v1496_v59 = vmax.f32 %v5357_v26, 0.0  ;;  %v1498_v7 = vmax.f32 %v5365_v37, 0.0  ;;  %v1497_v29 = vmax.f32 %v5361_v39, 0.0 }
 0x2be   :  { %7317 = vst [vmem:[#allocation27_spill] sm:$0xff] %v5549_v42  ;;  %7318 = vst [vmem:[#allocation28_spill] sm:$0xff] %v5552_v43  ;;  %v1492_v42 = vmax.f32 %v1428_v58, 0.0  ;;  %v1494_v4 = vmax.f32 %v1430_v48, 0.0  ;;  %v1495_v43 = vmax.f32 %v5353_v32, 0.0  ;;  %v1500_v33 = vmax.f32 %v5373_v40, 0.0 }
 0x2bf   :  { %7319 = vst [vmem:[#allocation29_spill] sm:$0xff] %v5555_v35  ;;  %v1555_v56 = vpack.c.bf16 %v1493_v36, %v1491_v9  ;;  %v1558_v35 = vpack.c.bf16 %v1498_v7, %v1496_v59  ;;  %v1502_v8 = vmax.f32 %v5381_v0, 0.0  ;;  %v1499_v46 = vmax.f32 %v5369_v30, 0.0  ;;  %v7323_v9 = vld [vmem:[#allocation19_spill] sm:$0xff] }
 0x2c0   :  { %v1556_v3 = vpack.c.bf16 %v1494_v4, %v1492_v42  ;;  %v1557_v51 = vpack.c.bf16 %v1497_v29, %v1495_v43  ;;  %v1501_v26 = vmax.f32 %v5377_v25, 0.0  ;;  %v1504_v37 = vmax.f32 %v5389_v2, 0.0  ;;  %v7326_v4 = vld [vmem:[#allocation20_spill] sm:$0xff] }
 0x2c1   :  { %v1560_v24 = vpack.c.bf16 %v1502_v8, %v1500_v33  ;;  %v1506_v58 = vmax.f32 %v5397_v12, 0.0  ;;  %v1503_v32 = vmax.f32 %v5385_v1, 0.0  ;;  %v1505_v40 = vmax.f32 %v5393_v6, 0.0 }
 0x2c2   :  { %1747 = vmatprep.mubr.bf16.mxu1 %v1556_v3  ;;  %v5574_v39 = vpack.c.bf16 %v1501_v26, %v1499_v46  ;;  %v1508_v0 = vmax.f32 %v5405_v18, 0.0  ;;  %v1510_v48 = vmax.f32 %v5413_v28, 0.0  ;;  %v1507_v25 = vmax.f32 %v5401_v15, 0.0  ;;  %v7322_v28 = vld [vmem:[#allocation17_spill] sm:$0xff]  ;;  %v7327_v46 = vld [vmem:[#allocation22_spill] sm:$0xff] }
 0x2c3   :  { %1748 = vmatmul.mubr.bf16.vlgmr.msra.gmra.mrb[0].mxu1 %v1555_v56  ;;  %v5579_v30 = vpack.c.bf16 %v1506_v58, %v1504_v37  ;;  %v1509_v2 = vmax.f32 %v5409_v22, 0.0  ;;  %v1512_v12 = vmax.f32 %v5421_v38, 0.0  ;;  %v5584_v1 = vpack.c.bf16 %v1505_v40, %v1503_v32  ;;  %v7324_v15 = vld [vmem:[#allocation21_spill] sm:$0xff]  ;;  %v7325_v38 = vld [vmem:[#allocation18_spill] sm:$0xff] }
 0x2c4   :  { %1755 = vmatprep.mubr.bf16.mxu1 %v1558_v35  ;;  %v5586_v59 = vpack.c.bf16 %v1510_v48, %v1508_v0  ;;  %v1514_v6 = vmax.f32 %v5429_v47, 0.0  ;;  %v1511_v18 = vmax.f32 %v5417_v31, 0.0  ;;  %v1513_v43 = vmax.f32 %v7322_v28, 0.0 }
 0x2c5   :  { %v5590_v42 = vpack.c.bf16 %v1509_v2, %v1507_v25  ;;  %v1516_v36 = vmax.f32 %v7323_v9, 0.0  ;;  %v1518_v7 = vmax.f32 %v7324_v15, 0.0  ;;  %v1515_v35 = vmax.f32 %v7325_v38, 0.0  ;;  %v7328_v15 = vld [vmem:[#allocation24_spill] sm:$0xff] }
 0x2c6   :  { %v5595_v22 = vpack.c.bf16 %v1514_v6, %v1512_v12  ;;  %v1517_v29 = vmax.f32 %v7326_v4, 0.0  ;;  %v1520_v56 = vmax.f32 %v5453_v10, 0.0  ;;  %v5600_v33 = vpack.c.bf16 %v1513_v43, %v1511_v18  ;;  %v7331_v4 = vld [vmem:[#allocation25_spill] sm:$0xff] }
 0x2c7   :  { %v5602_v47 = vpack.c.bf16 %v1518_v7, %v1516_v36  ;;  %v1522_v31 = vmax.f32 %v5461_v19, 0.0  ;;  %v1519_v8 = vmax.f32 %v5449_v5, 0.0  ;;  %v1521_v26 = vmax.f32 %v7327_v46, 0.0  ;;  %v7329_v7 = vld [vmem:[#allocation26_spill] sm:$0xff] }
 0x2c8   :  { %v1567_v3 = vpack.c.bf16 %v1517_v29, %v1515_v35  ;;  %v1524_v37 = vmax.f32 %v5468_v63, 0.0  ;;  %v1526_v58 = vmax.f32 %v5474_v44, 0.0  ;;  %v1523_v40 = vmax.f32 %v5465_v23, 0.0  ;;  %v7330_v35 = vld [vmem:[#allocation23_spill] sm:$0xff]  ;;  %v7332_v29 = vld [vmem:[#allocation28_spill] sm:$0xff] }
 0x2c9   :  { %v1570_v32 = vpack.c.bf16 %v1522_v31, %v1520_v56  ;;  %v1525_v10 = vmax.f32 %v5471_v41, 0.0  ;;  %v1528_v0 = vmax.f32 %v5480_v45, 0.0  ;;  %v1569_v48 = vpack.c.bf16 %v1521_v26, %v1519_v8  ;;  %v7333_v31 = vld [vmem:[#allocation16_spill] sm:$0xff]  ;;  %v7334_v8 = vld [vmem:[#allocation27_spill] sm:$0xff]  ;;  %v7335_v26 = vld [vmem:[#allocation29_spill] sm:$0xff] }
 0x2ca   :  { %v1572_v25 = vpack.c.bf16 %v1526_v58, %v1524_v37  ;;  %v1530_v19 = vmax.f32 %v5486_v60, 0.0  ;;  %v1527_v5 = vmax.f32 %v5477_v50, 0.0  ;;  %v1529_v12 = vmax.f32 %v5483_v54, 0.0 }
 0x2cb   :  { %1756 = vmatmul.mubr.bf16.gmra.mrb[4].mxu1 %v1557_v51  ;;  %v1571_v2 = vpack.c.bf16 %v1525_v10, %v1523_v40  ;;  %v1532_v63 = vmax.f32 %v5492_v20, 0.0  ;;  %v1534_v44 = vmax.f32 %v5498_v17, 0.0  ;;  %v1531_v41 = vmax.f32 %v5489_v14, 0.0 }
 0x2cc   :  { %1763 = vmatprep.mubr.bf16.mxu1 %v1560_v24  ;;  %v1574_v23 = vpack.c.bf16 %v1530_v19, %v1528_v0  ;;  %v1533_v45 = vmax.f32 %v5495_v27, 0.0  ;;  %v1536_v6 = vmax.f32 %v5504_v62, 0.0  ;;  %v1573_v18 = vpack.c.bf16 %v1529_v12, %v1527_v5 }
 0x2cd   :  { %v1576_v60 = vpack.c.bf16 %v1534_v44, %v1532_v63  ;;  %v1538_v50 = vmax.f32 %v5510_v55, 0.0  ;;  %v1535_v51 = vmax.f32 %v5501_v53, 0.0  ;;  %v1537_v54 = vmax.f32 %v5507_v49, 0.0 }
 0x2ce   :  { %v1575_v28 = vpack.c.bf16 %v1533_v45, %v1531_v41  ;;  %v1540_v20 = vmax.f32 %v5516_v52, 0.0  ;;  %v1542_v17 = vmax.f32 %v5522_v11, 0.0  ;;  %v1539_v14 = vmax.f32 %v5513_v61, 0.0 }
 0x2cf   :  { %v1578_v24 = vpack.c.bf16 %v1538_v50, %v1536_v6  ;;  %v1541_v27 = vmax.f32 %v5519_v34, 0.0  ;;  %v1544_v62 = vmax.f32 %v5528_v13, 0.0  ;;  %v1577_v43 = vpack.c.bf16 %v1537_v54, %v1535_v51 }
 0x2d0   :  { %v1580_v9 = vpack.c.bf16 %v1542_v17, %v1540_v20  ;;  %v1546_v55 = vmax.f32 %v5534_v57, 0.0  ;;  %v1543_v53 = vmax.f32 %v5525_v21, 0.0  ;;  %v1545_v49 = vmax.f32 %v5531_v16, 0.0 }
 0x2d1   :  { %v1579_v36 = vpack.c.bf16 %v1541_v27, %v1539_v14  ;;  %v1548_v52 = vmax.f32 %v7328_v15, 0.0  ;;  %v1550_v11 = vmax.f32 %v7329_v7, 0.0  ;;  %v1547_v61 = vmax.f32 %v7330_v35, 0.0 }
 0x2d2   :  { %v1582_v38 = vpack.c.bf16 %v1546_v55, %v1544_v62  ;;  %v1549_v34 = vmax.f32 %v7331_v4, 0.0  ;;  %v1552_v13 = vmax.f32 %v7332_v29, 0.0  ;;  %v1581_v56 = vpack.c.bf16 %v1545_v49, %v1543_v53 }
 0x2d3   :  { %1764 = vmatmul.mubr.bf16.gmra.mrb[8].mxu1 %v5574_v39  ;;  %v1584_v57 = vpack.c.bf16 %v1550_v11, %v1548_v52  ;;  %v1554_v21 = vmax.f32 %v7333_v31, 0.0  ;;  %v1551_v46 = vmax.f32 %v7334_v8, 0.0  ;;  %v1553_v37 = vmax.f32 %v7335_v26, 0.0  ;;  %v4356_v39 = vld [vmem:[#allocation8] ss:$8 sps:$4 sm:$0xff]  }
 0x2d4   :  { %1771 = vmatprep.mubr.bf16.mxu1 %v5579_v30  ;;  %v1583_v16 = vpack.c.bf16 %v1549_v34, %v1547_v61  ;;  %v4358_v30 = vld [vmem:[#allocation8 + $0x4] ss:$8 sps:$4 sm:$0xff]  }
 0x2d5   :  { %v1586_v58 = vpack.c.bf16 %v1554_v21, %v1552_v13  ;;  %v1585_v40 = vpack.c.bf16 %v1553_v37, %v1551_v46  ;;  %2214 = vmatprep.subr.bf16.mxu1 %v4358_v30 }
 0x2d6   :  { %2215 = vmatpush1.bf16.msra.mxu1 %v4356_v39 }
 0x2db   :  { %1772 = vmatmul.mubr.bf16.gmra.mrb[12].mxu1 %v5584_v1  ;;  %v4359_v1 = vld [vmem:[#allocation8 + $0x10] ss:$8 sps:$4 sm:$0xff]  }
 0x2dc   :  { %1779 = vmatprep.mubr.bf16.mxu1 %v5586_v59  ;;  %v4361_v59 = vld [vmem:[#allocation8 + $0x14] ss:$8 sps:$4 sm:$0xff]  }
 0x2dd   :  { %2216 = vmatprep.subr.bf16.mxu1 %v4361_v59  ;;  %v4373_v59 = vld [vmem:[#allocation8 + $0x54] ss:$8 sps:$4 sm:$0xff]  }
 0x2de   :  { %2217 = vmatpush1.bf16.msra.mxu1 %v4359_v1  ;;  %v4371_v1 = vld [vmem:[#allocation8 + $0x50] ss:$8 sps:$4 sm:$0xff]  }
 0x2e3   :  { %1780 = vmatmul.mubr.bf16.gmra.mrb[16].mxu1 %v5590_v42  ;;  %v4362_v42 = vld [vmem:[#allocation8 + $0x20] ss:$8 sps:$4 sm:$0xff]  }
 0x2e4   :  { %1787 = vmatprep.mubr.bf16.mxu1 %v5595_v22  ;;  %v4364_v22 = vld [vmem:[#allocation8 + $0x24] ss:$8 sps:$4 sm:$0xff]  }
 0x2e5   :  { %2218 = vmatprep.subr.bf16.mxu1 %v4364_v22 }
 0x2e6   :  { %2219 = vmatpush1.bf16.msra.mxu1 %v4362_v42 }
 0x2eb   :  { %1788 = vmatmul.mubr.bf16.gmra.mrb[20].mxu1 %v5600_v33  ;;  %v4365_v33 = vld [vmem:[#allocation8 + $0x30] ss:$8 sps:$4 sm:$0xff]  }
 0x2ec   :  { %1795 = vmatprep.mubr.bf16.mxu1 %v5602_v47  ;;  %v4367_v47 = vld [vmem:[#allocation8 + $0x34] ss:$8 sps:$4 sm:$0xff]  }
 0x2ed   :  { %2220 = vmatprep.subr.bf16.mxu1 %v4367_v47 }
 0x2ee   :  { %2221 = vmatpush1.bf16.msra.mxu1 %v4365_v33 }
 0x2f3   :  { %1796 = vmatmul.mubr.bf16.gmra.mrb[24].mxu1 %v1567_v3  ;;  %v4368_v3 = vld [vmem:[#allocation8 + $0x40] ss:$8 sps:$4 sm:$0xff]  }
 0x2f4   :  { %1803 = vmatprep.mubr.bf16.mxu1 %v1570_v32  ;;  %v4370_v32 = vld [vmem:[#allocation8 + $0x44] ss:$8 sps:$4 sm:$0xff]  }
 0x2f5   :  { %2222 = vmatprep.subr.bf16.mxu1 %v4370_v32  ;;  %v4661_v32 = vmov 0  }
 0x2f6   :  { %2223 = vmatpush1.bf16.msra.mxu1 %v4368_v3  ;;  %v4376_v3 = vld [vmem:[#allocation8 + $0x64] ss:$8 sps:$4 sm:$0xff]  }
 0x2f7   :  { %2224 = vmatprep.subr.bf16.mxu1 %v4373_v59 }
 0x2fa   :  { %2225 = vmatpush1.bf16.msra.mxu1 %v4371_v1 }
 0x2fb   :  { %1804 = vmatmul.mubr.bf16.gmra.mrb[28].mxu1 %v1569_v48  ;;  %2226 = vmatprep.subr.bf16.mxu1 %v4376_v3 }
 0x2fc   :  { %1811 = vmatprep.mubr.bf16.mxu1 %v1572_v25 }
 0x303   :  { %1812 = vmatmul.mubr.bf16.gmra.mrb[32].mxu1 %v1571_v2 }
 0x304   :  { %1819 = vmatprep.mubr.bf16.mxu1 %v1574_v23 }
 0x30b   :  { %1820 = vmatmul.mubr.bf16.gmra.mrb[36].mxu1 %v1573_v18 }
 0x30c   :  { %1827 = vmatprep.mubr.bf16.mxu1 %v1576_v60 }
 0x313   :  { %1828 = vmatmul.mubr.bf16.gmra.mrb[40].mxu1 %v1575_v28 }
 0x314   :  { %1835 = vmatprep.mubr.bf16.mxu1 %v1578_v24 }
 0x31b   :  { %1836 = vmatmul.mubr.bf16.gmra.mrb[44].mxu1 %v1577_v43 }
 0x31c   :  { %1843 = vmatprep.mubr.bf16.mxu1 %v1580_v9 }
 0x323   :  { %1844 = vmatmul.mubr.bf16.gmra.mrb[48].mxu1 %v1579_v36 }
 0x324   :  { %1851 = vmatprep.mubr.bf16.mxu1 %v1582_v38 }
 0x32b   :  { %1852 = vmatmul.mubr.bf16.gmra.mrb[52].mxu1 %v1581_v56 }
 0x32c   :  { %1859 = vmatprep.mubr.bf16.mxu1 %v1584_v57 }
 0x333   :  { %1860 = vmatmul.mubr.bf16.gmra.mrb[56].mxu1 %v1583_v16 }
 0x334   :  { %1867 = vmatprep.mubr.bf16.mxu1 %v1586_v58 }
 0x33b   :  { %1868 = vmatmul.mubr.bf16.gmra.mrb[60].mxu1 %v1585_v40 }
 0x33c   :  { %2246 = vmatprep.mubr.bf16.mxu1 %v4661_v32 }
 0x396   :  { %v4036_v10 = vpop.f32.mrb[0].mxu1 }
 0x397   :  { %v4037_v0 = vpop.f32.mrb[1].mxu1 }
 0x398   :  { %v5647_v48 = vadd.f32 %v4037_v0, %v4036_v10  ;;  %v4039_v25 = vpop.f32.mrb[2].mxu1 }
 0x399   :  { %v4040_v19 = vpop.f32.mrb[3].mxu1 }
 0x39a   :  { %v5649_v5 = vadd.f32 %v4040_v19, %v4039_v25  ;;  %v1878_v9 = vmul.f32 %v5647_v48, %v5647_v48 }
 0x39c   :  { %v1879_v27 = vmul.f32 %v5649_v5, %v5649_v5  ;;  %v1910_v55 = vadd.f32 %v5649_v5, %v5647_v48 }
 0x39e   :  { %v4042_v2 = vpop.f32.mrb[4].mxu1  ;;  %v1947_v52 = vadd.f32 %v1879_v27, %v1878_v9 }
 0x39f   :  { %v4043_v12 = vpop.f32.mrb[5].mxu1 }
 0x3a0   :  { %v5651_v63 = vadd.f32 %v4043_v12, %v4042_v2  ;;  %v4045_v44 = vpop.f32.mrb[6].mxu1  ;;  %v4374_v2 = vld [vmem:[#allocation8 + $0x60] ss:$8 sps:$4 sm:$0xff]   ;;  %v4379_v12 = vld [vmem:[#allocation8 + $0x74] ss:$8 sps:$4 sm:$0xff]  }
 0x3a1   :  { %v4046_v23 = vpop.f32.mrb[7].mxu1  ;;  %2227 = vmatpush1.bf16.msra.mxu1 %v4374_v2 }
 0x3a2   :  { %v5653_v41 = vadd.f32 %v4046_v23, %v4045_v44  ;;  %v1880_v53 = vmul.f32 %v5651_v63, %v5651_v63  ;;  %v1911_v7 = vadd.f32 %v5651_v63, %v1910_v55  ;;  %2228 = vmatprep.subr.bf16.mxu1 %v4379_v12 }
 0x3a4   :  { %v1948_v38 = vadd.f32 %v1947_v52, %v1880_v53  ;;  %v1881_v35 = vmul.f32 %v5653_v41, %v5653_v41  ;;  %v1912_v61 = vadd.f32 %v5653_v41, %v1911_v7 }
 0x3a6   :  { %v4048_v45 = vpop.f32.mrb[8].mxu1  ;;  %v1949_v13 = vadd.f32 %v1948_v38, %v1881_v35 }
 0x3a7   :  { %v4049_v6 = vpop.f32.mrb[9].mxu1 }
 0x3a8   :  { %v5655_v18 = vadd.f32 %v4049_v6, %v4048_v45  ;;  %v4051_v60 = vpop.f32.mrb[10].mxu1 }
 0x3a9   :  { %v4052_v50 = vpop.f32.mrb[11].mxu1 }
 0x3aa   :  { %v5657_v51 = vadd.f32 %v4052_v50, %v4051_v60  ;;  %v1882_v4 = vmul.f32 %v5655_v18, %v5655_v18  ;;  %v1913_v56 = vadd.f32 %v5655_v18, %v1912_v61  ;;  %v4377_v50 = vld [vmem:[#allocation8 + $0x70] ss:$8 sps:$4 sm:$0xff]  }
 0x3ab   :  { %2229 = vmatpush1.bf16.msra.mxu1 %v4377_v50 }
 0x3ac   :  { %v1950_v8 = vadd.f32 %v1949_v13, %v1882_v4  ;;  %v1883_v46 = vmul.f32 %v5657_v51, %v5657_v51  ;;  %v1914_v26 = vadd.f32 %v5657_v51, %v1913_v56 }
 0x3ae   :  { %v4054_v28 = vpop.f32.mrb[12].mxu1  ;;  %v1951_v58 = vadd.f32 %v1950_v8, %v1883_v46 }
 0x3af   :  { %v4055_v54 = vpop.f32.mrb[13].mxu1 }
 0x3b0   :  { %v5659_v20 = vadd.f32 %v4055_v54, %v4054_v28  ;;  %v4057_v17 = vpop.f32.mrb[14].mxu1 }
 0x3b1   :  { %v4058_v24 = vpop.f32.mrb[15].mxu1 }
 0x3b2   :  { %v5661_v14 = vadd.f32 %v4058_v24, %v4057_v17  ;;  %v1884_v37 = vmul.f32 %v5659_v20, %v5659_v20  ;;  %v1915_v40 = vadd.f32 %v5659_v20, %v1914_v26 }
 0x3b4   :  { %v1952_v42 = vadd.f32 %v1951_v58, %v1884_v37  ;;  %v1885_v22 = vmul.f32 %v5661_v14, %v5661_v14  ;;  %v1916_v0 = vadd.f32 %v5661_v14, %v1915_v40 }
 0x3b6   :  { %v4060_v62 = vpop.f32.mrb[16].mxu1  ;;  %v1953_v44 = vadd.f32 %v1952_v42, %v1885_v22 }
 0x3b7   :  { %v4061_v43 = vpop.f32.mrb[17].mxu1 }
 0x3b8   :  { %v5671_v36 = vadd.f32 %v4061_v43, %v4060_v62  ;;  %v4063_v49 = vpop.f32.mrb[18].mxu1 }
 0x3b9   :  { %v4064_v15 = vpop.f32.mrb[19].mxu1 }
 0x3ba   :  { %v5674_v11 = vadd.f32 %v4064_v15, %v4063_v49  ;;  %v1886_v25 = vmul.f32 %v5671_v36, %v5671_v36  ;;  %v1917_v23 = vadd.f32 %v5671_v36, %v1916_v0 }
 0x3bc   :  { %v1954_v45 = vadd.f32 %v1953_v44, %v1886_v25  ;;  %v1887_v6 = vmul.f32 %v5674_v11, %v5674_v11  ;;  %v1918_v54 = vadd.f32 %v5674_v11, %v1917_v23 }
 0x3be   :  { %v4066_v34 = vpop.f32.mrb[20].mxu1  ;;  %v1955_v43 = vadd.f32 %v1954_v45, %v1887_v6 }
 0x3bf   :  { %v4067_v29 = vpop.f32.mrb[21].mxu1 }
 0x3c0   :  { %v5682_v57 = vadd.f32 %v4067_v29, %v4066_v34  ;;  %v4069_v31 = vpop.f32.mrb[22].mxu1 }
 0x3c1   :  { %v4070_v21 = vpop.f32.mrb[23].mxu1 }
 0x3c2   :  { %v5686_v16 = vadd.f32 %v4070_v21, %v4069_v31  ;;  %v1888_v17 = vmul.f32 %v5682_v57, %v5682_v57  ;;  %v1919_v9 = vadd.f32 %v5682_v57, %v1918_v54 }
 0x3c4   :  { %v1956_v53 = vadd.f32 %v1955_v43, %v1888_v17  ;;  %v1889_v49 = vmul.f32 %v5686_v16, %v5686_v16  ;;  %v1920_v15 = vadd.f32 %v5686_v16, %v1919_v9 }
 0x3c6   :  { %v4072_v39 = vpop.f32.mrb[24].mxu1  ;;  %v1957_v35 = vadd.f32 %v1956_v53, %v1889_v49 }
 0x3c7   :  { %v4073_v30 = vpop.f32.mrb[25].mxu1 }
 0x3c8   :  { %v5694_v33 = vadd.f32 %v4073_v30, %v4072_v39  ;;  %v4075_v47 = vpop.f32.mrb[26].mxu1 }
 0x3c9   :  { %v4076_v10 = vpop.f32.mrb[27].mxu1 }
 0x3ca   :  { %v5700_v19 = vadd.f32 %v4076_v10, %v4075_v47  ;;  %v1890_v52 = vmul.f32 %v5694_v33, %v5694_v33  ;;  %v1921_v61 = vadd.f32 %v5694_v33, %v1920_v15 }
 0x3cc   :  { %v1958_v13 = vadd.f32 %v1957_v35, %v1890_v52  ;;  %v1891_v56 = vmul.f32 %v5700_v19, %v5700_v19  ;;  %v1922_v21 = vadd.f32 %v5700_v19, %v1921_v61 }
 0x3ce   :  { %v4078_v60 = vpop.f32.mrb[28].mxu1  ;;  %v1959_v46 = vadd.f32 %v1958_v13, %v1891_v56 }
 0x3cf   :  { %v4079_v28 = vpop.f32.mrb[29].mxu1 }
 0x3d0   :  { %v5708_v24 = vadd.f32 %v4079_v28, %v4078_v60  ;;  %v4081_v27 = vpop.f32.mrb[30].mxu1 }
 0x3d1   :  { %v4082_v62 = vpop.f32.mrb[31].mxu1 }
 0x3d2   :  { %v5711_v55 = vadd.f32 %v4082_v62, %v4081_v27  ;;  %v1892_v8 = vmul.f32 %v5708_v24, %v5708_v24  ;;  %v1923_v26 = vadd.f32 %v5708_v24, %v1922_v21 }
 0x3d4   :  { %v1960_v40 = vadd.f32 %v1959_v46, %v1892_v8  ;;  %v1893_v39 = vmul.f32 %v5711_v55, %v5711_v55  ;;  %v1924_v42 = vadd.f32 %v5711_v55, %v1923_v26 }
 0x3d6   :  { %v4084_v7 = vpop.f32.mrb[32].mxu1  ;;  %v1961_v3 = vadd.f32 %v1960_v40, %v1893_v39 }
 0x3d7   :  { %v4085_v38 = vpop.f32.mrb[33].mxu1 }
 0x3d8   :  { %v5719_v4 = vadd.f32 %v4085_v38, %v4084_v7  ;;  %v4087_v34 = vpop.f32.mrb[34].mxu1 }
 0x3d9   :  { %v4088_v29 = vpop.f32.mrb[35].mxu1 }
 0x3da   :  { %v5723_v31 = vadd.f32 %v4088_v29, %v4087_v34  ;;  %v1894_v22 = vmul.f32 %v5719_v4, %v5719_v4  ;;  %v1925_v10 = vadd.f32 %v5719_v4, %v1924_v42 }
 0x3dc   :  { %v1962_v0 = vadd.f32 %v1961_v3, %v1894_v22  ;;  %v1895_v25 = vmul.f32 %v5723_v31, %v5723_v31  ;;  %v1926_v44 = vadd.f32 %v5723_v31, %v1925_v10 }
 0x3de   :  { %v4090_v37 = vpop.f32.mrb[36].mxu1  ;;  %v1963_v50 = vadd.f32 %v1962_v0, %v1895_v25 }
 0x3df   :  { %v4091_v58 = vpop.f32.mrb[37].mxu1 }
 0x3e0   :  { %v5731_v30 = vadd.f32 %v4091_v58, %v4090_v37  ;;  %v4093_v1 = vpop.f32.mrb[38].mxu1 }
 0x3e1   :  { %v4094_v59 = vpop.f32.mrb[39].mxu1 }
 0x3e2   :  { %v5736_v47 = vadd.f32 %v4094_v59, %v4093_v1  ;;  %v1896_v23 = vmul.f32 %v5731_v30, %v5731_v30  ;;  %v1927_v28 = vadd.f32 %v5731_v30, %v1926_v44 }
 0x3e4   :  { %v1964_v17 = vadd.f32 %v1963_v50, %v1896_v23  ;;  %v1897_v27 = vmul.f32 %v5736_v47, %v5736_v47  ;;  %v1928_v62 = vadd.f32 %v5736_v47, %v1927_v28 }
 0x3e6   :  { %v4096_v2 = vpop.f32.mrb[40].mxu1  ;;  %v1965_v49 = vadd.f32 %v1964_v17, %v1897_v27 }
 0x3e7   :  { %v4097_v12 = vpop.f32.mrb[41].mxu1 }
 0x3e8   :  { %v5744_v45 = vadd.f32 %v4097_v12, %v4096_v2  ;;  %v4099_v6 = vpop.f32.mrb[42].mxu1 }
 0x3e9   :  { %v4100_v60 = vpop.f32.mrb[43].mxu1 }
 0x3ea   :  { %v5747_v54 = vadd.f32 %v4100_v60, %v4099_v6  ;;  %v1898_v43 = vmul.f32 %v5744_v45, %v5744_v45  ;;  %v1929_v15 = vadd.f32 %v5744_v45, %v1928_v62 }
 0x3ec   :  { %v1966_v35 = vadd.f32 %v1965_v49, %v1898_v43  ;;  %v1899_v61 = vmul.f32 %v5747_v54, %v5747_v54  ;;  %v1930_v29 = vadd.f32 %v5747_v54, %v1929_v15 }
 0x3ee   :  { %v4102_v9 = vpop.f32.mrb[44].mxu1  ;;  %v1967_v56 = vadd.f32 %v1966_v35, %v1899_v61 }
 0x3ef   :  { %v4103_v53 = vpop.f32.mrb[45].mxu1 }
 0x3f0   :  { %v5755_v52 = vadd.f32 %v4103_v53, %v4102_v9  ;;  %v4105_v7 = vpop.f32.mrb[46].mxu1 }
 0x3f1   :  { %v4106_v38 = vpop.f32.mrb[47].mxu1 }
 0x3f2   :  { %v5759_v34 = vadd.f32 %v4106_v38, %v4105_v7  ;;  %v1900_v13 = vmul.f32 %v5755_v52, %v5755_v52  ;;  %v1931_v21 = vadd.f32 %v5755_v52, %v1930_v29 }
 0x3f4   :  { %v1968_v26 = vadd.f32 %v1967_v56, %v1900_v13  ;;  %v1901_v37 = vmul.f32 %v5759_v34, %v5759_v34  ;;  %v1932_v1 = vadd.f32 %v5759_v34, %v1931_v21 }
 0x3f6   :  { %v4108_v8 = vpop.f32.mrb[48].mxu1  ;;  %v1969_v22 = vadd.f32 %v1968_v26, %v1901_v37 }
 0x3f7   :  { %v4109_v46 = vpop.f32.mrb[49].mxu1 }
 0x3f8   :  { %v5767_v58 = vadd.f32 %v4109_v46, %v4108_v8  ;;  %v4111_v40 = vpop.f32.mrb[50].mxu1 }
 0x3f9   :  { %v4112_v39 = vpop.f32.mrb[51].mxu1 }
 0x3fa   :  { %v1902_v59 = vmul.f32 %v5767_v58, %v5767_v58  ;;  %v5772_v42 = vadd.f32 %v4112_v39, %v4111_v40  ;;  %v1933_v3 = vadd.f32 %v5767_v58, %v1932_v1 }
 0x3fc   :  { %v1970_v10 = vadd.f32 %v1969_v22, %v1902_v59  ;;  %v1903_v0 = vmul.f32 %v5772_v42, %v5772_v42  ;;  %v1934_v12 = vadd.f32 %v5772_v42, %v1933_v3 }
 0x3fe   :  { %v4114_v25 = vpop.f32.mrb[52].mxu1  ;;  %v1971_v60 = vadd.f32 %v1970_v10, %v1903_v0 }
 0x3ff   :  { %v4115_v2 = vpop.f32.mrb[53].mxu1 }
 0x400   :  { %v5778_v44 = vadd.f32 %v4115_v2, %v4114_v25  ;;  %v4117_v23 = vpop.f32.mrb[54].mxu1 }
 0x401   :  { %v4118_v6 = vpop.f32.mrb[55].mxu1 }
 0x402   :  { %v1904_v50 = vmul.f32 %v5778_v44, %v5778_v44  ;;  %v1935_v28 = vadd.f32 %v5778_v44, %v1934_v12  ;;  %v5783_v17 = vadd.f32 %v4118_v6, %v4117_v23 }
 0x404   :  { %v1972_v27 = vadd.f32 %v1971_v60, %v1904_v50  ;;  %v1905_v62 = vmul.f32 %v5783_v17, %v5783_v17  ;;  %v1936_v43 = vadd.f32 %v5783_v17, %v1935_v28 }
 0x406   :  { %v1973_v9 = vadd.f32 %v1972_v27, %v1905_v62  ;;  %v4120_v53 = vpop.f32.mrb[56].mxu1 }
 0x407   :  { %v4121_v49 = vpop.f32.mrb[57].mxu1 }
 0x408   :  { %v5788_v15 = vadd.f32 %v4121_v49, %v4120_v53  ;;  %v4123_v7 = vpop.f32.mrb[58].mxu1 }
 0x409   :  { %v4124_v38 = vpop.f32.mrb[59].mxu1 }
 0x40a   :  { %v1906_v35 = vmul.f32 %v5788_v15, %v5788_v15  ;;  %v1937_v61 = vadd.f32 %v5788_v15, %v1936_v43  ;;  %v5793_v29 = vadd.f32 %v4124_v38, %v4123_v7 }
 0x40c   :  { %v1974_v13 = vadd.f32 %v1973_v9, %v1906_v35  ;;  %v1907_v56 = vmul.f32 %v5793_v29, %v5793_v29  ;;  %v1938_v21 = vadd.f32 %v5793_v29, %v1937_v61 }
 0x40e   :  { %v1975_v8 = vadd.f32 %v1974_v13, %v1907_v56  ;;  %v4126_v46 = vpop.f32.mrb[60].mxu1  ;;  %v1876_v56 = vld [vmem:[%s7147_s5] sm:$0x1] }
 0x40f   :  { %v4127_v26 = vpop.f32.mrb[61].mxu1 }
 0x410   :  { %v5798_v37 = vadd.f32 %v4127_v26, %v4126_v46  ;;  %v4129_v40 = vpop.f32.mrb[62].mxu1  ;;  %v1877_v46 = vld [vmem:[%s7148_s6] sm:$0x1] }
 0x411   :  { %v4130_v39 = vpop.f32.mrb[63].mxu1 }
 0x412   :  { %v1908_v1 = vmul.f32 %v5798_v37, %v5798_v37  ;;  %v1939_v59 = vadd.f32 %v5798_v37, %v1938_v21  ;;  %v4131_v22 = vadd.f32 %v4130_v39, %v4129_v40  ;;  %v7336_v40 = vld [vmem:[#allocation45_spill] sm:$0xff] }
 0x414   :  { %v1976_v3 = vadd.f32 %v1975_v8, %v1908_v1  ;;  %v1909_v10 = vmul.f32 %v4131_v22, %v4131_v22  ;;  %v1940_v0 = vadd.f32 %v4131_v22, %v1939_v59 }
 0x416   :  { %v1941_v25 = vrot.slane %v1940_v0, 4  ;;  %v1977_v2 = vadd.f32 %v1976_v3, %v1909_v10 }
 0x418   :  { %v1942_v12 = vadd.f32 %v1941_v25, %v1940_v0  ;;  %v1978_v23 = vrot.slane %v1977_v2, 4 }
 0x41a   :  { %v1943_v6 = vrot.slane %v1942_v12, 2  ;;  %v1979_v60 = vadd.f32 %v1978_v23, %v1977_v2 }
 0x41c   :  { %v1944_v50 = vadd.f32 %v1943_v6, %v1942_v12  ;;  %v1980_v28 = vrot.slane %v1979_v60, 2 }
 0x41e   :  { %v1945_v27 = vrot.slane %v1944_v50, 1  ;;  %v1981_v62 = vadd.f32 %v1980_v28, %v1979_v60 }
 0x420   :  { %v1946_v43 = vadd.f32 %v1945_v27, %v1944_v50  ;;  %v1982_v9 = vrot.slane %v1981_v62, 1 }
 0x422   :  { %v1983_v53 = vadd.f32 %v1982_v9, %v1981_v62  ;;  %v1984_v49 = vmul.f32 0.00390625, %v1946_v43 }
 0x424   :  { %v1985_v7 = vmul.f32 0.00390625, %v1983_v53  ;;  %v1986_v38 = vmul.f32 %v1984_v49, %v1984_v49 }
 0x426   :  { %v1987_v35 = vsub.f32 %v1985_v7, %v1986_v38 }
 0x428   :  { %v1988_v61 = vmax.f32 %v1987_v35, 0.0 }
 0x42a   :  { %v1989_v13 = vadd.f32 1e-05, %v1988_v61 }
 0x42c   :  { %4480 = vrsqrt.f32 %v1989_v13 }
 0x436   :  { %v4481_v21 = vpop.eup %4480 }
 0x437   :  { %v1991_v8 = vmul.f32 %v4481_v21, %v1876_v56 }
 0x439   :  { %v1992_v26 = vmul.f32 %v1991_v8, %v1984_v49  ;;  %v1998_v39 = vrot.slane %v1991_v8, %v7336_v40 }
 0x43b   :  { %v1993_v1 = vsub.f32 %v1877_v46, %v1992_v26  ;;  %v5810_v59 = vmul.f32 %v4131_v22, %v1998_v39  ;;  %v2000_v3 = vmul.f32 %v5647_v48, %v1998_v39  ;;  %v2001_v10 = vmul.f32 %v5649_v5, %v1998_v39 }
 0x43c   :  { %v2002_v0 = vmul.f32 %v5651_v63, %v1998_v39  ;;  %v2003_v25 = vmul.f32 %v5653_v41, %v1998_v39  ;;  %v2004_v2 = vmul.f32 %v5655_v18, %v1998_v39  ;;  %v2005_v12 = vmul.f32 %v5657_v51, %v1998_v39 }
 0x43d   :  { %v5819_v23 = vrot.slane %v1993_v1, %v7336_v40  ;;  %v2006_v6 = vmul.f32 %v5659_v20, %v1998_v39  ;;  %v2007_v22 = vmul.f32 %v5661_v14, %v1998_v39  ;;  %v2008_v60 = vmul.f32 %v5671_v36, %v1998_v39 }
 0x43e   :  { %v2009_v48 = vmul.f32 %v5674_v11, %v1998_v39  ;;  %v2010_v5 = vmul.f32 %v5682_v57, %v1998_v39  ;;  %v2011_v63 = vmul.f32 %v5686_v16, %v1998_v39  ;;  %v2012_v41 = vmul.f32 %v5694_v33, %v1998_v39 }
 0x43f   :  { %v2013_v18 = vmul.f32 %v5700_v19, %v1998_v39  ;;  %v2014_v51 = vmul.f32 %v5708_v24, %v1998_v39  ;;  %v2015_v50 = vmul.f32 %v5711_v55, %v1998_v39  ;;  %v2016_v20 = vmul.f32 %v5719_v4, %v1998_v39 }
 0x440   :  { %v2017_v14 = vmul.f32 %v5723_v31, %v1998_v39  ;;  %v2018_v36 = vmul.f32 %v5731_v30, %v1998_v39  ;;  %v2019_v11 = vmul.f32 %v5736_v47, %v1998_v39  ;;  %v2020_v57 = vmul.f32 %v5744_v45, %v1998_v39 }
 0x441   :  { %v2021_v16 = vmul.f32 %v5747_v54, %v1998_v39  ;;  %v2022_v33 = vmul.f32 %v5755_v52, %v1998_v39  ;;  %v5839_v19 = vmul.f32 %v5759_v34, %v1998_v39  ;;  %v5842_v24 = vmul.f32 %v5767_v58, %v1998_v39 }
 0x442   :  { %v5845_v55 = vmul.f32 %v5772_v42, %v1998_v39  ;;  %v5848_v4 = vmul.f32 %v5778_v44, %v1998_v39  ;;  %v5851_v31 = vmul.f32 %v5783_v17, %v1998_v39  ;;  %v5854_v30 = vmul.f32 %v5788_v15, %v1998_v39 }
 0x443   :  { %v5857_v47 = vmul.f32 %v5793_v29, %v1998_v39  ;;  %v5860_v45 = vmul.f32 %v5798_v37, %v1998_v39  ;;  %v2038_v54 = vadd.f32 %v5819_v23, %v2000_v3  ;;  %v2039_v52 = vadd.f32 %v5819_v23, %v2001_v10 }
 0x444   :  { %v2040_v34 = vadd.f32 %v5819_v23, %v2002_v0  ;;  %v2041_v58 = vadd.f32 %v5819_v23, %v2003_v25  ;;  %v2042_v42 = vadd.f32 %v5819_v23, %v2004_v2  ;;  %v2043_v44 = vadd.f32 %v5819_v23, %v2005_v12 }
 0x445   :  { %v2070_v17 = vmax.f32 %v2038_v54, 0.0  ;;  %v2071_v15 = vmax.f32 %v2039_v52, 0.0  ;;  %v2044_v29 = vadd.f32 %v5819_v23, %v2006_v6  ;;  %v2045_v28 = vadd.f32 %v5819_v23, %v2007_v22 }
 0x446   :  { %v2072_v37 = vmax.f32 %v2040_v34, 0.0  ;;  %v2073_v27 = vmax.f32 %v2041_v58, 0.0  ;;  %v2074_v62 = vmax.f32 %v2042_v42, 0.0  ;;  %v2075_v43 = vmax.f32 %v2043_v44, 0.0 }
 0x447   :  { %v2102_v9 = vpack.c.bf16 %v2071_v15, %v2070_v17  ;;  %v2076_v53 = vmax.f32 %v2044_v29, 0.0  ;;  %v2077_v49 = vmax.f32 %v2045_v28, 0.0  ;;  %v2046_v7 = vadd.f32 %v5819_v23, %v2008_v60 }
 0x448   :  { %v2103_v38 = vpack.c.bf16 %v2073_v27, %v2072_v37  ;;  %v5871_v35 = vpack.c.bf16 %v2075_v43, %v2074_v62  ;;  %v2047_v61 = vadd.f32 %v5819_v23, %v2009_v48  ;;  %v2048_v13 = vadd.f32 %v5819_v23, %v2010_v5 }
 0x449   :  { %2247 = vmatmul.mubr.bf16.vlgmr.msra.gmra.mrb[64].mxu1 %v2102_v9  ;;  %v2105_v56 = vpack.c.bf16 %v2077_v49, %v2076_v53  ;;  %v2078_v21 = vmax.f32 %v2046_v7, 0.0  ;;  %v2049_v8 = vadd.f32 %v5819_v23, %v2011_v63  ;;  %v2050_v46 = vadd.f32 %v5819_v23, %v2012_v41 }
 0x44a   :  { %2256 = vmatprep.mubr.bf16.mxu1 %v4661_v32  ;;  %v2079_v26 = vmax.f32 %v2047_v61, 0.0  ;;  %v2080_v39 = vmax.f32 %v2048_v13, 0.0  ;;  %v2051_v1 = vadd.f32 %v5819_v23, %v2013_v18  ;;  %v2052_v3 = vadd.f32 %v5819_v23, %v2014_v51 }
 0x44b   :  { %v2081_v10 = vmax.f32 %v2049_v8, 0.0  ;;  %v2082_v0 = vmax.f32 %v2050_v46, 0.0  ;;  %v2053_v25 = vadd.f32 %v5819_v23, %v2015_v50  ;;  %v2054_v2 = vadd.f32 %v5819_v23, %v2016_v20  ;;  %v4389_v8 = vld [vmem:[#allocation10 + $0x60] ss:$16 sps:$4 sm:$0xff]   ;;  %v4391_v46 = vld [vmem:[#allocation10 + $0x64] ss:$16 sps:$4 sm:$0xff]  }
 0x44c   :  { %v2106_v12 = vpack.c.bf16 %v2079_v26, %v2078_v21  ;;  %v2083_v6 = vmax.f32 %v2051_v1, 0.0  ;;  %v2084_v22 = vmax.f32 %v2052_v3, 0.0  ;;  %v2055_v60 = vadd.f32 %v5819_v23, %v2017_v14  ;;  %v4392_v26 = vld [vmem:[#allocation10 + $0x80] ss:$16 sps:$4 sm:$0xff]   ;;  %v5921_v1 = vld [vmem:[#allocation10 + $0xc] ss:$16 sps:$4 sm:$0xff]  }
 0x44d   :  { %v2107_v48 = vpack.c.bf16 %v2081_v10, %v2080_v39  ;;  %v2085_v5 = vmax.f32 %v2053_v25, 0.0  ;;  %v2086_v63 = vmax.f32 %v2054_v2, 0.0  ;;  %v2056_v41 = vadd.f32 %v5819_v23, %v2018_v36  ;;  %v4394_v39 = vld [vmem:[#allocation10 + $0x84] ss:$16 sps:$4 sm:$0xff]   ;;  %3520 = vmatprep.subr.bf16.mxu0 %v5921_v1  ;;  %v4398_v3 = vld [vmem:[#allocation10 + $0xa0] ss:$16 sps:$4 sm:$0xff]  }
 0x44e   :  { %v2108_v54 = vpack.c.bf16 %v2083_v6, %v2082_v0  ;;  %v2087_v18 = vmax.f32 %v2055_v60, 0.0  ;;  %v2057_v51 = vadd.f32 %v5819_v23, %v2019_v11  ;;  %v2058_v52 = vadd.f32 %v5819_v23, %v2020_v57  ;;  %v4400_v10 = vld [vmem:[#allocation10 + $0xa4] ss:$16 sps:$4 sm:$0xff]   ;;  %v4401_v0 = vld [vmem:[#allocation10 + $0x28] ss:$16 sps:$4 sm:$0xff]  }
 0x44f   :  { %v2109_v34 = vpack.c.bf16 %v2085_v5, %v2084_v22  ;;  %v2088_v50 = vmax.f32 %v2056_v41, 0.0  ;;  %v2059_v20 = vadd.f32 %v5819_v23, %v2021_v16  ;;  %v2060_v58 = vadd.f32 %v5819_v23, %v2022_v33  ;;  %v4403_v25 = vld [vmem:[#allocation10 + $0x2c] ss:$16 sps:$4 sm:$0xff]   ;;  %v4404_v2 = vld [vmem:[#allocation10 + $0xc0] ss:$16 sps:$4 sm:$0xff]  }
 0x450   :  { %v2110_v42 = vpack.c.bf16 %v2087_v18, %v2086_v63  ;;  %v2089_v44 = vmax.f32 %v2057_v51, 0.0  ;;  %v2090_v14 = vmax.f32 %v2058_v52, 0.0  ;;  %v2061_v17 = vadd.f32 %v5819_v23, %v5839_v19  ;;  %v4407_v6 = vld [vmem:[#allocation10 + $0x48] ss:$16 sps:$4 sm:$0xff]   ;;  %v4409_v22 = vld [vmem:[#allocation10 + $0x4c] ss:$16 sps:$4 sm:$0xff]  }
 0x451   :  { %2257 = vmatmul.mubr.bf16.gmra.mrb[68].mxu1 %v2103_v38  ;;  %v2091_v36 = vmax.f32 %v2059_v20, 0.0  ;;  %v2092_v15 = vmax.f32 %v2060_v58, 0.0  ;;  %v2062_v11 = vadd.f32 %v5819_v23, %v5842_v24  ;;  %v2063_v57 = vadd.f32 %v5819_v23, %v5845_v55  ;;  %v4410_v60 = vld [vmem:[#allocation10 + $0xe0] ss:$16 sps:$4 sm:$0xff]   ;;  %v4413_v5 = vld [vmem:[#allocation10 + $0x68] ss:$16 sps:$4 sm:$0xff]  }
 0x452   :  { %2266 = vmatprep.mubr.bf16.mxu1 %v4661_v32  ;;  %v2111_v16 = vpack.c.bf16 %v2089_v44, %v2088_v50  ;;  %v2093_v29 = vmax.f32 %v2061_v17, 0.0  ;;  %v2064_v33 = vadd.f32 %v5819_v23, %v5848_v4  ;;  %v2065_v28 = vadd.f32 %v5819_v23, %v5851_v31  ;;  %v4415_v63 = vld [vmem:[#allocation10 + $0x6c] ss:$16 sps:$4 sm:$0xff]  }
 0x453   :  { %v2112_v19 = vpack.c.bf16 %v2091_v36, %v2090_v14  ;;  %v2094_v37 = vmax.f32 %v2062_v11, 0.0  ;;  %v2095_v27 = vmax.f32 %v2063_v57, 0.0  ;;  %v2066_v62 = vadd.f32 %v5819_v23, %v5854_v30 }
 0x454   :  { %v2113_v24 = vpack.c.bf16 %v2093_v29, %v2092_v15  ;;  %v2096_v43 = vmax.f32 %v2064_v33, 0.0  ;;  %v2097_v9 = vmax.f32 %v2065_v28, 0.0  ;;  %v2067_v55 = vadd.f32 %v5819_v23, %v5857_v47  ;;  %v4383_v47 = vld [vmem:[#allocation10 + $0x20] ss:$16 sps:$4 sm:$0xff]  }
 0x455   :  { %v2114_v53 = vpack.c.bf16 %v2095_v27, %v2094_v37  ;;  %v2098_v49 = vmax.f32 %v2066_v62, 0.0  ;;  %v2068_v4 = vadd.f32 %v5819_v23, %v5860_v45  ;;  %v2069_v31 = vadd.f32 %v5819_v23, %v5810_v59  ;;  %v4380_v59 = vld [vmem:[#allocation10] ss:$16 sps:$4 sm:$0xff]   ;;  %v4382_v23 = vld [vmem:[#allocation10 + $0x4] ss:$16 sps:$4 sm:$0xff]  }
 0x456   :  { %v2115_v7 = vpack.c.bf16 %v2097_v9, %v2096_v43  ;;  %v2099_v38 = vmax.f32 %v2067_v55, 0.0  ;;  %3327 = vmatprep.subr.bf16.mxu1 %v4382_v23  ;;  %v4385_v45 = vld [vmem:[#allocation10 + $0x24] ss:$16 sps:$4 sm:$0xff]  }
 0x457   :  { %v2100_v61 = vmax.f32 %v2068_v4, 0.0  ;;  %v2101_v13 = vmax.f32 %v2069_v31, 0.0  ;;  %3328 = vmatpush1.bf16.msra.mxu1 %v4380_v59 }
 0x458   :  { %v2116_v21 = vpack.c.bf16 %v2099_v38, %v2098_v49  ;;  %3329 = vmatprep.subr.bf16.mxu1 %v4385_v45 }
 0x459   :  { %2267 = vmatmul.mubr.bf16.gmra.mrb[72].mxu1 %v5871_v35  ;;  %v2117_v30 = vpack.c.bf16 %v2101_v13, %v2100_v61  ;;  %v4386_v35 = vld [vmem:[#allocation10 + $0x40] ss:$16 sps:$4 sm:$0xff]  }
 0x45a   :  { %2276 = vmatprep.mubr.bf16.mxu1 %v4661_v32 }
 0x45b   :  { %3330 = vmatpush1.bf16.msra.mxu1 %v4383_v47 }
 0x461   :  { %2277 = vmatmul.mubr.bf16.gmra.mrb[76].mxu1 %v2105_v56  ;;  %v4388_v56 = vld [vmem:[#allocation10 + $0x44] ss:$16 sps:$4 sm:$0xff]  }
 0x462   :  { %2286 = vmatprep.mubr.bf16.mxu1 %v4661_v32  ;;  %3331 = vmatprep.subr.bf16.mxu1 %v4388_v56 }
 0x463   :  { %3332 = vmatpush1.bf16.msra.mxu1 %v4386_v35 }
 0x464   :  { %3333 = vmatprep.subr.bf16.mxu1 %v4391_v46 }
 0x467   :  { %3334 = vmatpush1.bf16.msra.mxu1 %v4389_v8 }
 0x468   :  { %3335 = vmatprep.subr.bf16.mxu1 %v4394_v39 }
 0x469   :  { %2287 = vmatmul.mubr.bf16.gmra.mrb[80].mxu1 %v2106_v12  ;;  %v4406_v12 = vld [vmem:[#allocation10 + $0xc4] ss:$16 sps:$4 sm:$0xff]  }
 0x46a   :  { %2296 = vmatprep.mubr.bf16.mxu1 %v4661_v32 }
 0x46b   :  { %3336 = vmatpush1.bf16.msra.mxu1 %v4392_v26 }
 0x46c   :  { %3337 = vmatprep.subr.bf16.mxu1 %v4400_v10 }
 0x46f   :  { %3338 = vmatpush1.bf16.msra.mxu1 %v4398_v3 }
 0x470   :  { %3339 = vmatprep.subr.bf16.mxu1 %v4406_v12 }
 0x471   :  { %2297 = vmatmul.mubr.bf16.gmra.mrb[84].mxu1 %v2107_v48  ;;  %v4412_v48 = vld [vmem:[#allocation10 + $0xe4] ss:$16 sps:$4 sm:$0xff]  }
 0x472   :  { %2306 = vmatprep.mubr.bf16.mxu1 %v4661_v32 }
 0x473   :  { %3340 = vmatpush1.bf16.msra.mxu1 %v4404_v2 }
 0x474   :  { %3341 = vmatprep.subr.bf16.mxu1 %v4412_v48 }
 0x477   :  { %3342 = vmatpush1.bf16.msra.mxu1 %v4410_v60 }
 0x479   :  { %2307 = vmatmul.mubr.bf16.gmra.mrb[88].mxu1 %v2108_v54 }
 0x47a   :  { %2316 = vmatprep.mubr.bf16.mxu1 %v4661_v32 }
 0x481   :  { %2317 = vmatmul.mubr.bf16.gmra.mrb[92].mxu1 %v2109_v34 }
 0x482   :  { %2326 = vmatprep.mubr.bf16.mxu1 %v4661_v32 }
 0x489   :  { %2327 = vmatmul.mubr.bf16.gmra.mrb[96].mxu1 %v2110_v42 }
 0x48a   :  { %2336 = vmatprep.mubr.bf16.mxu1 %v4661_v32 }
 0x491   :  { %2337 = vmatmul.mubr.bf16.gmra.mrb[100].mxu1 %v2111_v16 }
 0x492   :  { %2346 = vmatprep.mubr.bf16.mxu1 %v4661_v32 }
 0x499   :  { %2347 = vmatmul.mubr.bf16.gmra.mrb[104].mxu1 %v2112_v19 }
 0x49a   :  { %2356 = vmatprep.mubr.bf16.mxu1 %v4661_v32 }
 0x4a1   :  { %2357 = vmatmul.mubr.bf16.gmra.mrb[108].mxu1 %v2113_v24 }
 0x4a2   :  { %2366 = vmatprep.mubr.bf16.mxu1 %v4661_v32 }
 0x4a9   :  { %2367 = vmatmul.mubr.bf16.gmra.mrb[112].mxu1 %v2114_v53 }
 0x4aa   :  { %2376 = vmatprep.mubr.bf16.mxu1 %v4661_v32 }
 0x4b1   :  { %2377 = vmatmul.mubr.bf16.gmra.mrb[116].mxu1 %v2115_v7 }
 0x4b2   :  { %2386 = vmatprep.mubr.bf16.mxu1 %v4661_v32 }
 0x4b9   :  { %2387 = vmatmul.mubr.bf16.gmra.mrb[120].mxu1 %v2116_v21 }
 0x4ba   :  { %2396 = vmatprep.mubr.bf16.mxu1 %v4661_v32  ;;  %v4395_v32 = vld [vmem:[#allocation10 + $0x8] ss:$16 sps:$4 sm:$0xff]  }
 0x4bb   :  { %3521 = vmatpush1.bf16.msra.mxu0 %v4395_v32 }
 0x4bc   :  { %3522 = vmatprep.subr.bf16.mxu0 %v4403_v25 }
 0x4bf   :  { %3523 = vmatpush1.bf16.msra.mxu0 %v4401_v0 }
 0x4c0   :  { %3524 = vmatprep.subr.bf16.mxu0 %v4409_v22 }
 0x4c1   :  { %2397 = vmatmul.mubr.bf16.gmra.mrb[124].mxu1 %v2117_v30 }
 0x4c3   :  { %3525 = vmatpush1.bf16.msra.mxu0 %v4407_v6 }
 0x4c4   :  { %3526 = vmatprep.subr.bf16.mxu0 %v4415_v63 }
 0x4c7   :  { %3527 = vmatpush1.bf16.msra.mxu0 %v4413_v5  ;;  %v4421_v5 = vld [vmem:[#allocation10 + $0x8c] ss:$16 sps:$4 sm:$0xff]  }
 0x4c8   :  { %3528 = vmatprep.subr.bf16.mxu0 %v4421_v5 }
 0x51c   :  { %v5924_v41 = vpop.f32.mrb[64].mxu1 }
 0x51d   :  { %v5926_v54 = vpop.f32.mrb[65].mxu1  ;;  %v2409_v51 = vmul.f32 %v5924_v41, %v5924_v41 }
 0x51e   :  { %v5928_v18 = vpop.f32.mrb[66].mxu1  ;;  %v2410_v20 = vmul.f32 %v5926_v54, %v5926_v54 }
 0x51f   :  { %v2411_v52 = vmul.f32 %v5928_v18, %v5928_v18  ;;  %v2473_v34 = vadd.f32 %v5928_v18, %v5924_v41  ;;  %v5936_v50 = vpop.f32.mrb[67].mxu1 }
 0x520   :  { %v2412_v58 = vmul.f32 %v5936_v50, %v5936_v50  ;;  %v2510_v42 = vadd.f32 %v5936_v50, %v5926_v54 }
 0x521   :  { %v2547_v44 = vadd.f32 %v2411_v52, %v2409_v51  ;;  %v4419_v51 = vld [vmem:[#allocation10 + $0x88] ss:$16 sps:$4 sm:$0xff]  }
 0x522   :  { %v2584_v14 = vadd.f32 %v2412_v58, %v2410_v20  ;;  %3529 = vmatpush1.bf16.msra.mxu0 %v4419_v51 }
 0x524   :  { %v5944_v17 = vpop.f32.mrb[68].mxu1 }
 0x525   :  { %v2413_v36 = vmul.f32 %v5944_v17, %v5944_v17  ;;  %v2474_v15 = vadd.f32 %v2473_v34, %v5944_v17  ;;  %v5949_v11 = vpop.f32.mrb[69].mxu1 }
 0x526   :  { %v2414_v57 = vmul.f32 %v5949_v11, %v5949_v11  ;;  %v2511_v16 = vadd.f32 %v2510_v42, %v5949_v11  ;;  %v5954_v29 = vpop.f32.mrb[70].mxu1 }
 0x527   :  { %v2548_v33 = vadd.f32 %v2547_v44, %v2413_v36  ;;  %v2415_v28 = vmul.f32 %v5954_v29, %v5954_v29  ;;  %v2475_v19 = vadd.f32 %v2474_v15, %v5954_v29  ;;  %v5959_v37 = vpop.f32.mrb[71].mxu1 }
 0x528   :  { %v2585_v27 = vadd.f32 %v2584_v14, %v2414_v57  ;;  %v2416_v62 = vmul.f32 %v5959_v37, %v5959_v37  ;;  %v2512_v24 = vadd.f32 %v2511_v16, %v5959_v37  ;;  %v4427_v16 = vld [vmem:[#allocation10 + $0xac] ss:$16 sps:$4 sm:$0xff]  }
 0x529   :  { %v2549_v43 = vadd.f32 %v2548_v33, %v2415_v28  ;;  %3530 = vmatprep.subr.bf16.mxu0 %v4427_v16  ;;  %v4424_v16 = vld [vmem:[#allocation10 + $0x124] ss:$16 sps:$4 sm:$0xff]  }
 0x52a   :  { %v2586_v9 = vadd.f32 %v2585_v27, %v2416_v62  ;;  %v4425_v27 = vld [vmem:[#allocation10 + $0xa8] ss:$16 sps:$4 sm:$0xff]  }
 0x52b   :  { %3531 = vmatpush1.bf16.msra.mxu0 %v4425_v27 }
 0x52c   :  { %v5964_v55 = vpop.f32.mrb[72].mxu1 }
 0x52d   :  { %v2417_v53 = vmul.f32 %v5964_v55, %v5964_v55  ;;  %v2476_v49 = vadd.f32 %v2475_v19, %v5964_v55  ;;  %v5969_v4 = vpop.f32.mrb[73].mxu1 }
 0x52e   :  { %v2418_v31 = vmul.f32 %v5969_v4, %v5969_v4  ;;  %v2513_v7 = vadd.f32 %v2512_v24, %v5969_v4  ;;  %v5974_v38 = vpop.f32.mrb[74].mxu1 }
 0x52f   :  { %v2550_v61 = vadd.f32 %v2549_v43, %v2417_v53  ;;  %v2419_v13 = vmul.f32 %v5974_v38, %v5974_v38  ;;  %v2477_v21 = vadd.f32 %v2476_v49, %v5974_v38  ;;  %v5979_v30 = vpop.f32.mrb[75].mxu1  ;;  %v4433_v43 = vld [vmem:[#allocation10 + $0xcc] ss:$16 sps:$4 sm:$0xff]   ;;  %v4431_v53 = vld [vmem:[#allocation10 + $0xc8] ss:$16 sps:$4 sm:$0xff]  }
 0x530   :  { %v2587_v59 = vadd.f32 %v2586_v9, %v2418_v31  ;;  %v2420_v23 = vmul.f32 %v5979_v30, %v5979_v30  ;;  %v2514_v47 = vadd.f32 %v2513_v7, %v5979_v30  ;;  %3532 = vmatprep.subr.bf16.mxu0 %v4433_v43 }
 0x531   :  { %v2551_v45 = vadd.f32 %v2550_v61, %v2419_v13  ;;  %3533 = vmatpush1.bf16.msra.mxu0 %v4431_v53 }
 0x532   :  { %v2588_v35 = vadd.f32 %v2587_v59, %v2420_v23 }
 0x534   :  { %v5984_v56 = vpop.f32.mrb[76].mxu1 }
 0x535   :  { %v2421_v8 = vmul.f32 %v5984_v56, %v5984_v56  ;;  %v2478_v46 = vadd.f32 %v2477_v21, %v5984_v56  ;;  %v5989_v26 = vpop.f32.mrb[77].mxu1 }
 0x536   :  { %v2422_v39 = vmul.f32 %v5989_v26, %v5989_v26  ;;  %v2515_v32 = vadd.f32 %v2514_v47, %v5989_v26  ;;  %v5994_v3 = vpop.f32.mrb[78].mxu1 }
 0x537   :  { %v2552_v10 = vadd.f32 %v2551_v45, %v2421_v8  ;;  %v2423_v0 = vmul.f32 %v5994_v3, %v5994_v3  ;;  %v2479_v25 = vadd.f32 %v2478_v46, %v5994_v3  ;;  %v5999_v2 = vpop.f32.mrb[79].mxu1 }
 0x538   :  { %v2589_v12 = vadd.f32 %v2588_v35, %v2422_v39  ;;  %v2424_v6 = vmul.f32 %v5999_v2, %v5999_v2  ;;  %v2516_v22 = vadd.f32 %v2515_v32, %v5999_v2  ;;  %v4439_v35 = vld [vmem:[#allocation10 + $0xec] ss:$16 sps:$4 sm:$0xff]   ;;  %v4437_v32 = vld [vmem:[#allocation10 + $0xe8] ss:$16 sps:$4 sm:$0xff]  }
 0x539   :  { %v2553_v60 = vadd.f32 %v2552_v10, %v2423_v0  ;;  %3534 = vmatprep.subr.bf16.mxu0 %v4439_v35 }
 0x53a   :  { %v2590_v48 = vadd.f32 %v2589_v12, %v2424_v6  ;;  %3535 = vmatpush1.bf16.msra.mxu0 %v4437_v32  ;;  %v4445_v12 = vld [vmem:[#allocation10 + $0x10c] ss:$16 sps:$4 sm:$0xff]  }
 0x53b   :  { %3536 = vmatprep.subr.bf16.mxu0 %v4445_v12  ;;  %v4436_v12 = vld [vmem:[#allocation10 + $0x164] ss:$16 sps:$4 sm:$0xff]  }
 0x53c   :  { %v6004_v63 = vpop.f32.mrb[80].mxu1 }
 0x53d   :  { %v2425_v52 = vmul.f32 %v6004_v63, %v6004_v63  ;;  %v2480_v34 = vadd.f32 %v2479_v25, %v6004_v63  ;;  %v6009_v20 = vpop.f32.mrb[81].mxu1  ;;  %v4418_v25 = vld [vmem:[#allocation10 + $0x104] ss:$16 sps:$4 sm:$0xff]  }
 0x53e   :  { %v2426_v58 = vmul.f32 %v6009_v20, %v6009_v20  ;;  %v2517_v42 = vadd.f32 %v2516_v22, %v6009_v20  ;;  %v6014_v44 = vpop.f32.mrb[82].mxu1  ;;  %v4416_v22 = vld [vmem:[#allocation10 + $0x100] ss:$16 sps:$4 sm:$0xff]   ;;  %3343 = vmatprep.subr.bf16.mxu1 %v4418_v25 }
 0x53f   :  { %v2554_v14 = vadd.f32 %v2553_v60, %v2425_v52  ;;  %v2427_v36 = vmul.f32 %v6014_v44, %v6014_v44  ;;  %v2481_v15 = vadd.f32 %v2480_v34, %v6014_v44  ;;  %v6019_v57 = vpop.f32.mrb[83].mxu1  ;;  %v4443_v60 = vld [vmem:[#allocation10 + $0x108] ss:$16 sps:$4 sm:$0xff]   ;;  %3344 = vmatpush1.bf16.msra.mxu1 %v4416_v22  ;;  %v6081_v22 = vld [vmem:[#allocation10 + $0x16c] ss:$16 sps:$4 sm:$0xff]  }
 0x540   :  { %v2591_v33 = vadd.f32 %v2590_v48, %v2426_v58  ;;  %v2428_v28 = vmul.f32 %v6019_v57, %v6019_v57  ;;  %v2518_v19 = vadd.f32 %v2517_v42, %v6019_v57  ;;  %3537 = vmatpush1.bf16.msra.mxu0 %v4443_v60  ;;  %3345 = vmatprep.subr.bf16.mxu1 %v4424_v16  ;;  %v6090_v16 = vld [vmem:[#allocation10 + $0x18c] ss:$16 sps:$4 sm:$0xff]  }
 0x541   :  { %v2555_v62 = vadd.f32 %v2554_v14, %v2427_v36  ;;  %7337 = vst [vmem:[#allocation30_spill] sm:$0xff] %v6081_v22  ;;  %7339 = vst [vmem:[#allocation32_spill] sm:$0xff] %v6090_v16 }
 0x542   :  { %v2592_v24 = vadd.f32 %v2591_v33, %v2428_v28  ;;  %v4448_v33 = vld [vmem:[#allocation10 + $0x12c] ss:$16 sps:$4 sm:$0xff]  }
 0x543   :  { %3538 = vmatprep.subr.bf16.mxu0 %v4448_v33 }
 0x544   :  { %v6024_v9 = vpop.f32.mrb[84].mxu1 }
 0x545   :  { %v2429_v49 = vmul.f32 %v6024_v9, %v6024_v9  ;;  %v2482_v31 = vadd.f32 %v2481_v15, %v6024_v9  ;;  %v6029_v7 = vpop.f32.mrb[85].mxu1 }
 0x546   :  { %v2430_v61 = vmul.f32 %v6029_v7, %v6029_v7  ;;  %v2519_v13 = vadd.f32 %v2518_v19, %v6029_v7  ;;  %v6034_v21 = vpop.f32.mrb[86].mxu1 }
 0x547   :  { %v2556_v59 = vadd.f32 %v2555_v62, %v2429_v49  ;;  %v2431_v23 = vmul.f32 %v6034_v21, %v6034_v21  ;;  %v2483_v47 = vadd.f32 %v2482_v31, %v6034_v21  ;;  %v6039_v45 = vpop.f32.mrb[87].mxu1  ;;  %v4422_v62 = vld [vmem:[#allocation10 + $0x120] ss:$16 sps:$4 sm:$0xff]   ;;  %v4430_v49 = vld [vmem:[#allocation10 + $0x144] ss:$16 sps:$4 sm:$0xff]  }
 0x548   :  { %v2593_v8 = vadd.f32 %v2592_v24, %v2430_v61  ;;  %v2432_v46 = vmul.f32 %v6039_v45, %v6039_v45  ;;  %v2520_v39 = vadd.f32 %v2519_v13, %v6039_v45  ;;  %v4446_v24 = vld [vmem:[#allocation10 + $0x128] ss:$16 sps:$4 sm:$0xff]   ;;  %3346 = vmatpush1.bf16.msra.mxu1 %v4422_v62  ;;  %v4454_v31 = vld [vmem:[#allocation10 + $0x14c] ss:$16 sps:$4 sm:$0xff]   ;;  %v4428_v13 = vld [vmem:[#allocation10 + $0x140] ss:$16 sps:$4 sm:$0xff]  }
 0x549   :  { %v2557_v10 = vadd.f32 %v2556_v59, %v2431_v23  ;;  %3539 = vmatpush1.bf16.msra.mxu0 %v4446_v24  ;;  %v4452_v59 = vld [vmem:[#allocation10 + $0x148] ss:$16 sps:$4 sm:$0xff]   ;;  %3347 = vmatprep.subr.bf16.mxu1 %v4430_v49 }
 0x54a   :  { %v2594_v0 = vadd.f32 %v2593_v8, %v2432_v46  ;;  %3540 = vmatprep.subr.bf16.mxu0 %v4454_v31 }
 0x54c   :  { %v6044_v6 = vpop.f32.mrb[88].mxu1  ;;  %3348 = vmatpush1.bf16.msra.mxu1 %v4428_v13 }
 0x54d   :  { %v2433_v48 = vmul.f32 %v6044_v6, %v6044_v6  ;;  %v2484_v5 = vadd.f32 %v2483_v47, %v6044_v6  ;;  %v6049_v51 = vpop.f32.mrb[89].mxu1  ;;  %3541 = vmatpush1.bf16.msra.mxu0 %v4452_v59  ;;  %3349 = vmatprep.subr.bf16.mxu1 %v4436_v12  ;;  %v6118_v12 = vld [vmem:[#allocation10 + $0x1a8] ss:$16 sps:$4 sm:$0xff]  }
 0x54e   :  { %v2434_v52 = vmul.f32 %v6049_v51, %v6049_v51  ;;  %v2521_v34 = vadd.f32 %v2520_v39, %v6049_v51  ;;  %v6054_v58 = vpop.f32.mrb[90].mxu1  ;;  %3542 = vmatprep.subr.bf16.mxu0 %v6081_v22  ;;  %7343 = vst [vmem:[#allocation36_spill] sm:$0xff] %v6118_v12 }
 0x54f   :  { %v2558_v42 = vadd.f32 %v2557_v10, %v2433_v48  ;;  %v2435_v14 = vmul.f32 %v6054_v58, %v6054_v58  ;;  %v2485_v36 = vadd.f32 %v2484_v5, %v6054_v58  ;;  %v6059_v15 = vpop.f32.mrb[91].mxu1 }
 0x550   :  { %v2595_v28 = vadd.f32 %v2594_v0, %v2434_v52  ;;  %v2436_v19 = vmul.f32 %v6059_v15, %v6059_v15  ;;  %v2522_v27 = vadd.f32 %v2521_v34, %v6059_v15  ;;  %v4434_v52 = vld [vmem:[#allocation10 + $0x160] ss:$16 sps:$4 sm:$0xff]   ;;  %v6086_v34 = vld [vmem:[#allocation10 + $0x168] ss:$16 sps:$4 sm:$0xff]  }
 0x551   :  { %v2559_v43 = vadd.f32 %v2558_v42, %v2435_v14  ;;  %7338 = vst [vmem:[#allocation31_spill] sm:$0xff] %v6086_v34  ;;  %3350 = vmatpush1.bf16.msra.mxu1 %v4434_v52  ;;  %3543 = vmatpush1.bf16.msra.mxu0 %v6086_v34  ;;  %v6122_v52 = vld [vmem:[#allocation10 + $0x1cc] ss:$16 sps:$4 sm:$0xff]  }
 0x552   :  { %v2596_v53 = vadd.f32 %v2595_v28, %v2436_v19  ;;  %v4440_v28 = vld [vmem:[#allocation10 + $0x180] ss:$16 sps:$4 sm:$0xff]   ;;  %v6094_v19 = vld [vmem:[#allocation10 + $0x188] ss:$16 sps:$4 sm:$0xff]   ;;  %3544 = vmatprep.subr.bf16.mxu0 %v6090_v16  ;;  %7344 = vst [vmem:[#allocation37_spill] sm:$0xff] %v6122_v52 }
 0x553   :  { %7340 = vst [vmem:[#allocation33_spill] sm:$0xff] %v6094_v19 }
 0x554   :  { %v6064_v61 = vpop.f32.mrb[92].mxu1 }
 0x555   :  { %v2437_v23 = vmul.f32 %v6064_v61, %v6064_v61  ;;  %v2486_v47 = vadd.f32 %v2485_v36, %v6064_v61  ;;  %v6069_v35 = vpop.f32.mrb[93].mxu1  ;;  %v4442_v36 = vld [vmem:[#allocation10 + $0x184] ss:$16 sps:$4 sm:$0xff]   ;;  %3545 = vmatpush1.bf16.msra.mxu0 %v6094_v19 }
 0x556   :  { %v2438_v8 = vmul.f32 %v6069_v35, %v6069_v35  ;;  %v2523_v46 = vadd.f32 %v2522_v27, %v6069_v35  ;;  %v6074_v39 = vpop.f32.mrb[94].mxu1  ;;  %3351 = vmatprep.subr.bf16.mxu1 %v4442_v36  ;;  %v6126_v36 = vld [vmem:[#allocation10 + $0x1c8] ss:$16 sps:$4 sm:$0xff]  }
 0x557   :  { %v2560_v32 = vadd.f32 %v2559_v43, %v2437_v23  ;;  %v2439_v10 = vmul.f32 %v6074_v39, %v6074_v39  ;;  %v2487_v0 = vadd.f32 %v2486_v47, %v6074_v39  ;;  %v6079_v25 = vpop.f32.mrb[95].mxu1  ;;  %3352 = vmatpush1.bf16.msra.mxu1 %v4440_v28  ;;  %v4451_v47 = vld [vmem:[#allocation10 + $0x1a4] ss:$16 sps:$4 sm:$0xff]   ;;  %7346 = vst [vmem:[#allocation39_spill] sm:$0xff] %v6126_v36 }
 0x558   :  { %v2597_v60 = vadd.f32 %v2596_v53, %v2438_v8  ;;  %v2440_v48 = vmul.f32 %v6079_v25, %v6079_v25  ;;  %v2524_v5 = vadd.f32 %v2523_v46, %v6079_v25  ;;  %v6113_v8 = vld [vmem:[#allocation10 + $0x1ac] ss:$16 sps:$4 sm:$0xff]   ;;  %3353 = vmatprep.subr.bf16.mxu1 %v4451_v47 }
 0x559   :  { %v2561_v42 = vadd.f32 %v2560_v32, %v2439_v10  ;;  %7342 = vst [vmem:[#allocation35_spill] sm:$0xff] %v6113_v8  ;;  %3546 = vmatprep.subr.bf16.mxu0 %v6113_v8 }
 0x55a   :  { %v2598_v14 = vadd.f32 %v2597_v60, %v2440_v48  ;;  %3547 = vmatpush1.bf16.msra.mxu0 %v6118_v12  ;;  %v6150_v12 = vld [vmem:[#allocation10 + $0x1e8] ss:$16 sps:$4 sm:$0xff]  }
 0x55b   :  { %3548 = vmatprep.subr.bf16.mxu0 %v6122_v52  ;;  %7351 = vst [vmem:[#allocation50_spill] sm:$0xff] %v6150_v12 }
 0x55c   :  { %v6092_v33 = vpop.f32.mrb[96].mxu1 }
 0x55d   :  { %v2441_v27 = vmul.f32 %v6092_v33, %v6092_v33  ;;  %v2488_v62 = vadd.f32 %v2487_v0, %v6092_v33  ;;  %v6099_v24 = vpop.f32.mrb[97].mxu1  ;;  %v4449_v0 = vld [vmem:[#allocation10 + $0x1a0] ss:$16 sps:$4 sm:$0xff]  }
 0x55e   :  { %v2442_v43 = vmul.f32 %v6099_v24, %v6099_v24  ;;  %v2525_v53 = vadd.f32 %v2524_v5, %v6099_v24  ;;  %v6105_v49 = vpop.f32.mrb[98].mxu1  ;;  %3354 = vmatpush1.bf16.msra.mxu1 %v4449_v0  ;;  %v4460_v5 = vld [vmem:[#allocation10 + $0x1c4] ss:$16 sps:$4 sm:$0xff]   ;;  %3549 = vmatpush1.bf16.msra.mxu0 %v6126_v36  ;;  %v6145_v0 = vld [vmem:[#allocation10 + $0x1ec] ss:$16 sps:$4 sm:$0xff]  }
 0x55f   :  { %v2562_v31 = vadd.f32 %v2561_v42, %v2441_v27  ;;  %v2443_v13 = vmul.f32 %v6105_v49, %v6105_v49  ;;  %v2489_v59 = vadd.f32 %v2488_v62, %v6105_v49  ;;  %v6111_v23 = vpop.f32.mrb[99].mxu1  ;;  %3355 = vmatprep.subr.bf16.mxu1 %v4460_v5  ;;  %7350 = vst [vmem:[#allocation49_spill] sm:$0xff] %v6145_v0 }
 0x560   :  { %7341 = vst [vmem:[#allocation34_spill] sm:$0xff] %v6111_v23  ;;  %v2599_v46 = vadd.f32 %v2598_v14, %v2442_v43  ;;  %v2444_v32 = vmul.f32 %v6111_v23, %v6111_v23  ;;  %v2526_v10 = vadd.f32 %v2525_v53, %v6111_v23  ;;  %v4458_v14 = vld [vmem:[#allocation10 + $0x1c0] ss:$16 sps:$4 sm:$0xff]   ;;  %3550 = vmatprep.subr.bf16.mxu0 %v6145_v0 }
 0x561   :  { %v2563_v60 = vadd.f32 %v2562_v31, %v2443_v13 }
 0x562   :  { %v2600_v48 = vadd.f32 %v2599_v46, %v2444_v32  ;;  %3356 = vmatpush1.bf16.msra.mxu1 %v4458_v14  ;;  %v4469_v32 = vld [vmem:[#allocation10 + $0x1e4] ss:$16 sps:$4 sm:$0xff]   ;;  %v4467_v14 = vld [vmem:[#allocation10 + $0x1e0] ss:$16 sps:$4 sm:$0xff]   ;;  %3551 = vmatpush1.bf16.msra.mxu0 %v6150_v12 }
 0x563   :  { %3357 = vmatprep.subr.bf16.mxu1 %v4469_v32 }
 0x564   :  { %v6124_v42 = vpop.f32.mrb[100].mxu1 }
 0x565   :  { %7345 = vst [vmem:[#allocation38_spill] sm:$0xff] %v6124_v42  ;;  %v2445_v28 = vmul.f32 %v6124_v42, %v6124_v42  ;;  %v2490_v27 = vadd.f32 %v2489_v59, %v6124_v42  ;;  %v6131_v62 = vpop.f32.mrb[101].mxu1 }
 0x566   :  { %7347 = vst [vmem:[#allocation40_spill] sm:$0xff] %v6131_v62  ;;  %v2446_v43 = vmul.f32 %v6131_v62, %v6131_v62  ;;  %v2527_v53 = vadd.f32 %v2526_v10, %v6131_v62  ;;  %v6137_v31 = vpop.f32.mrb[102].mxu1  ;;  %3358 = vmatpush1.bf16.msra.mxu1 %v4467_v14 }
 0x567   :  { %7348 = vst [vmem:[#allocation41_spill] sm:$0xff] %v6137_v31  ;;  %v2564_v13 = vadd.f32 %v2563_v60, %v2445_v28  ;;  %v2447_v47 = vmul.f32 %v6137_v31, %v6137_v31  ;;  %v2491_v59 = vadd.f32 %v2490_v27, %v6137_v31  ;;  %v6143_v46 = vpop.f32.mrb[103].mxu1  ;;  %4132 = vmatprep.subr.bf16.mxu1 %v5921_v1 }
 0x568   :  { %7349 = vst [vmem:[#allocation42_spill] sm:$0xff] %v6143_v46  ;;  %v2601_v5 = vadd.f32 %v2600_v48, %v2446_v43  ;;  %v2448_v10 = vmul.f32 %v6143_v46, %v6143_v46  ;;  %v2528_v52 = vadd.f32 %v2527_v53, %v6143_v46 }
 0x569   :  { %v2565_v60 = vadd.f32 %v2564_v13, %v2447_v47 }
 0x56a   :  { %v2602_v28 = vadd.f32 %v2601_v5, %v2448_v10 }
 0x56c   :  { %v6155_v27 = vpop.f32.mrb[104].mxu1 }
 0x56d   :  { %7352 = vst [vmem:[#allocation51_spill] sm:$0xff] %v6155_v27  ;;  %v2449_v48 = vmul.f32 %v6155_v27, %v6155_v27  ;;  %v2492_v43 = vadd.f32 %v2491_v59, %v6155_v27  ;;  %v6160_v53 = vpop.f32.mrb[105].mxu1 }
 0x56e   :  { %7353 = vst [vmem:[#allocation52_spill] sm:$0xff] %v6160_v53  ;;  %v2450_v13 = vmul.f32 %v6160_v53, %v6160_v53  ;;  %v2529_v47 = vadd.f32 %v2528_v52, %v6160_v53  ;;  %v6165_v32 = vpop.f32.mrb[106].mxu1 }
 0x56f   :  { %7354 = vst [vmem:[#allocation53_spill] sm:$0xff] %v6165_v32  ;;  %v2566_v5 = vadd.f32 %v2565_v60, %v2449_v48  ;;  %v2451_v1 = vmul.f32 %v6165_v32, %v6165_v32  ;;  %v2493_v10 = vadd.f32 %v2492_v43, %v6165_v32  ;;  %v6170_v14 = vpop.f32.mrb[107].mxu1 }
 0x570   :  { %7355 = vst [vmem:[#allocation54_spill] sm:$0xff] %v6170_v14  ;;  %v2603_v12 = vadd.f32 %v2602_v28, %v2450_v13  ;;  %v2452_v59 = vmul.f32 %v6170_v14, %v6170_v14  ;;  %v2530_v0 = vadd.f32 %v2529_v47, %v6170_v14 }
 0x571   :  { %v2567_v36 = vadd.f32 %v2566_v5, %v2451_v1 }
 0x572   :  { %v2604_v8 = vadd.f32 %v2603_v12, %v2452_v59 }
 0x574   :  { %v6175_v19 = vpop.f32.mrb[108].mxu1 }
 0x575   :  { %7356 = vst [vmem:[#allocation55_spill] sm:$0xff] %v6175_v19  ;;  %v2453_v52 = vmul.f32 %v6175_v19, %v6175_v19  ;;  %v2494_v60 = vadd.f32 %v2493_v10, %v6175_v19  ;;  %v6180_v48 = vpop.f32.mrb[109].mxu1 }
 0x576   :  { %7357 = vst [vmem:[#allocation56_spill] sm:$0xff] %v6180_v48  ;;  %v2454_v43 = vmul.f32 %v6180_v48, %v6180_v48  ;;  %v2531_v28 = vadd.f32 %v2530_v0, %v6180_v48  ;;  %v6185_v13 = vpop.f32.mrb[110].mxu1 }
 0x577   :  { %7358 = vst [vmem:[#allocation47_spill] sm:$0xff] %v6185_v13  ;;  %v2568_v16 = vadd.f32 %v2567_v36, %v2453_v52  ;;  %v2455_v12 = vmul.f32 %v6185_v13, %v6185_v13  ;;  %v2495_v47 = vadd.f32 %v2494_v60, %v6185_v13  ;;  %v6190_v5 = vpop.f32.mrb[111].mxu1 }
 0x578   :  { %7359 = vst [vmem:[#allocation48_spill] sm:$0xff] %v6190_v5  ;;  %v2605_v1 = vadd.f32 %v2604_v8, %v2454_v43  ;;  %v2456_v10 = vmul.f32 %v6190_v5, %v6190_v5  ;;  %v2532_v59 = vadd.f32 %v2531_v28, %v6190_v5 }
 0x579   :  { %v2569_v34 = vadd.f32 %v2568_v16, %v2455_v12 }
 0x57a   :  { %v2606_v22 = vadd.f32 %v2605_v1, %v2456_v10 }
 0x57c   :  { %v6195_v19 = vpop.f32.mrb[112].mxu1 }
 0x57d   :  { %7360 = vst [vmem:[#allocation17_spill] sm:$0xff] %v6195_v19  ;;  %v2457_v36 = vmul.f32 %v6195_v19, %v6195_v19  ;;  %v2496_v0 = vadd.f32 %v2495_v47, %v6195_v19  ;;  %v6200_v52 = vpop.f32.mrb[113].mxu1 }
 0x57e   :  { %7361 = vst [vmem:[#allocation19_spill] sm:$0xff] %v6200_v52  ;;  %v2458_v60 = vmul.f32 %v6200_v52, %v6200_v52  ;;  %v2533_v8 = vadd.f32 %v2532_v59, %v6200_v52  ;;  %v6205_v43 = vpop.f32.mrb[114].mxu1 }
 0x57f   :  { %7362 = vst [vmem:[#allocation21_spill] sm:$0xff] %v6205_v43  ;;  %v2570_v13 = vadd.f32 %v2569_v34, %v2457_v36  ;;  %v2459_v16 = vmul.f32 %v6205_v43, %v6205_v43  ;;  %v2497_v28 = vadd.f32 %v2496_v0, %v6205_v43  ;;  %v6210_v12 = vpop.f32.mrb[115].mxu1 }
 0x580   :  { %7363 = vst [vmem:[#allocation18_spill] sm:$0xff] %v6210_v12  ;;  %v2607_v1 = vadd.f32 %v2606_v22, %v2458_v60  ;;  %v2460_v47 = vmul.f32 %v6210_v12, %v6210_v12  ;;  %v2534_v10 = vadd.f32 %v2533_v8, %v6210_v12 }
 0x581   :  { %v2571_v19 = vadd.f32 %v2570_v13, %v2459_v16 }
 0x582   :  { %v2608_v5 = vadd.f32 %v2607_v1, %v2460_v47 }
 0x584   :  { %v6215_v48 = vpop.f32.mrb[116].mxu1 }
 0x585   :  { %7364 = vst [vmem:[#allocation20_spill] sm:$0xff] %v6215_v48  ;;  %v2461_v34 = vmul.f32 %v6215_v48, %v6215_v48  ;;  %v2498_v59 = vadd.f32 %v2497_v28, %v6215_v48  ;;  %v6220_v36 = vpop.f32.mrb[117].mxu1 }
 0x586   :  { %7365 = vst [vmem:[#allocation22_spill] sm:$0xff] %v6220_v36  ;;  %v2462_v0 = vmul.f32 %v6220_v36, %v6220_v36  ;;  %v2535_v22 = vadd.f32 %v2534_v10, %v6220_v36  ;;  %v6225_v60 = vpop.f32.mrb[118].mxu1 }
 0x587   :  { %7366 = vst [vmem:[#allocation24_spill] sm:$0xff] %v6225_v60  ;;  %v2572_v43 = vadd.f32 %v2571_v19, %v2461_v34  ;;  %v2463_v13 = vmul.f32 %v6225_v60, %v6225_v60  ;;  %v2499_v8 = vadd.f32 %v2498_v59, %v6225_v60  ;;  %v6230_v16 = vpop.f32.mrb[119].mxu1 }
 0x588   :  { %7367 = vst [vmem:[#allocation26_spill] sm:$0xff] %v6230_v16  ;;  %v2609_v1 = vadd.f32 %v2608_v5, %v2462_v0  ;;  %v2464_v28 = vmul.f32 %v6230_v16, %v6230_v16  ;;  %v2536_v47 = vadd.f32 %v2535_v22, %v6230_v16 }
 0x589   :  { %v2573_v48 = vadd.f32 %v2572_v43, %v2463_v13 }
 0x58a   :  { %v2610_v12 = vadd.f32 %v2609_v1, %v2464_v28 }
 0x58c   :  { %v6235_v52 = vpop.f32.mrb[120].mxu1 }
 0x58d   :  { %7368 = vst [vmem:[#allocation23_spill] sm:$0xff] %v6235_v52  ;;  %v2465_v19 = vmul.f32 %v6235_v52, %v6235_v52  ;;  %v2500_v10 = vadd.f32 %v2499_v8, %v6235_v52  ;;  %v6240_v34 = vpop.f32.mrb[121].mxu1 }
 0x58e   :  { %7369 = vst [vmem:[#allocation25_spill] sm:$0xff] %v6240_v34  ;;  %v2466_v59 = vmul.f32 %v6240_v34, %v6240_v34  ;;  %v2537_v5 = vadd.f32 %v2536_v47, %v6240_v34  ;;  %v6245_v0 = vpop.f32.mrb[122].mxu1 }
 0x58f   :  { %7370 = vst [vmem:[#allocation28_spill] sm:$0xff] %v6245_v0  ;;  %v2574_v60 = vadd.f32 %v2573_v48, %v2465_v19  ;;  %v2467_v43 = vmul.f32 %v6245_v0, %v6245_v0  ;;  %v2501_v22 = vadd.f32 %v2500_v10, %v6245_v0  ;;  %v6250_v13 = vpop.f32.mrb[123].mxu1 }
 0x590   :  { %7371 = vst [vmem:[#allocation16_spill] sm:$0xff] %v6250_v13  ;;  %v2611_v1 = vadd.f32 %v2610_v12, %v2466_v59  ;;  %v2468_v8 = vmul.f32 %v6250_v13, %v6250_v13  ;;  %v2538_v28 = vadd.f32 %v2537_v5, %v6250_v13 }
 0x591   :  { %v2575_v52 = vadd.f32 %v2574_v60, %v2467_v43 }
 0x592   :  { %v2612_v16 = vadd.f32 %v2611_v1, %v2468_v8 }
 0x594   :  { %v6255_v36 = vpop.f32.mrb[124].mxu1 }
 0x595   :  { %7372 = vst [vmem:[#allocation27_spill] sm:$0xff] %v6255_v36  ;;  %v2469_v48 = vmul.f32 %v6255_v36, %v6255_v36  ;;  %v2502_v47 = vadd.f32 %v2501_v22, %v6255_v36  ;;  %v6260_v19 = vpop.f32.mrb[125].mxu1 }
 0x596   :  { %7373 = vst [vmem:[#allocation29_spill] sm:$0xff] %v6260_v19  ;;  %v2470_v10 = vmul.f32 %v6260_v19, %v6260_v19  ;;  %v2539_v12 = vadd.f32 %v2538_v28, %v6260_v19  ;;  %v6265_v59 = vpop.f32.mrb[126].mxu1 }
 0x597   :  { %7374 = vst [vmem:[#allocation57_spill] sm:$0xff] %v6265_v59  ;;  %v2576_v0 = vadd.f32 %v2575_v52, %v2469_v48  ;;  %v2471_v60 = vmul.f32 %v6265_v59, %v6265_v59  ;;  %v2503_v5 = vadd.f32 %v2502_v47, %v6265_v59  ;;  %v2404_v43 = vpop.f32.mrb[127].mxu1 }
 0x598   :  { %v2613_v1 = vadd.f32 %v2612_v16, %v2470_v10  ;;  %v2472_v8 = vmul.f32 %v2404_v43, %v2404_v43  ;;  %v2540_v13 = vadd.f32 %v2539_v12, %v2404_v43 }
 0x599   :  { %v2504_v22 = vrot.slane %v2503_v5, 4  ;;  %v2577_v36 = vadd.f32 %v2576_v0, %v2471_v60 }
 0x59a   :  { %v2541_v34 = vrot.slane %v2540_v13, 4  ;;  %v2614_v14 = vadd.f32 %v2613_v1, %v2472_v8 }
 0x59b   :  { %v2505_v32 = vadd.f32 %v2504_v22, %v2503_v5  ;;  %v2578_v53 = vrot.slane %v2577_v36, 4 }
 0x59c   :  { %v2542_v27 = vadd.f32 %v2541_v34, %v2540_v13  ;;  %v2615_v28 = vrot.slane %v2614_v14, 4 }
 0x59d   :  { %v2506_v19 = vrot.slane %v2505_v32, 2  ;;  %v2579_v46 = vadd.f32 %v2578_v53, %v2577_v36 }
 0x59e   :  { %v2543_v52 = vrot.slane %v2542_v27, 2  ;;  %v2616_v48 = vadd.f32 %v2615_v28, %v2614_v14 }
 0x59f   :  { %v2507_v31 = vadd.f32 %v2506_v19, %v2505_v32  ;;  %v2580_v62 = vrot.slane %v2579_v46, 2 }
 0x5a0   :  { %v2544_v42 = vadd.f32 %v2543_v52, %v2542_v27  ;;  %v2617_v47 = vrot.slane %v2616_v48, 2 }
 0x5a1   :  { %v2508_v59 = vrot.slane %v2507_v31, 1  ;;  %v2581_v16 = vadd.f32 %v2580_v62, %v2579_v46 }
 0x5a2   :  { %v2545_v10 = vrot.slane %v2544_v42, 1  ;;  %v2618_v12 = vadd.f32 %v2617_v47, %v2616_v48 }
 0x5a3   :  { %v2509_v23 = vadd.f32 %v2508_v59, %v2507_v31  ;;  %v2582_v0 = vrot.slane %v2581_v16, 1  ;;  %v7375_v59 = vld [vmem:[#allocation44_spill] sm:$0xff] }
 0x5a4   :  { %v2546_v60 = vadd.f32 %v2545_v10, %v2544_v42  ;;  %v2619_v1 = vrot.slane %v2618_v12, 1 }
 0x5a5   :  { %v2583_v5 = vadd.f32 %v2582_v0, %v2581_v16  ;;  %v2621_v8 = vmul.f32 0.00390625, %v2509_v23  ;;  %v2407_v23 = vld [vmem:[%s7150_s8] sm:$0x3] }
 0x5a6   :  { %v2620_v34 = vadd.f32 %v2619_v1, %v2618_v12  ;;  %v2622_v13 = vmul.f32 0.00390625, %v2546_v60  ;;  %v7376_v12 = vld [vmem:[#allocation46_spill] sm:$0xff] }
 0x5a7   :  { %v2623_v22 = vmul.f32 0.00390625, %v2583_v5  ;;  %v2625_v53 = vmul.f32 %v2621_v8, %v2621_v8 }
 0x5a8   :  { %v2624_v36 = vmul.f32 0.00390625, %v2620_v34  ;;  %v2626_v14 = vmul.f32 %v2622_v13, %v2622_v13 }
 0x5a9   :  { %v2627_v32 = vsub.f32 %v2623_v22, %v2625_v53 }
 0x5aa   :  { %v2628_v19 = vsub.f32 %v2624_v36, %v2626_v14 }
 0x5ab   :  { %v2629_v27 = vmax.f32 %v2627_v32, 0.0 }
 0x5ac   :  { %v2630_v28 = vmax.f32 %v2628_v19, 0.0 }
 0x5ad   :  { %v2631_v52 = vadd.f32 1e-05, %v2629_v27 }
 0x5ae   :  { %v2632_v62 = vadd.f32 1e-05, %v2630_v28 }
 0x5af   :  { %4482 = vrsqrt.f32 %v2631_v52 }
 0x5b0   :  { %4484 = vrsqrt.f32 %v2632_v62  ;;  %v7379_v62 = vld [vmem:[#allocation40_spill] sm:$0xff] }
 0x5b9   :  { %v4483_v31 = vpop.eup %4482 }
 0x5ba   :  { %v4485_v46 = vpop.eup %4484 }
 0x5bb   :  { %v2637_v42 = vcombine.low %v4483_v31, %v4485_v46  ;;  %v7380_v46 = vld [vmem:[#allocation41_spill] sm:$0xff] }
 0x5bd   :  { %v2644_v48 = vrot.slane %v2637_v42, %v7375_v59 }
 0x5bf   :  { %v2651_v47 = vrot.slane %v2644_v48, %v7375_v59  ;;  %v7383_v48 = vld [vmem:[#allocation51_spill] sm:$0xff] }
 0x5c1   :  { %v2653_v16 = vmul.f32 %v2651_v47, %v2407_v23  ;;  %v7384_v47 = vld [vmem:[#allocation52_spill] sm:$0xff] }
 0x5c3   :  { %v6276_v10 = vrot.slane %v2653_v16, %v7336_v40  ;;  %v6279_v0 = vrot.slane %v2653_v16, %v7376_v12 }
 0x5c5   :  { %v2665_v60 = vmul.f32 %v6276_v10, %v2621_v8  ;;  %v2666_v1 = vmul.f32 %v6279_v0, %v2622_v13  ;;  %v2749_v5 = vmul.f32 %v6279_v0, %v2404_v43  ;;  %v6286_v34 = vmul.f32 %v6276_v10, %v5924_v41 }
 0x5c6   :  { %v6290_v22 = vmul.f32 %v6279_v0, %v5926_v54  ;;  %v6294_v53 = vmul.f32 %v6276_v10, %v5928_v18  ;;  %v6298_v36 = vmul.f32 %v6279_v0, %v5936_v50  ;;  %v6302_v8 = vmul.f32 %v6276_v10, %v5944_v17 }
 0x5c7   :  { %v2669_v43 = vcombine.low %v2665_v60, %v2666_v1  ;;  %v6306_v41 = vmul.f32 %v6279_v0, %v5949_v11  ;;  %v6310_v54 = vmul.f32 %v6276_v10, %v5954_v29  ;;  %v6314_v18 = vmul.f32 %v6279_v0, %v5959_v37  ;;  %v7385_v60 = vld [vmem:[#allocation53_spill] sm:$0xff] }
 0x5c8   :  { %v6318_v50 = vmul.f32 %v6276_v10, %v5964_v55  ;;  %v6322_v17 = vmul.f32 %v6279_v0, %v5969_v4  ;;  %v6326_v11 = vmul.f32 %v6276_v10, %v5974_v38  ;;  %v6330_v29 = vmul.f32 %v6279_v0, %v5979_v30  ;;  %v2408_v38 = vld [vmem:[%s7151_s9] sm:$0x3] }
 0x5c9   :  { %v2676_v13 = vrot.slane %v2669_v43, %v7375_v59  ;;  %v6335_v37 = vmul.f32 %v6276_v10, %v5984_v56  ;;  %v6339_v55 = vmul.f32 %v6279_v0, %v5989_v26  ;;  %v6343_v4 = vmul.f32 %v6276_v10, %v5994_v3  ;;  %v7386_v43 = vld [vmem:[#allocation54_spill] sm:$0xff] }
 0x5ca   :  { %v6350_v30 = vmul.f32 %v6279_v0, %v5999_v2  ;;  %v6354_v56 = vmul.f32 %v6276_v10, %v6004_v63  ;;  %v6358_v26 = vmul.f32 %v6279_v0, %v6009_v20  ;;  %v6362_v3 = vmul.f32 %v6276_v10, %v6014_v44 }
 0x5cb   :  { %v2683_v14 = vrot.slane %v2676_v13, %v7375_v59  ;;  %v6367_v32 = vmul.f32 %v6279_v0, %v6019_v57  ;;  %v6371_v2 = vmul.f32 %v6276_v10, %v6024_v9  ;;  %v6375_v63 = vmul.f32 %v6279_v0, %v6029_v7  ;;  %v7387_v13 = vld [vmem:[#allocation55_spill] sm:$0xff] }
 0x5cc   :  { %v6379_v20 = vmul.f32 %v6276_v10, %v6034_v21  ;;  %v6383_v44 = vmul.f32 %v6279_v0, %v6039_v45  ;;  %v6387_v57 = vmul.f32 %v6276_v10, %v6044_v6  ;;  %v6391_v9 = vmul.f32 %v6279_v0, %v6049_v51 }
 0x5cd   :  { %v2685_v19 = vsub.f32 %v2408_v38, %v2683_v14  ;;  %v6395_v7 = vmul.f32 %v6276_v10, %v6054_v58  ;;  %v6399_v21 = vmul.f32 %v6279_v0, %v6059_v15  ;;  %v6403_v45 = vmul.f32 %v6276_v10, %v6064_v61  ;;  %v7388_v14 = vld [vmem:[#allocation56_spill] sm:$0xff] }
 0x5ce   :  { %v6407_v6 = vmul.f32 %v6279_v0, %v6069_v35  ;;  %v6411_v51 = vmul.f32 %v6276_v10, %v6074_v39  ;;  %v6415_v58 = vmul.f32 %v6279_v0, %v6079_v25  ;;  %v6419_v15 = vmul.f32 %v6276_v10, %v6092_v33  ;;  %v7377_v25 = vld [vmem:[#allocation34_spill] sm:$0xff] }
 0x5cf   :  { %v6422_v27 = vrot.slane %v2685_v19, %v7336_v40  ;;  %v6425_v61 = vrot.slane %v2685_v19, %v7376_v12  ;;  %v6429_v35 = vmul.f32 %v6279_v0, %v6099_v24  ;;  %v6433_v39 = vmul.f32 %v6276_v10, %v6105_v49  ;;  %v7378_v33 = vld [vmem:[#allocation38_spill] sm:$0xff]  ;;  %v7398_v12 = vld [vmem:[#allocation20_spill] sm:$0xff] }
 0x5d0   :  { %v6437_v28 = vmul.f32 %v6279_v0, %v7377_v25  ;;  %v6441_v52 = vmul.f32 %v6276_v10, %v7378_v33  ;;  %v6445_v31 = vmul.f32 %v6279_v0, %v7379_v62  ;;  %v6449_v24 = vmul.f32 %v6276_v10, %v7380_v46  ;;  %v7382_v49 = vld [vmem:[#allocation42_spill] sm:$0xff]  ;;  %v7389_v25 = vld [vmem:[#allocation47_spill] sm:$0xff]  ;;  %v7390_v62 = vld [vmem:[#allocation48_spill] sm:$0xff] }
 0x5d1   :  { %v6452_v42 = vadd.f32 %v6425_v61, %v2749_v5  ;;  %v6456_v59 = vmul.f32 %v6279_v0, %v7382_v49  ;;  %v6460_v23 = vmul.f32 %v6276_v10, %v7383_v48  ;;  %v6464_v16 = vmul.f32 %v6279_v0, %v7384_v47  ;;  %v7391_v49 = vld [vmem:[#allocation17_spill] sm:$0xff]  ;;  %v7392_v47 = vld [vmem:[#allocation19_spill] sm:$0xff]  ;;  %v7400_v40 = vld [vmem:[#allocation22_spill] sm:$0xff] }
 0x5d2   :  { %v6468_v1 = vmul.f32 %v6276_v10, %v7385_v60  ;;  %v6472_v5 = vmul.f32 %v6279_v0, %v7386_v43  ;;  %v6476_v38 = vmul.f32 %v6276_v10, %v7387_v13  ;;  %v6480_v19 = vmul.f32 %v6279_v0, %v7388_v14  ;;  %v7394_v43 = vld [vmem:[#allocation21_spill] sm:$0xff]  ;;  %v7396_v14 = vld [vmem:[#allocation18_spill] sm:$0xff] }
 0x5d3   :  { %7381 = vst [vmem:[#allocation44_spill] sm:$0xff] %v6452_v42  ;;  %v6484_v33 = vmul.f32 %v6276_v10, %v7389_v25  ;;  %v6488_v46 = vmul.f32 %v6279_v0, %v7390_v62  ;;  %v6492_v48 = vmul.f32 %v6276_v10, %v7391_v49  ;;  %v6496_v60 = vmul.f32 %v6279_v0, %v7392_v47  ;;  %v7402_v42 = vld [vmem:[#allocation24_spill] sm:$0xff] }
 0x5d4   :  { %v6500_v13 = vmul.f32 %v6276_v10, %v7394_v43  ;;  %v6504_v25 = vmul.f32 %v6279_v0, %v7396_v14  ;;  %v6508_v62 = vmul.f32 %v6276_v10, %v7398_v12  ;;  %v6512_v49 = vmul.f32 %v6279_v0, %v7400_v40 }
 0x5d5   :  { %7393 = vst [vmem:[#allocation34_spill] sm:$0xff] %v6496_v60  ;;  %v6516_v47 = vmul.f32 %v6276_v10, %v7402_v42  ;;  %v7404_v60 = vld [vmem:[#allocation26_spill] sm:$0xff] }
 0x5d6   :  { %7395 = vst [vmem:[#allocation38_spill] sm:$0xff] %v6500_v13  ;;  %7397 = vst [vmem:[#allocation40_spill] sm:$0xff] %v6504_v25  ;;  %v6520_v43 = vmul.f32 %v6279_v0, %v7404_v60  ;;  %v7406_v13 = vld [vmem:[#allocation23_spill] sm:$0xff]  ;;  %v7408_v25 = vld [vmem:[#allocation25_spill] sm:$0xff] }
 0x5d7   :  { %7399 = vst [vmem:[#allocation41_spill] sm:$0xff] %v6508_v62  ;;  %7401 = vst [vmem:[#allocation42_spill] sm:$0xff] %v6512_v49  ;;  %v6524_v14 = vmul.f32 %v6276_v10, %v7406_v13  ;;  %v6528_v12 = vmul.f32 %v6279_v0, %v7408_v25  ;;  %v7409_v62 = vld [vmem:[#allocation28_spill] sm:$0xff] }
 0x5d8   :  { %7403 = vst [vmem:[#allocation51_spill] sm:$0xff] %v6516_v47  ;;  %7405 = vst [vmem:[#allocation52_spill] sm:$0xff] %v6520_v43  ;;  %v6532_v40 = vmul.f32 %v6276_v10, %v7409_v62  ;;  %v7410_v49 = vld [vmem:[#allocation16_spill] sm:$0xff]  ;;  %v7411_v47 = vld [vmem:[#allocation27_spill] sm:$0xff]  ;;  %v6552_v62 = vadd.f32 %v6422_v27, %v6286_v34  ;;  %v6572_v34 = vadd.f32 %v6425_v61, %v6306_v41 }
 0x5d9   :  { %7407 = vst [vmem:[#allocation53_spill] sm:$0xff] %v6524_v14  ;;  %v6536_v42 = vmul.f32 %v6279_v0, %v7410_v49  ;;  %v6540_v60 = vmul.f32 %v6276_v10, %v7411_v47  ;;  %v7412_v43 = vld [vmem:[#allocation29_spill] sm:$0xff]  ;;  %v6556_v49 = vadd.f32 %v6425_v61, %v6290_v22  ;;  %v6560_v47 = vadd.f32 %v6422_v27, %v6294_v53 }
 0x5da   :  { %v6544_v13 = vmul.f32 %v6279_v0, %v7412_v43  ;;  %v7413_v14 = vld [vmem:[#allocation57_spill] sm:$0xff]  ;;  %v6564_v0 = vadd.f32 %v6425_v61, %v6298_v36  ;;  %v6576_v22 = vadd.f32 %v6422_v27, %v6310_v54  ;;  %v6580_v53 = vadd.f32 %v6425_v61, %v6314_v18 }
 0x5db   :  { %v6548_v25 = vmul.f32 %v6276_v10, %v7413_v14  ;;  %v6568_v10 = vadd.f32 %v6422_v27, %v6302_v8  ;;  %v6584_v36 = vadd.f32 %v6422_v27, %v6318_v50  ;;  %v6588_v8 = vadd.f32 %v6425_v61, %v6322_v17 }
 0x5dc   :  { %v6592_v41 = vadd.f32 %v6422_v27, %v6326_v11  ;;  %v6596_v54 = vadd.f32 %v6425_v61, %v6330_v29  ;;  %v6600_v18 = vadd.f32 %v6422_v27, %v6335_v37  ;;  %v6604_v50 = vadd.f32 %v6425_v61, %v6339_v55  ;;  %v7418_v43 = vld [vmem:[#allocation34_spill] sm:$0xff] }
 0x5dd   :  { %v6608_v17 = vadd.f32 %v6422_v27, %v6343_v4  ;;  %v6612_v11 = vadd.f32 %v6425_v61, %v6350_v30  ;;  %v6616_v29 = vadd.f32 %v6422_v27, %v6354_v56  ;;  %v6620_v37 = vadd.f32 %v6425_v61, %v6358_v26  ;;  %v7420_v14 = vld [vmem:[#allocation38_spill] sm:$0xff] }
 0x5de   :  { %v6624_v55 = vadd.f32 %v6422_v27, %v6362_v3  ;;  %v6628_v4 = vadd.f32 %v6425_v61, %v6367_v32  ;;  %v6632_v30 = vadd.f32 %v6422_v27, %v6371_v2  ;;  %v6636_v56 = vadd.f32 %v6425_v61, %v6375_v63 }
 0x5df   :  { %v6640_v26 = vadd.f32 %v6422_v27, %v6379_v20  ;;  %v6644_v3 = vadd.f32 %v6425_v61, %v6383_v44  ;;  %v6648_v32 = vadd.f32 %v6422_v27, %v6387_v57  ;;  %v6652_v2 = vadd.f32 %v6425_v61, %v6391_v9 }
 0x5e0   :  { %v6656_v63 = vadd.f32 %v6422_v27, %v6395_v7  ;;  %v6660_v20 = vadd.f32 %v6425_v61, %v6399_v21  ;;  %v6664_v44 = vadd.f32 %v6422_v27, %v6403_v45  ;;  %v6668_v57 = vadd.f32 %v6425_v61, %v6407_v6 }
 0x5e1   :  { %v6672_v9 = vadd.f32 %v6422_v27, %v6411_v51  ;;  %v6676_v7 = vadd.f32 %v6425_v61, %v6415_v58  ;;  %v6680_v21 = vadd.f32 %v6422_v27, %v6419_v15  ;;  %v6684_v45 = vadd.f32 %v6425_v61, %v6429_v35 }
 0x5e2   :  { %v6688_v6 = vadd.f32 %v6422_v27, %v6433_v39  ;;  %v6692_v51 = vadd.f32 %v6425_v61, %v6437_v28  ;;  %v6696_v58 = vadd.f32 %v6422_v27, %v6441_v52  ;;  %v6700_v15 = vadd.f32 %v6425_v61, %v6445_v31 }
 0x5e3   :  { %v6704_v35 = vadd.f32 %v6422_v27, %v6449_v24  ;;  %v6708_v39 = vadd.f32 %v6425_v61, %v6456_v59  ;;  %v6712_v28 = vadd.f32 %v6422_v27, %v6460_v23  ;;  %v6716_v52 = vadd.f32 %v6425_v61, %v6464_v16 }
 0x5e4   :  { %v6720_v31 = vadd.f32 %v6422_v27, %v6468_v1  ;;  %v6724_v24 = vadd.f32 %v6425_v61, %v6472_v5  ;;  %v6728_v59 = vadd.f32 %v6422_v27, %v6476_v38  ;;  %v6732_v23 = vadd.f32 %v6425_v61, %v6480_v19 }
 0x5e5   :  { %v6736_v16 = vadd.f32 %v6422_v27, %v6484_v33  ;;  %v6740_v1 = vadd.f32 %v6425_v61, %v6488_v46  ;;  %v6744_v5 = vadd.f32 %v6422_v27, %v6492_v48  ;;  %v6748_v38 = vadd.f32 %v6425_v61, %v7418_v43 }
 0x5e6   :  { %7414 = vst [vmem:[#allocation54_spill] sm:$0xff] %v6728_v59  ;;  %v6752_v19 = vadd.f32 %v6422_v27, %v7420_v14  ;;  %v7422_v59 = vld [vmem:[#allocation40_spill] sm:$0xff] }
 0x5e7   :  { %7415 = vst [vmem:[#allocation55_spill] sm:$0xff] %v6736_v16  ;;  %7416 = vst [vmem:[#allocation56_spill] sm:$0xff] %v6740_v1  ;;  %v6756_v33 = vadd.f32 %v6425_v61, %v7422_v59  ;;  %v7423_v16 = vld [vmem:[#allocation41_spill] sm:$0xff]  ;;  %v7424_v1 = vld [vmem:[#allocation42_spill] sm:$0xff] }
 0x5e8   :  { %7417 = vst [vmem:[#allocation47_spill] sm:$0xff] %v6744_v5  ;;  %7419 = vst [vmem:[#allocation48_spill] sm:$0xff] %v6748_v38  ;;  %v6760_v46 = vadd.f32 %v6422_v27, %v7423_v16  ;;  %v6764_v48 = vadd.f32 %v6425_v61, %v7424_v1  ;;  %v7425_v5 = vld [vmem:[#allocation51_spill] sm:$0xff]  ;;  %v7426_v38 = vld [vmem:[#allocation52_spill] sm:$0xff]  ;;  %v6780_v16 = vadd.f32 %v6425_v61, %v6528_v12 }
 0x5e9   :  { %7421 = vst [vmem:[#allocation17_spill] sm:$0xff] %v6752_v19  ;;  %v6768_v43 = vadd.f32 %v6422_v27, %v7425_v5  ;;  %v6772_v14 = vadd.f32 %v6425_v61, %v7426_v38  ;;  %v7427_v19 = vld [vmem:[#allocation53_spill] sm:$0xff]  ;;  %v6784_v1 = vadd.f32 %v6422_v27, %v6532_v40  ;;  %v6788_v5 = vadd.f32 %v6425_v61, %v6536_v42 }
 0x5ea   :  { %v6776_v59 = vadd.f32 %v6422_v27, %v7427_v19  ;;  %v6792_v38 = vadd.f32 %v6422_v27, %v6540_v60  ;;  %v6796_v19 = vadd.f32 %v6425_v61, %v6544_v13  ;;  %v6800_v12 = vadd.f32 %v6422_v27, %v6548_v25 }
 0x5eb   :  { %7429 = vst [vmem:[#allocation21_spill] sm:$0xff] %v6784_v1  ;;  %7430 = vst [vmem:[#allocation18_spill] sm:$0xff] %v6788_v5  ;;  %v2827_v40 = vmax.f32 %v6560_v47, 0.0  ;;  %v2826_v1 = vmax.f32 %v6556_v49, 0.0  ;;  %v2828_v42 = vmax.f32 %v6564_v0, 0.0  ;;  %v2830_v5 = vmax.f32 %v6572_v34, 0.0 }
 0x5ec   :  { %7428 = vst [vmem:[#allocation19_spill] sm:$0xff] %v6776_v59  ;;  %7431 = vst [vmem:[#allocation20_spill] sm:$0xff] %v6792_v38  ;;  %v2825_v59 = vmax.f32 %v6552_v62, 0.0  ;;  %v2832_v60 = vmax.f32 %v6580_v53, 0.0  ;;  %v2829_v38 = vmax.f32 %v6568_v10, 0.0  ;;  %v2831_v61 = vmax.f32 %v6576_v22, 0.0 }
 0x5ed   :  { %7432 = vst [vmem:[#allocation22_spill] sm:$0xff] %v6796_v19  ;;  %v2890_v19 = vpack.c.bf16 %v2828_v42, %v2826_v1  ;;  %v2834_v27 = vmax.f32 %v6588_v8, 0.0  ;;  %v2836_v25 = vmax.f32 %v6596_v54, 0.0  ;;  %v2833_v49 = vmax.f32 %v6584_v36, 0.0 }
 0x5ee   :  { %v2889_v13 = vpack.c.bf16 %v2827_v40, %v2825_v59  ;;  %v2892_v62 = vpack.c.bf16 %v2832_v60, %v2830_v5  ;;  %v2891_v47 = vpack.c.bf16 %v2831_v61, %v2829_v38  ;;  %v2835_v0 = vmax.f32 %v6592_v41, 0.0  ;;  %v4486_v41 = vld [vmem:[#allocation10 + $0x8] ss:$16 sps:$4 sm:$0xff]   ;;  %v4487_v5 = vld [vmem:[#allocation10 + $0x2c] ss:$16 sps:$4 sm:$0xff]  }
 0x5ef   :  { %3359 = vmatprep.mubr.bf16.mxu1 %v2890_v19  ;;  %3552 = vmatprep.mubr.bf16.mxu0 %v2890_v19  ;;  %v2894_v34 = vpack.c.bf16 %v2836_v25, %v2834_v27  ;;  %v2838_v53 = vmax.f32 %v6604_v50, 0.0  ;;  %v2840_v10 = vmax.f32 %v6612_v11, 0.0  ;;  %v2837_v22 = vmax.f32 %v6600_v18, 0.0  ;;  %v4489_v27 = vld [vmem:[#allocation10 + $0x4c] ss:$16 sps:$4 sm:$0xff]  }
 0x5f0   :  { %3360 = vmatmul.mubr.bf16.vlgmr.msra.gmra.mrb[128].mxu1 %v2889_v13  ;;  %3553 = vmatmul.mubr.bf16.vlgmr.msra.gmra.mrb[64].mxu0 %v2889_v13  ;;  %v6817_v8 = vpack.c.bf16 %v2835_v0, %v2833_v49  ;;  %v2839_v54 = vmax.f32 %v6608_v17, 0.0  ;;  %v2842_v59 = vmax.f32 %v6620_v37, 0.0  ;;  %v2844_v36 = vmax.f32 %v6628_v4, 0.0  ;;  %v4488_v13 = vld [vmem:[#allocation10 + $0x28] ss:$16 sps:$4 sm:$0xff]  }
 0x5f1   :  { %3369 = vmatprep.mubr.bf16.mxu1 %v2892_v62  ;;  %4148 = vmatpush1.bf16.msra.mxu1 %v4486_v41  ;;  %v6822_v1 = vpack.c.bf16 %v2840_v10, %v2838_v53  ;;  %v2841_v50 = vmax.f32 %v6616_v29, 0.0  ;;  %v2843_v11 = vmax.f32 %v6624_v55, 0.0  ;;  %v2846_v18 = vmax.f32 %v6636_v56, 0.0  ;;  %v4490_v53 = vld [vmem:[#allocation10 + $0x48] ss:$16 sps:$4 sm:$0xff]  }
 0x5f2   :  { %3562 = vmatprep.mubr.bf16.mxu0 %v2892_v62  ;;  %4133 = vmatprep.subr.bf16.mxu1 %v4487_v5  ;;  %v6827_v38 = vpack.c.bf16 %v2839_v54, %v2837_v22  ;;  %v6829_v17 = vpack.c.bf16 %v2844_v36, %v2842_v59  ;;  %v2848_v37 = vmax.f32 %v6644_v3, 0.0  ;;  %v2845_v4 = vmax.f32 %v6632_v30, 0.0  ;;  %v4491_v22 = vld [vmem:[#allocation10 + $0x6c] ss:$16 sps:$4 sm:$0xff]   ;;  %v7434_v59 = vld [vmem:[#allocation54_spill] sm:$0xff] }
 0x5f3   :  { %v6833_v19 = vpack.c.bf16 %v2843_v11, %v2841_v50  ;;  %v2847_v40 = vmax.f32 %v6640_v26, 0.0  ;;  %v2850_v29 = vmax.f32 %v6652_v2, 0.0  ;;  %v2852_v55 = vmax.f32 %v6660_v20, 0.0  ;;  %v7435_v41 = vld [vmem:[#allocation55_spill] sm:$0xff]  ;;  %v7436_v11 = vld [vmem:[#allocation48_spill] sm:$0xff] }
 0x5f4   :  { %v6838_v56 = vpack.c.bf16 %v2848_v37, %v2846_v18  ;;  %v2849_v42 = vmax.f32 %v6648_v32, 0.0  ;;  %v2851_v60 = vmax.f32 %v6656_v63, 0.0  ;;  %v2854_v61 = vmax.f32 %v6668_v57, 0.0  ;;  %v7438_v37 = vld [vmem:[#allocation17_spill] sm:$0xff] }
 0x5f5   :  { %4149 = vmatpush1.bf16.msra.mxu1 %v4488_v13  ;;  %v6843_v3 = vpack.c.bf16 %v2847_v40, %v2845_v4  ;;  %v6845_v30 = vpack.c.bf16 %v2852_v55, %v2850_v29  ;;  %v2856_v26 = vmax.f32 %v6676_v7, 0.0  ;;  %v2853_v2 = vmax.f32 %v6664_v44, 0.0  ;;  %v4492_v29 = vld [vmem:[#allocation10 + $0x68] ss:$16 sps:$4 sm:$0xff]   ;;  %v4493_v13 = vld [vmem:[#allocation10 + $0x8c] ss:$16 sps:$4 sm:$0xff]  }
 0x5f6   :  { %4134 = vmatprep.subr.bf16.mxu1 %v4489_v27  ;;  %v6849_v20 = vpack.c.bf16 %v2851_v60, %v2849_v42  ;;  %v2855_v32 = vmax.f32 %v6672_v9, 0.0  ;;  %v2858_v63 = vmax.f32 %v6684_v45, 0.0  ;;  %v2860_v57 = vmax.f32 %v6692_v51, 0.0  ;;  %v7439_v27 = vld [vmem:[#allocation18_spill] sm:$0xff] }
 0x5f7   :  { %v6854_v25 = vpack.c.bf16 %v2856_v26, %v2854_v61  ;;  %v2857_v62 = vmax.f32 %v6680_v21, 0.0  ;;  %v2859_v49 = vmax.f32 %v6688_v6, 0.0  ;;  %v2862_v7 = vmax.f32 %v6700_v15, 0.0 }
 0x5f8   :  { %3370 = vmatmul.mubr.bf16.gmra.mrb[132].mxu1 %v2891_v47  ;;  %3563 = vmatmul.mubr.bf16.gmra.mrb[68].mxu0 %v2891_v47  ;;  %v6859_v44 = vpack.c.bf16 %v2855_v32, %v2853_v2  ;;  %v6861_v0 = vpack.c.bf16 %v2860_v57, %v2858_v63  ;;  %v2864_v9 = vmax.f32 %v6708_v39, 0.0  ;;  %v2861_v45 = vmax.f32 %v6696_v58, 0.0  ;;  %v7440_v63 = vld [vmem:[#allocation19_spill] sm:$0xff]  ;;  %v7441_v57 = vld [vmem:[#allocation21_spill] sm:$0xff] }
 0x5f9   :  { %3379 = vmatprep.mubr.bf16.mxu1 %v2894_v34  ;;  %3572 = vmatprep.mubr.bf16.mxu0 %v2894_v34  ;;  %v6865_v51 = vpack.c.bf16 %v2859_v49, %v2857_v62  ;;  %v2863_v21 = vmax.f32 %v6704_v35, 0.0  ;;  %v2866_v6 = vmax.f32 %v6716_v52, 0.0  ;;  %v2868_v15 = vmax.f32 %v6724_v24, 0.0  ;;  %v7433_v35 = vld [vmem:[#allocation56_spill] sm:$0xff]  ;;  %v7442_v62 = vld [vmem:[#allocation22_spill] sm:$0xff] }
 0x5fa   :  { %4150 = vmatpush1.bf16.msra.mxu1 %v4490_v53  ;;  %v6870_v47 = vpack.c.bf16 %v2864_v9, %v2862_v7  ;;  %v2865_v10 = vmax.f32 %v6712_v28, 0.0  ;;  %v2867_v39 = vmax.f32 %v6720_v31, 0.0  ;;  %v2870_v58 = vmax.f32 %v6732_v23, 0.0  ;;  %v7437_v23 = vld [vmem:[#allocation47_spill] sm:$0xff]  ;;  %v7443_v7 = vld [vmem:[#allocation44_spill] sm:$0xff] }
 0x5fb   :  { %4135 = vmatprep.subr.bf16.mxu1 %v4491_v22  ;;  %v6875_v34 = vpack.c.bf16 %v2863_v21, %v2861_v45  ;;  %v6877_v54 = vpack.c.bf16 %v2868_v15, %v2866_v6  ;;  %v2872_v52 = vmax.f32 %v7433_v35, 0.0  ;;  %v2869_v24 = vmax.f32 %v7434_v59, 0.0  ;;  %v7444_v45 = vld [vmem:[#allocation20_spill] sm:$0xff]  ;;  %v4494_v21 = vld [vmem:[#allocation10 + $0x88] ss:$16 sps:$4 sm:$0xff]  }
 0x5fc   :  { %v6881_v36 = vpack.c.bf16 %v2867_v39, %v2865_v10  ;;  %v2871_v50 = vmax.f32 %v7435_v41, 0.0  ;;  %v2874_v28 = vmax.f32 %v7436_v11, 0.0  ;;  %v2876_v31 = vmax.f32 %v6756_v33, 0.0  ;;  %v4495_v53 = vld [vmem:[#allocation10 + $0xac] ss:$16 sps:$4 sm:$0xff]   ;;  %v7445_v41 = vld [vmem:[#allocation30_spill] sm:$0xff] }
 0x5fd   :  { %v6886_v18 = vpack.c.bf16 %v2872_v52, %v2870_v58  ;;  %v2873_v5 = vmax.f32 %v7437_v23, 0.0  ;;  %v2875_v4 = vmax.f32 %v7438_v37, 0.0  ;;  %v2878_v40 = vmax.f32 %v6764_v48, 0.0  ;;  %v4497_v58 = vld [vmem:[#allocation10 + $0xcc] ss:$16 sps:$4 sm:$0xff]  }
 0x5fe   :  { %4151 = vmatpush1.bf16.msra.mxu1 %v4492_v29  ;;  %v6891_v55 = vpack.c.bf16 %v2871_v50, %v2869_v24  ;;  %v6893_v42 = vpack.c.bf16 %v2876_v31, %v2874_v28  ;;  %v2880_v60 = vmax.f32 %v6772_v14, 0.0  ;;  %v2877_v61 = vmax.f32 %v6760_v46, 0.0  ;;  %v4498_v22 = vld [vmem:[#allocation10 + $0xc8] ss:$16 sps:$4 sm:$0xff]   ;;  %v4501_v52 = vld [vmem:[#allocation10 + $0x10c] ss:$16 sps:$4 sm:$0xff]  }
 0x5ff   :  { %4136 = vmatprep.subr.bf16.mxu1 %v4493_v13  ;;  %v6897_v33 = vpack.c.bf16 %v2875_v4, %v2873_v5  ;;  %v2879_v26 = vmax.f32 %v6768_v43, 0.0  ;;  %v2882_v2 = vmax.f32 %v6780_v16, 0.0  ;;  %v2884_v48 = vmax.f32 %v7439_v27, 0.0  ;;  %v4500_v35 = vld [vmem:[#allocation10 + $0xe8] ss:$16 sps:$4 sm:$0xff]   ;;  %v7447_v50 = vld [vmem:[#allocation32_spill] sm:$0xff] }
 0x600   :  { %3380 = vmatmul.mubr.bf16.gmra.mrb[136].mxu1 %v6817_v8  ;;  %3573 = vmatmul.mubr.bf16.gmra.mrb[72].mxu0 %v6817_v8  ;;  %v6904_v32 = vpack.c.bf16 %v2880_v60, %v2878_v40  ;;  %v2881_v14 = vmax.f32 %v7440_v63, 0.0  ;;  %v2883_v46 = vmax.f32 %v7441_v57, 0.0  ;;  %v2886_v49 = vmax.f32 %v7442_v62, 0.0  ;;  %v4503_v59 = vld [vmem:[#allocation10 + $0x12c] ss:$16 sps:$4 sm:$0xff]  }
 0x601   :  { %3389 = vmatprep.mubr.bf16.mxu1 %v6822_v1  ;;  %3582 = vmatprep.mubr.bf16.mxu0 %v6822_v1  ;;  %v6911_v43 = vpack.c.bf16 %v2879_v26, %v2877_v61  ;;  %v6913_v16 = vpack.c.bf16 %v2884_v48, %v2882_v2  ;;  %v2888_v9 = vmax.f32 %v7443_v7, 0.0  ;;  %v2885_v8 = vmax.f32 %v7444_v45, 0.0  ;;  %v4496_v1 = vld [vmem:[#allocation10 + $0xa8] ss:$16 sps:$4 sm:$0xff]   ;;  %v4505_v24 = vld [vmem:[#allocation10 + $0x14c] ss:$16 sps:$4 sm:$0xff]  }
 0x602   :  { %4152 = vmatpush1.bf16.msra.mxu1 %v4494_v21  ;;  %v6917_v6 = vpack.c.bf16 %v2883_v46, %v2881_v14  ;;  %v2887_v15 = vmax.f32 %v6800_v12, 0.0  ;;  %v4499_v12 = vld [vmem:[#allocation10 + $0xec] ss:$16 sps:$4 sm:$0xff]  }
 0x603   :  { %4137 = vmatprep.subr.bf16.mxu1 %v4495_v53  ;;  %v6920_v10 = vpack.c.bf16 %v2888_v9, %v2886_v49  ;;  %v7449_v11 = vld [vmem:[#allocation35_spill] sm:$0xff]  ;;  %v7451_v28 = vld [vmem:[#allocation37_spill] sm:$0xff] }
 0x604   :  { %v6922_v39 = vpack.c.bf16 %v2887_v15, %v2885_v8  ;;  %v7453_v31 = vld [vmem:[#allocation49_spill] sm:$0xff] }
 0x606   :  { %4153 = vmatpush1.bf16.msra.mxu1 %v4496_v1 }
 0x607   :  { %4138 = vmatprep.subr.bf16.mxu1 %v4497_v58 }
 0x608   :  { %3390 = vmatmul.mubr.bf16.gmra.mrb[140].mxu1 %v6827_v38  ;;  %3583 = vmatmul.mubr.bf16.gmra.mrb[76].mxu0 %v6827_v38  ;;  %v4502_v38 = vld [vmem:[#allocation10 + $0x108] ss:$16 sps:$4 sm:$0xff]  }
 0x609   :  { %3399 = vmatprep.mubr.bf16.mxu1 %v6829_v17  ;;  %3592 = vmatprep.mubr.bf16.mxu0 %v6829_v17  ;;  %v4504_v17 = vld [vmem:[#allocation10 + $0x128] ss:$16 sps:$4 sm:$0xff]  }
 0x60a   :  { %4154 = vmatpush1.bf16.msra.mxu1 %v4498_v22 }
 0x60b   :  { %4139 = vmatprep.subr.bf16.mxu1 %v4499_v12 }
 0x60e   :  { %4155 = vmatpush1.bf16.msra.mxu1 %v4500_v35 }
 0x60f   :  { %4140 = vmatprep.subr.bf16.mxu1 %v4501_v52 }
 0x610   :  { %3400 = vmatmul.mubr.bf16.gmra.mrb[144].mxu1 %v6833_v19  ;;  %3593 = vmatmul.mubr.bf16.gmra.mrb[80].mxu0 %v6833_v19  ;;  %v4506_v19 = vld [vmem:[#allocation10 + $0x148] ss:$16 sps:$4 sm:$0xff]  }
 0x611   :  { %3409 = vmatprep.mubr.bf16.mxu1 %v6838_v56  ;;  %3602 = vmatprep.mubr.bf16.mxu0 %v6838_v56  ;;  %v7446_v56 = vld [vmem:[#allocation31_spill] sm:$0xff] }
 0x612   :  { %4156 = vmatpush1.bf16.msra.mxu1 %v4502_v38 }
 0x613   :  { %4141 = vmatprep.subr.bf16.mxu1 %v4503_v59 }
 0x616   :  { %4157 = vmatpush1.bf16.msra.mxu1 %v4504_v17 }
 0x617   :  { %4142 = vmatprep.subr.bf16.mxu1 %v4505_v24 }
 0x618   :  { %3410 = vmatmul.mubr.bf16.gmra.mrb[148].mxu1 %v6843_v3  ;;  %3603 = vmatmul.mubr.bf16.gmra.mrb[84].mxu0 %v6843_v3  ;;  %v7448_v3 = vld [vmem:[#allocation33_spill] sm:$0xff] }
 0x619   :  { %3419 = vmatprep.mubr.bf16.mxu1 %v6845_v30  ;;  %3612 = vmatprep.mubr.bf16.mxu0 %v6845_v30  ;;  %v7450_v30 = vld [vmem:[#allocation36_spill] sm:$0xff] }
 0x61a   :  { %4158 = vmatpush1.bf16.msra.mxu1 %v4506_v19 }
 0x61b   :  { %4143 = vmatprep.subr.bf16.mxu1 %v7445_v41 }
 0x61e   :  { %4159 = vmatpush1.bf16.msra.mxu1 %v7446_v56 }
 0x61f   :  { %4144 = vmatprep.subr.bf16.mxu1 %v7447_v50 }
 0x620   :  { %3420 = vmatmul.mubr.bf16.gmra.mrb[152].mxu1 %v6849_v20  ;;  %3613 = vmatmul.mubr.bf16.gmra.mrb[88].mxu0 %v6849_v20  ;;  %v7452_v20 = vld [vmem:[#allocation39_spill] sm:$0xff] }
 0x621   :  { %3429 = vmatprep.mubr.bf16.mxu1 %v6854_v25  ;;  %3622 = vmatprep.mubr.bf16.mxu0 %v6854_v25  ;;  %v7454_v25 = vld [vmem:[#allocation50_spill] sm:$0xff] }
 0x622   :  { %4160 = vmatpush1.bf16.msra.mxu1 %v7448_v3 }
 0x623   :  { %4145 = vmatprep.subr.bf16.mxu1 %v7449_v11 }
 0x626   :  { %4161 = vmatpush1.bf16.msra.mxu1 %v7450_v30 }
 0x627   :  { %4146 = vmatprep.subr.bf16.mxu1 %v7451_v28 }
 0x628   :  { %3430 = vmatmul.mubr.bf16.gmra.mrb[156].mxu1 %v6859_v44  ;;  %3623 = vmatmul.mubr.bf16.gmra.mrb[92].mxu0 %v6859_v44  ;;  %v7455_v44 = vld [vmem:[#allocation43_spill] sm:$0xff] }
 0x629   :  { %3439 = vmatprep.mubr.bf16.mxu1 %v6861_v0  ;;  %3632 = vmatprep.mubr.bf16.mxu0 %v6861_v0  ;;  %v2997_v0 = vsub.s32 2, %v7455_v44 }
 0x62a   :  { %4162 = vmatpush1.bf16.msra.mxu1 %v7452_v20 }
 0x62b   :  { %4147 = vmatprep.subr.bf16.mxu1 %v7453_v31 }
 0x62e   :  { %4163 = vmatpush1.bf16.msra.mxu1 %v7454_v25 }
 0x630   :  { %3440 = vmatmul.mubr.bf16.gmra.mrb[160].mxu1 %v6865_v51  ;;  %3633 = vmatmul.mubr.bf16.gmra.mrb[96].mxu0 %v6865_v51  ;;  %v2985_v51 = vld [vmem:[%s7153_s11] sm:$0xf]  ;;  %s4662_s11 = smov [#allocation11]  }
 0x631   :  { %3449 = vmatprep.mubr.bf16.mxu1 %v6870_v47  ;;  %3642 = vmatprep.mubr.bf16.mxu0 %v6870_v47  ;;  %v3001_v47 = vsub.s32 3, %v7455_v44  ;;  %s3846_s23 = sshll.u32 %s4662_s11, 4  ;;  %s3847_s23 = int_to_ptr.vmem [resolvable:$true] %s3846_s23 }
 0x632   :  { %s4617_s24 = scalar_lea.vmem %s3847_s23, 16384  ;;  %p4622_p13 = scmp.lt.s32.totalorder %s3847_s23, %s3847_s23 }
 0x633   :  { %v6997_v5 = vrot.slane %v2985_v51, %v3001_v47  ;;  %p4618_p12 = scmp.ne.s32.totalorder %s3847_s23, %s4617_s24  ;;  %p4623_p0 = scmp.lt.s32.totalorder %s4617_s24, %s4617_s24 }
 0x635   :  { %p4624_p1 = por %p4623_p0, %p4622_p13 }
 0x637   :  { %p4625_p2 = pnand %p4624_p1, %p4618_p12 }
 0x638   :  { %3450 = vmatmul.mubr.bf16.gmra.mrb[164].mxu1 %v6875_v34  ;;  %3643 = vmatmul.mubr.bf16.gmra.mrb[100].mxu0 %v6875_v34  ;;  %v7456_v34 = vld [vmem:[#allocation45_spill] sm:$0xff] }
 0x639   :  { %3459 = vmatprep.mubr.bf16.mxu1 %v6877_v54  ;;  %3652 = vmatprep.mubr.bf16.mxu0 %v6877_v54  ;;  %v6990_v54 = vrot.slane %v2985_v51, %v7456_v34 }
 0x640   :  { %3460 = vmatmul.mubr.bf16.gmra.mrb[168].mxu1 %v6881_v36  ;;  %3653 = vmatmul.mubr.bf16.gmra.mrb[104].mxu0 %v6881_v36  ;;  %v6992_v36 = vrot.slane %v2985_v51, %v2997_v0 }
 0x641   :  { %3469 = vmatprep.mubr.bf16.mxu1 %v6886_v18  ;;  %3662 = vmatprep.mubr.bf16.mxu0 %v6886_v18  ;;  %v7457_v18 = vld [vmem:[#allocation46_spill] sm:$0xff] }
 0x642   :  { %v6995_v23 = vrot.slane %v2985_v51, %v7457_v18 }
 0x648   :  { %3470 = vmatmul.mubr.bf16.gmra.mrb[172].mxu1 %v6891_v55  ;;  %3663 = vmatmul.mubr.bf16.gmra.mrb[108].mxu0 %v6891_v55 }
 0x649   :  { %3479 = vmatprep.mubr.bf16.mxu1 %v6893_v42  ;;  %3672 = vmatprep.mubr.bf16.mxu0 %v6893_v42 }
 0x650   :  { %3480 = vmatmul.mubr.bf16.gmra.mrb[176].mxu1 %v6897_v33  ;;  %3673 = vmatmul.mubr.bf16.gmra.mrb[112].mxu0 %v6897_v33 }
 0x651   :  { %3489 = vmatprep.mubr.bf16.mxu1 %v6904_v32  ;;  %3682 = vmatprep.mubr.bf16.mxu0 %v6904_v32 }
 0x658   :  { %3490 = vmatmul.mubr.bf16.gmra.mrb[180].mxu1 %v6911_v43  ;;  %3683 = vmatmul.mubr.bf16.gmra.mrb[116].mxu0 %v6911_v43 }
 0x659   :  { %3499 = vmatprep.mubr.bf16.mxu1 %v6913_v16 }
 0x660   :  { %3500 = vmatmul.mubr.bf16.gmra.mrb[184].mxu1 %v6917_v6 }
 0x661   :  { %3509 = vmatprep.mubr.bf16.mxu1 %v6920_v10 }
 0x668   :  { %3510 = vmatmul.mubr.bf16.gmra.mrb[188].mxu1 %v6922_v39 }
 0x669   :  { %3692 = vmatprep.mubr.bf16.mxu1 %v6913_v16 }
 0x670   :  { %3693 = vmatmul.mubr.bf16.vlgmr.msra.gmra.mrb[192].mxu1 %v6917_v6 }
 0x671   :  { %3702 = vmatprep.mubr.bf16.mxu1 %v6920_v10 }
 0x678   :  { %3703 = vmatmul.mubr.bf16.gmra.mrb[196].mxu1 %v6922_v39 }
 0x6c3   :  { %v3361_v37 = vpop.f32.mrb[128].mxu1  ;;  %v3554_v4 = vpop.f32.mrb[64].mxu0 }
 0x6c4   :  { %v3362_v40 = vadd.f32 %v3361_v37, %v6990_v54  ;;  %v3555_v29 = vadd.f32 %v3554_v4, %v6992_v36  ;;  %v3363_v55 = vpop.f32.mrb[129].mxu1  ;;  %v3556_v42 = vpop.f32.mrb[65].mxu0 }
 0x6c5   :  { %v3364_v60 = vadd.f32 %v3363_v55, %v6995_v23  ;;  %v3557_v61 = vadd.f32 %v3556_v42, %v6997_v5  ;;  %v3365_v13 = vpop.f32.mrb[130].mxu1  ;;  %v3558_v33 = vpop.f32.mrb[66].mxu0 }
 0x6c6   :  { %3713 = vst [vmem:[#allocation11] sm:$0xff] %v3362_v40  ;;  %3715 = vst [vmem:[#allocation11 + $0x10] sm:$0xff] %v3555_v29  ;;  %v3366_v26 = vadd.f32 %v3365_v13, %v6990_v54  ;;  %v3559_v2 = vadd.f32 %v3558_v33, %v6992_v36  ;;  %v3367_v27 = vpop.f32.mrb[131].mxu1  ;;  %v3560_v48 = vpop.f32.mrb[67].mxu0 }
 0x6c7   :  { %3714 = vst [vmem:[#allocation11 + $0x8] sm:$0xff] %v3364_v60  ;;  %3716 = vst [vmem:[#allocation11 + $0x18] sm:$0xff] %v3557_v61  ;;  %v3368_v32 = vadd.f32 %v3367_v27, %v6995_v23  ;;  %v3561_v63 = vadd.f32 %v3560_v48, %v6997_v5 }
 0x6c8   :  { %3717 = vst [vmem:[#allocation11 + $0x20] sm:$0xff] %v3366_v26  ;;  %3719 = vst [vmem:[#allocation11 + $0x30] sm:$0xff] %v3559_v2 }
 0x6c9   :  { %3718 = vst [vmem:[#allocation11 + $0x28] sm:$0xff] %v3368_v32  ;;  %3720 = vst [vmem:[#allocation11 + $0x38] sm:$0xff] %v3561_v63 }
 0x6cb   :  { %v3371_v14 = vpop.f32.mrb[132].mxu1  ;;  %v3564_v57 = vpop.f32.mrb[68].mxu0 }
 0x6cc   :  { %v3372_v46 = vadd.f32 %v3371_v14, %v6990_v54  ;;  %v3565_v62 = vadd.f32 %v3564_v57, %v6992_v36  ;;  %v3373_v49 = vpop.f32.mrb[133].mxu1  ;;  %v3566_v43 = vpop.f32.mrb[69].mxu0 }
 0x6cd   :  { %v3374_v16 = vadd.f32 %v3373_v49, %v6995_v23  ;;  %v3567_v7 = vadd.f32 %v3566_v43, %v6997_v5  ;;  %v3375_v9 = vpop.f32.mrb[134].mxu1  ;;  %v3568_v45 = vpop.f32.mrb[70].mxu0 }
 0x6ce   :  { %3721 = vst [vmem:[#allocation11 + $0x40] sm:$0xff] %v3372_v46  ;;  %3723 = vst [vmem:[#allocation11 + $0x50] sm:$0xff] %v3565_v62  ;;  %v3376_v8 = vadd.f32 %v3375_v9, %v6990_v54  ;;  %v3569_v21 = vadd.f32 %v3568_v45, %v6992_v36  ;;  %v3377_v6 = vpop.f32.mrb[135].mxu1  ;;  %v3570_v15 = vpop.f32.mrb[71].mxu0 }
 0x6cf   :  { %3722 = vst [vmem:[#allocation11 + $0x48] sm:$0xff] %v3374_v16  ;;  %3724 = vst [vmem:[#allocation11 + $0x58] sm:$0xff] %v3567_v7  ;;  %v3378_v53 = vadd.f32 %v3377_v6, %v6995_v23  ;;  %v3571_v10 = vadd.f32 %v3570_v15, %v6997_v5 }
 0x6d0   :  { %3725 = vst [vmem:[#allocation11 + $0x60] sm:$0xff] %v3376_v8  ;;  %3727 = vst [vmem:[#allocation11 + $0x70] sm:$0xff] %v3569_v21 }
 0x6d1   :  { %3726 = vst [vmem:[#allocation11 + $0x68] sm:$0xff] %v3378_v53  ;;  %3728 = vst [vmem:[#allocation11 + $0x78] sm:$0xff] %v3571_v10 }
 0x6d3   :  { %v3381_v39 = vpop.f32.mrb[136].mxu1  ;;  %v3574_v1 = vpop.f32.mrb[72].mxu0 }
 0x6d4   :  { %v3382_v58 = vadd.f32 %v3381_v39, %v6990_v54  ;;  %v3575_v22 = vadd.f32 %v3574_v1, %v6992_v36  ;;  %v3383_v12 = vpop.f32.mrb[137].mxu1  ;;  %v3576_v35 = vpop.f32.mrb[73].mxu0 }
 0x6d5   :  { %v3384_v52 = vadd.f32 %v3383_v12, %v6995_v23  ;;  %v3577_v38 = vadd.f32 %v3576_v35, %v6997_v5  ;;  %v3385_v59 = vpop.f32.mrb[138].mxu1  ;;  %v3578_v17 = vpop.f32.mrb[74].mxu0 }
 0x6d6   :  { %3729 = vst [vmem:[#allocation11 + $0x80] sm:$0xff] %v3382_v58  ;;  %3731 = vst [vmem:[#allocation11 + $0x90] sm:$0xff] %v3575_v22  ;;  %v3386_v24 = vadd.f32 %v3385_v59, %v6990_v54  ;;  %v3579_v19 = vadd.f32 %v3578_v17, %v6992_v36  ;;  %v3387_v41 = vpop.f32.mrb[139].mxu1  ;;  %v3580_v56 = vpop.f32.mrb[75].mxu0 }
 0x6d7   :  { %3730 = vst [vmem:[#allocation11 + $0x88] sm:$0xff] %v3384_v52  ;;  %3732 = vst [vmem:[#allocation11 + $0x98] sm:$0xff] %v3577_v38  ;;  %v3388_v50 = vadd.f32 %v3387_v41, %v6995_v23  ;;  %v3581_v3 = vadd.f32 %v3580_v56, %v6997_v5 }
 0x6d8   :  { %3733 = vst [vmem:[#allocation11 + $0xa0] sm:$0xff] %v3386_v24  ;;  %3735 = vst [vmem:[#allocation11 + $0xb0] sm:$0xff] %v3579_v19 }
 0x6d9   :  { %3734 = vst [vmem:[#allocation11 + $0xa8] sm:$0xff] %v3388_v50  ;;  %3736 = vst [vmem:[#allocation11 + $0xb8] sm:$0xff] %v3581_v3 }
 0x6db   :  { %v3391_v11 = vpop.f32.mrb[140].mxu1  ;;  %v3584_v30 = vpop.f32.mrb[76].mxu0 }
 0x6dc   :  { %v3392_v28 = vadd.f32 %v3391_v11, %v6990_v54  ;;  %v3585_v20 = vadd.f32 %v3584_v30, %v6992_v36  ;;  %v3393_v31 = vpop.f32.mrb[141].mxu1  ;;  %v3586_v25 = vpop.f32.mrb[77].mxu0 }
 0x6dd   :  { %v3394_v44 = vadd.f32 %v3393_v31, %v6995_v23  ;;  %v3587_v0 = vadd.f32 %v3586_v25, %v6997_v5  ;;  %v3395_v51 = vpop.f32.mrb[142].mxu1  ;;  %v3588_v47 = vpop.f32.mrb[78].mxu0 }
 0x6de   :  { %3737 = vst [vmem:[#allocation11 + $0xc0] sm:$0xff] %v3392_v28  ;;  %3739 = vst [vmem:[#allocation11 + $0xd0] sm:$0xff] %v3585_v20  ;;  %v3396_v34 = vadd.f32 %v3395_v51, %v6990_v54  ;;  %v3589_v18 = vadd.f32 %v3588_v47, %v6992_v36  ;;  %v3397_v37 = vpop.f32.mrb[143].mxu1  ;;  %v3590_v4 = vpop.f32.mrb[79].mxu0 }
 0x6df   :  { %3738 = vst [vmem:[#allocation11 + $0xc8] sm:$0xff] %v3394_v44  ;;  %3740 = vst [vmem:[#allocation11 + $0xd8] sm:$0xff] %v3587_v0  ;;  %v3398_v40 = vadd.f32 %v3397_v37, %v6995_v23  ;;  %v3591_v29 = vadd.f32 %v3590_v4, %v6997_v5 }
 0x6e0   :  { %3741 = vst [vmem:[#allocation11 + $0xe0] sm:$0xff] %v3396_v34  ;;  %3743 = vst [vmem:[#allocation11 + $0xf0] sm:$0xff] %v3589_v18 }
 0x6e1   :  { %3742 = vst [vmem:[#allocation11 + $0xe8] sm:$0xff] %v3398_v40  ;;  %3744 = vst [vmem:[#allocation11 + $0xf8] sm:$0xff] %v3591_v29 }
 0x6e3   :  { %v3401_v55 = vpop.f32.mrb[144].mxu1  ;;  %v3594_v42 = vpop.f32.mrb[80].mxu0 }
 0x6e4   :  { %v3402_v60 = vadd.f32 %v3401_v55, %v6990_v54  ;;  %v3595_v61 = vadd.f32 %v3594_v42, %v6992_v36  ;;  %v3403_v13 = vpop.f32.mrb[145].mxu1  ;;  %v3596_v33 = vpop.f32.mrb[81].mxu0 }
 0x6e5   :  { %v3404_v26 = vadd.f32 %v3403_v13, %v6995_v23  ;;  %v3597_v2 = vadd.f32 %v3596_v33, %v6997_v5  ;;  %v3405_v27 = vpop.f32.mrb[146].mxu1  ;;  %v3598_v48 = vpop.f32.mrb[82].mxu0 }
 0x6e6   :  { %3745 = vst [vmem:[#allocation11 + $0x100] sm:$0xff] %v3402_v60  ;;  %3747 = vst [vmem:[#allocation11 + $0x110] sm:$0xff] %v3595_v61  ;;  %v3406_v32 = vadd.f32 %v3405_v27, %v6990_v54  ;;  %v3599_v63 = vadd.f32 %v3598_v48, %v6992_v36  ;;  %v3407_v14 = vpop.f32.mrb[147].mxu1  ;;  %v3600_v57 = vpop.f32.mrb[83].mxu0 }
 0x6e7   :  { %3746 = vst [vmem:[#allocation11 + $0x108] sm:$0xff] %v3404_v26  ;;  %3748 = vst [vmem:[#allocation11 + $0x118] sm:$0xff] %v3597_v2  ;;  %v3408_v46 = vadd.f32 %v3407_v14, %v6995_v23  ;;  %v3601_v62 = vadd.f32 %v3600_v57, %v6997_v5 }
 0x6e8   :  { %3749 = vst [vmem:[#allocation11 + $0x120] sm:$0xff] %v3406_v32  ;;  %3751 = vst [vmem:[#allocation11 + $0x130] sm:$0xff] %v3599_v63 }
 0x6e9   :  { %3750 = vst [vmem:[#allocation11 + $0x128] sm:$0xff] %v3408_v46  ;;  %3752 = vst [vmem:[#allocation11 + $0x138] sm:$0xff] %v3601_v62 }
 0x6eb   :  { %v3411_v49 = vpop.f32.mrb[148].mxu1  ;;  %v3604_v43 = vpop.f32.mrb[84].mxu0 }
 0x6ec   :  { %v3412_v16 = vadd.f32 %v3411_v49, %v6990_v54  ;;  %v3605_v7 = vadd.f32 %v3604_v43, %v6992_v36  ;;  %v3413_v9 = vpop.f32.mrb[149].mxu1  ;;  %v3606_v45 = vpop.f32.mrb[85].mxu0 }
 0x6ed   :  { %v3414_v8 = vadd.f32 %v3413_v9, %v6995_v23  ;;  %v3607_v21 = vadd.f32 %v3606_v45, %v6997_v5  ;;  %v3415_v6 = vpop.f32.mrb[150].mxu1  ;;  %v3608_v15 = vpop.f32.mrb[86].mxu0 }
 0x6ee   :  { %3753 = vst [vmem:[#allocation11 + $0x140] sm:$0xff] %v3412_v16  ;;  %3755 = vst [vmem:[#allocation11 + $0x150] sm:$0xff] %v3605_v7  ;;  %v3416_v53 = vadd.f32 %v3415_v6, %v6990_v54  ;;  %v3609_v10 = vadd.f32 %v3608_v15, %v6992_v36  ;;  %v3417_v39 = vpop.f32.mrb[151].mxu1  ;;  %v3610_v1 = vpop.f32.mrb[87].mxu0 }
 0x6ef   :  { %3754 = vst [vmem:[#allocation11 + $0x148] sm:$0xff] %v3414_v8  ;;  %3756 = vst [vmem:[#allocation11 + $0x158] sm:$0xff] %v3607_v21  ;;  %v3418_v58 = vadd.f32 %v3417_v39, %v6995_v23  ;;  %v3611_v22 = vadd.f32 %v3610_v1, %v6997_v5 }
 0x6f0   :  { %3757 = vst [vmem:[#allocation11 + $0x160] sm:$0xff] %v3416_v53  ;;  %3759 = vst [vmem:[#allocation11 + $0x170] sm:$0xff] %v3609_v10 }
 0x6f1   :  { %3758 = vst [vmem:[#allocation11 + $0x168] sm:$0xff] %v3418_v58  ;;  %3760 = vst [vmem:[#allocation11 + $0x178] sm:$0xff] %v3611_v22 }
 0x6f3   :  { %v3421_v12 = vpop.f32.mrb[152].mxu1  ;;  %v3614_v35 = vpop.f32.mrb[88].mxu0 }
 0x6f4   :  { %v3422_v52 = vadd.f32 %v3421_v12, %v6990_v54  ;;  %v3615_v38 = vadd.f32 %v3614_v35, %v6992_v36  ;;  %v3423_v59 = vpop.f32.mrb[153].mxu1  ;;  %v3616_v17 = vpop.f32.mrb[89].mxu0 }
 0x6f5   :  { %v3424_v24 = vadd.f32 %v3423_v59, %v6995_v23  ;;  %v3617_v19 = vadd.f32 %v3616_v17, %v6997_v5  ;;  %v3425_v41 = vpop.f32.mrb[154].mxu1  ;;  %v3618_v56 = vpop.f32.mrb[90].mxu0 }
 0x6f6   :  { %3761 = vst [vmem:[#allocation11 + $0x180] sm:$0xff] %v3422_v52  ;;  %3763 = vst [vmem:[#allocation11 + $0x190] sm:$0xff] %v3615_v38  ;;  %v3426_v50 = vadd.f32 %v3425_v41, %v6990_v54  ;;  %v3619_v3 = vadd.f32 %v3618_v56, %v6992_v36  ;;  %v3427_v11 = vpop.f32.mrb[155].mxu1  ;;  %v3620_v30 = vpop.f32.mrb[91].mxu0 }
 0x6f7   :  { %3762 = vst [vmem:[#allocation11 + $0x188] sm:$0xff] %v3424_v24  ;;  %3764 = vst [vmem:[#allocation11 + $0x198] sm:$0xff] %v3617_v19  ;;  %v3428_v28 = vadd.f32 %v3427_v11, %v6995_v23  ;;  %v3621_v20 = vadd.f32 %v3620_v30, %v6997_v5 }
 0x6f8   :  { %3765 = vst [vmem:[#allocation11 + $0x1a0] sm:$0xff] %v3426_v50  ;;  %3767 = vst [vmem:[#allocation11 + $0x1b0] sm:$0xff] %v3619_v3 }
 0x6f9   :  { %3766 = vst [vmem:[#allocation11 + $0x1a8] sm:$0xff] %v3428_v28  ;;  %3768 = vst [vmem:[#allocation11 + $0x1b8] sm:$0xff] %v3621_v20 }
 0x6fb   :  { %v3431_v31 = vpop.f32.mrb[156].mxu1  ;;  %v3624_v25 = vpop.f32.mrb[92].mxu0 }
 0x6fc   :  { %v3432_v44 = vadd.f32 %v3431_v31, %v6990_v54  ;;  %v3625_v0 = vadd.f32 %v3624_v25, %v6992_v36  ;;  %v3433_v51 = vpop.f32.mrb[157].mxu1  ;;  %v3626_v47 = vpop.f32.mrb[93].mxu0 }
 0x6fd   :  { %v3434_v34 = vadd.f32 %v3433_v51, %v6995_v23  ;;  %v3627_v18 = vadd.f32 %v3626_v47, %v6997_v5  ;;  %v3435_v37 = vpop.f32.mrb[158].mxu1  ;;  %v3628_v4 = vpop.f32.mrb[94].mxu0 }
 0x6fe   :  { %3769 = vst [vmem:[#allocation11 + $0x1c0] sm:$0xff] %v3432_v44  ;;  %3771 = vst [vmem:[#allocation11 + $0x1d0] sm:$0xff] %v3625_v0  ;;  %v3436_v40 = vadd.f32 %v3435_v37, %v6990_v54  ;;  %v3629_v29 = vadd.f32 %v3628_v4, %v6992_v36  ;;  %v3437_v55 = vpop.f32.mrb[159].mxu1  ;;  %v3630_v42 = vpop.f32.mrb[95].mxu0 }
 0x6ff   :  { %3770 = vst [vmem:[#allocation11 + $0x1c8] sm:$0xff] %v3434_v34  ;;  %3772 = vst [vmem:[#allocation11 + $0x1d8] sm:$0xff] %v3627_v18  ;;  %v3438_v60 = vadd.f32 %v3437_v55, %v6995_v23  ;;  %v3631_v61 = vadd.f32 %v3630_v42, %v6997_v5 }
 0x700   :  { %3773 = vst [vmem:[#allocation11 + $0x1e0] sm:$0xff] %v3436_v40  ;;  %3775 = vst [vmem:[#allocation11 + $0x1f0] sm:$0xff] %v3629_v29 }
 0x701   :  { %3774 = vst [vmem:[#allocation11 + $0x1e8] sm:$0xff] %v3438_v60  ;;  %3776 = vst [vmem:[#allocation11 + $0x1f8] sm:$0xff] %v3631_v61 }
 0x703   :  { %v3441_v13 = vpop.f32.mrb[160].mxu1  ;;  %v3634_v33 = vpop.f32.mrb[96].mxu0 }
 0x704   :  { %v3442_v26 = vadd.f32 %v3441_v13, %v6990_v54  ;;  %v3635_v2 = vadd.f32 %v3634_v33, %v6992_v36  ;;  %v3443_v27 = vpop.f32.mrb[161].mxu1  ;;  %v3636_v48 = vpop.f32.mrb[97].mxu0 }
 0x705   :  { %v3444_v32 = vadd.f32 %v3443_v27, %v6995_v23  ;;  %v3637_v63 = vadd.f32 %v3636_v48, %v6997_v5  ;;  %v3445_v14 = vpop.f32.mrb[162].mxu1  ;;  %v3638_v57 = vpop.f32.mrb[98].mxu0 }
 0x706   :  { %3777 = vst [vmem:[#allocation11 + $0x200] sm:$0xff] %v3442_v26  ;;  %3779 = vst [vmem:[#allocation11 + $0x210] sm:$0xff] %v3635_v2  ;;  %v3446_v46 = vadd.f32 %v3445_v14, %v6990_v54  ;;  %v3639_v62 = vadd.f32 %v3638_v57, %v6992_v36  ;;  %v3447_v49 = vpop.f32.mrb[163].mxu1  ;;  %v3640_v43 = vpop.f32.mrb[99].mxu0 }
 0x707   :  { %3778 = vst [vmem:[#allocation11 + $0x208] sm:$0xff] %v3444_v32  ;;  %3780 = vst [vmem:[#allocation11 + $0x218] sm:$0xff] %v3637_v63  ;;  %v3448_v16 = vadd.f32 %v3447_v49, %v6995_v23  ;;  %v3641_v7 = vadd.f32 %v3640_v43, %v6997_v5 }
 0x708   :  { %3781 = vst [vmem:[#allocation11 + $0x220] sm:$0xff] %v3446_v46  ;;  %3783 = vst [vmem:[#allocation11 + $0x230] sm:$0xff] %v3639_v62 }
 0x709   :  { %3782 = vst [vmem:[#allocation11 + $0x228] sm:$0xff] %v3448_v16  ;;  %3784 = vst [vmem:[#allocation11 + $0x238] sm:$0xff] %v3641_v7 }
 0x70b   :  { %v3451_v9 = vpop.f32.mrb[164].mxu1  ;;  %v3644_v45 = vpop.f32.mrb[100].mxu0 }
 0x70c   :  { %v3452_v8 = vadd.f32 %v3451_v9, %v6990_v54  ;;  %v3645_v21 = vadd.f32 %v3644_v45, %v6992_v36  ;;  %v3453_v6 = vpop.f32.mrb[165].mxu1  ;;  %v3646_v15 = vpop.f32.mrb[101].mxu0 }
 0x70d   :  { %v3454_v53 = vadd.f32 %v3453_v6, %v6995_v23  ;;  %v3647_v10 = vadd.f32 %v3646_v15, %v6997_v5  ;;  %v3455_v39 = vpop.f32.mrb[166].mxu1  ;;  %v3648_v1 = vpop.f32.mrb[102].mxu0 }
 0x70e   :  { %3785 = vst [vmem:[#allocation11 + $0x240] sm:$0xff] %v3452_v8  ;;  %3787 = vst [vmem:[#allocation11 + $0x250] sm:$0xff] %v3645_v21  ;;  %v3456_v58 = vadd.f32 %v3455_v39, %v6990_v54  ;;  %v3649_v22 = vadd.f32 %v3648_v1, %v6992_v36  ;;  %v3457_v12 = vpop.f32.mrb[167].mxu1  ;;  %v3650_v35 = vpop.f32.mrb[103].mxu0 }
 0x70f   :  { %3786 = vst [vmem:[#allocation11 + $0x248] sm:$0xff] %v3454_v53  ;;  %3788 = vst [vmem:[#allocation11 + $0x258] sm:$0xff] %v3647_v10  ;;  %v3458_v52 = vadd.f32 %v3457_v12, %v6995_v23  ;;  %v3651_v38 = vadd.f32 %v3650_v35, %v6997_v5 }
 0x710   :  { %3789 = vst [vmem:[#allocation11 + $0x260] sm:$0xff] %v3456_v58  ;;  %3791 = vst [vmem:[#allocation11 + $0x270] sm:$0xff] %v3649_v22 }
 0x711   :  { %3790 = vst [vmem:[#allocation11 + $0x268] sm:$0xff] %v3458_v52  ;;  %3792 = vst [vmem:[#allocation11 + $0x278] sm:$0xff] %v3651_v38 }
 0x713   :  { %v3461_v59 = vpop.f32.mrb[168].mxu1  ;;  %v3654_v17 = vpop.f32.mrb[104].mxu0 }
 0x714   :  { %v3462_v24 = vadd.f32 %v3461_v59, %v6990_v54  ;;  %v3655_v19 = vadd.f32 %v3654_v17, %v6992_v36  ;;  %v3463_v41 = vpop.f32.mrb[169].mxu1  ;;  %v3656_v56 = vpop.f32.mrb[105].mxu0 }
 0x715   :  { %v3464_v50 = vadd.f32 %v3463_v41, %v6995_v23  ;;  %v3657_v3 = vadd.f32 %v3656_v56, %v6997_v5  ;;  %v3465_v11 = vpop.f32.mrb[170].mxu1  ;;  %v3658_v30 = vpop.f32.mrb[106].mxu0 }
 0x716   :  { %3793 = vst [vmem:[#allocation11 + $0x280] sm:$0xff] %v3462_v24  ;;  %3795 = vst [vmem:[#allocation11 + $0x290] sm:$0xff] %v3655_v19  ;;  %v3466_v28 = vadd.f32 %v3465_v11, %v6990_v54  ;;  %v3659_v20 = vadd.f32 %v3658_v30, %v6992_v36  ;;  %v3467_v31 = vpop.f32.mrb[171].mxu1  ;;  %v3660_v25 = vpop.f32.mrb[107].mxu0 }
 0x717   :  { %3794 = vst [vmem:[#allocation11 + $0x288] sm:$0xff] %v3464_v50  ;;  %3796 = vst [vmem:[#allocation11 + $0x298] sm:$0xff] %v3657_v3  ;;  %v3468_v44 = vadd.f32 %v3467_v31, %v6995_v23  ;;  %v3661_v0 = vadd.f32 %v3660_v25, %v6997_v5 }
 0x718   :  { %3797 = vst [vmem:[#allocation11 + $0x2a0] sm:$0xff] %v3466_v28  ;;  %3799 = vst [vmem:[#allocation11 + $0x2b0] sm:$0xff] %v3659_v20 }
 0x719   :  { %3798 = vst [vmem:[#allocation11 + $0x2a8] sm:$0xff] %v3468_v44  ;;  %3800 = vst [vmem:[#allocation11 + $0x2b8] sm:$0xff] %v3661_v0 }
 0x71b   :  { %v3471_v51 = vpop.f32.mrb[172].mxu1  ;;  %v3664_v47 = vpop.f32.mrb[108].mxu0 }
 0x71c   :  { %v3472_v34 = vadd.f32 %v3471_v51, %v6990_v54  ;;  %v3665_v18 = vadd.f32 %v3664_v47, %v6992_v36  ;;  %v3473_v37 = vpop.f32.mrb[173].mxu1  ;;  %v3666_v4 = vpop.f32.mrb[109].mxu0 }
 0x71d   :  { %v3474_v40 = vadd.f32 %v3473_v37, %v6995_v23  ;;  %v3667_v29 = vadd.f32 %v3666_v4, %v6997_v5  ;;  %v3475_v55 = vpop.f32.mrb[174].mxu1  ;;  %v3668_v42 = vpop.f32.mrb[110].mxu0 }
 0x71e   :  { %3801 = vst [vmem:[#allocation11 + $0x2c0] sm:$0xff] %v3472_v34  ;;  %3803 = vst [vmem:[#allocation11 + $0x2d0] sm:$0xff] %v3665_v18  ;;  %v3476_v60 = vadd.f32 %v3475_v55, %v6990_v54  ;;  %v3669_v61 = vadd.f32 %v3668_v42, %v6992_v36  ;;  %v3477_v13 = vpop.f32.mrb[175].mxu1  ;;  %v3670_v33 = vpop.f32.mrb[111].mxu0 }
 0x71f   :  { %3802 = vst [vmem:[#allocation11 + $0x2c8] sm:$0xff] %v3474_v40  ;;  %3804 = vst [vmem:[#allocation11 + $0x2d8] sm:$0xff] %v3667_v29  ;;  %v3478_v26 = vadd.f32 %v3477_v13, %v6995_v23  ;;  %v3671_v2 = vadd.f32 %v3670_v33, %v6997_v5 }
 0x720   :  { %3805 = vst [vmem:[#allocation11 + $0x2e0] sm:$0xff] %v3476_v60  ;;  %3807 = vst [vmem:[#allocation11 + $0x2f0] sm:$0xff] %v3669_v61 }
 0x721   :  { %3806 = vst [vmem:[#allocation11 + $0x2e8] sm:$0xff] %v3478_v26  ;;  %3808 = vst [vmem:[#allocation11 + $0x2f8] sm:$0xff] %v3671_v2 }
 0x723   :  { %v3481_v27 = vpop.f32.mrb[176].mxu1  ;;  %v3674_v48 = vpop.f32.mrb[112].mxu0 }
 0x724   :  { %v3482_v32 = vadd.f32 %v3481_v27, %v6990_v54  ;;  %v3675_v63 = vadd.f32 %v3674_v48, %v6992_v36  ;;  %v3483_v14 = vpop.f32.mrb[177].mxu1  ;;  %v3676_v57 = vpop.f32.mrb[113].mxu0 }
 0x725   :  { %v3484_v46 = vadd.f32 %v3483_v14, %v6995_v23  ;;  %v3677_v62 = vadd.f32 %v3676_v57, %v6997_v5  ;;  %v3485_v49 = vpop.f32.mrb[178].mxu1  ;;  %v3678_v43 = vpop.f32.mrb[114].mxu0 }
 0x726   :  { %3809 = vst [vmem:[#allocation11 + $0x300] sm:$0xff] %v3482_v32  ;;  %3811 = vst [vmem:[#allocation11 + $0x310] sm:$0xff] %v3675_v63  ;;  %v3486_v16 = vadd.f32 %v3485_v49, %v6990_v54  ;;  %v3679_v7 = vadd.f32 %v3678_v43, %v6992_v36  ;;  %v3487_v9 = vpop.f32.mrb[179].mxu1  ;;  %v3680_v45 = vpop.f32.mrb[115].mxu0 }
 0x727   :  { %3810 = vst [vmem:[#allocation11 + $0x308] sm:$0xff] %v3484_v46  ;;  %3812 = vst [vmem:[#allocation11 + $0x318] sm:$0xff] %v3677_v62  ;;  %v3488_v8 = vadd.f32 %v3487_v9, %v6995_v23  ;;  %v3681_v21 = vadd.f32 %v3680_v45, %v6997_v5 }
 0x728   :  { %3813 = vst [vmem:[#allocation11 + $0x320] sm:$0xff] %v3486_v16  ;;  %3815 = vst [vmem:[#allocation11 + $0x330] sm:$0xff] %v3679_v7 }
 0x729   :  { %3814 = vst [vmem:[#allocation11 + $0x328] sm:$0xff] %v3488_v8  ;;  %3816 = vst [vmem:[#allocation11 + $0x338] sm:$0xff] %v3681_v21 }
 0x72b   :  { %v3491_v6 = vpop.f32.mrb[180].mxu1  ;;  %v3684_v15 = vpop.f32.mrb[116].mxu0 }
 0x72c   :  { %v3492_v53 = vadd.f32 %v3491_v6, %v6990_v54  ;;  %v3685_v10 = vadd.f32 %v3684_v15, %v6992_v36  ;;  %v3493_v39 = vpop.f32.mrb[181].mxu1  ;;  %v3686_v1 = vpop.f32.mrb[117].mxu0 }
 0x72d   :  { %v3494_v58 = vadd.f32 %v3493_v39, %v6995_v23  ;;  %v3687_v22 = vadd.f32 %v3686_v1, %v6997_v5  ;;  %v3495_v12 = vpop.f32.mrb[182].mxu1  ;;  %v3688_v35 = vpop.f32.mrb[118].mxu0 }
 0x72e   :  { %3817 = vst [vmem:[#allocation11 + $0x340] sm:$0xff] %v3492_v53  ;;  %3819 = vst [vmem:[#allocation11 + $0x350] sm:$0xff] %v3685_v10  ;;  %v3496_v52 = vadd.f32 %v3495_v12, %v6990_v54  ;;  %v3689_v38 = vadd.f32 %v3688_v35, %v6992_v36  ;;  %v3497_v59 = vpop.f32.mrb[183].mxu1  ;;  %v3690_v17 = vpop.f32.mrb[119].mxu0 }
 0x72f   :  { %3818 = vst [vmem:[#allocation11 + $0x348] sm:$0xff] %v3494_v58  ;;  %3820 = vst [vmem:[#allocation11 + $0x358] sm:$0xff] %v3687_v22  ;;  %v3498_v24 = vadd.f32 %v3497_v59, %v6995_v23  ;;  %v3691_v19 = vadd.f32 %v3690_v17, %v6997_v5 }
 0x730   :  { %3821 = vst [vmem:[#allocation11 + $0x360] sm:$0xff] %v3496_v52  ;;  %3823 = vst [vmem:[#allocation11 + $0x370] sm:$0xff] %v3689_v38 }
 0x731   :  { %3822 = vst [vmem:[#allocation11 + $0x368] sm:$0xff] %v3498_v24  ;;  %3824 = vst [vmem:[#allocation11 + $0x378] sm:$0xff] %v3691_v19 }
 0x733   :  { %v3501_v41 = vpop.f32.mrb[184].mxu1 }
 0x734   :  { %v3502_v56 = vadd.f32 %v3501_v41, %v6990_v54  ;;  %v3503_v50 = vpop.f32.mrb[185].mxu1 }
 0x735   :  { %v3504_v3 = vadd.f32 %v3503_v50, %v6995_v23  ;;  %v3505_v11 = vpop.f32.mrb[186].mxu1 }
 0x736   :  { %3825 = vst [vmem:[#allocation11 + $0x380] sm:$0xff] %v3502_v56  ;;  %v3506_v30 = vadd.f32 %v3505_v11, %v6990_v54  ;;  %v3507_v28 = vpop.f32.mrb[187].mxu1 }
 0x737   :  { %3826 = vst [vmem:[#allocation11 + $0x388] sm:$0xff] %v3504_v3  ;;  %v3508_v20 = vadd.f32 %v3507_v28, %v6995_v23 }
 0x738   :  { %3829 = vst [vmem:[#allocation11 + $0x3a0] sm:$0xff] %v3506_v30 }
 0x739   :  { %3830 = vst [vmem:[#allocation11 + $0x3a8] sm:$0xff] %v3508_v20 }
 0x73b   :  { %v3511_v31 = vpop.f32.mrb[188].mxu1 }
 0x73c   :  { %v3512_v25 = vadd.f32 %v3511_v31, %v6990_v54  ;;  %v3513_v44 = vpop.f32.mrb[189].mxu1 }
 0x73d   :  { %v3514_v0 = vadd.f32 %v3513_v44, %v6995_v23  ;;  %v3515_v51 = vpop.f32.mrb[190].mxu1 }
 0x73e   :  { %3833 = vst [vmem:[#allocation11 + $0x3c0] sm:$0xff] %v3512_v25  ;;  %v3516_v47 = vadd.f32 %v3515_v51, %v6990_v54  ;;  %v3517_v34 = vpop.f32.mrb[191].mxu1 }
 0x73f   :  { %3834 = vst [vmem:[#allocation11 + $0x3c8] sm:$0xff] %v3514_v0  ;;  %v3518_v18 = vadd.f32 %v3517_v34, %v6995_v23 }
 0x740   :  { %3837 = vst [vmem:[#allocation11 + $0x3e0] sm:$0xff] %v3516_v47 }
 0x741   :  { %3838 = vst [vmem:[#allocation11 + $0x3e8] sm:$0xff] %v3518_v18 }
 0x743   :  { %v3694_v37 = vpop.f32.mrb[192].mxu1 }
 0x744   :  { %v3695_v4 = vadd.f32 %v3694_v37, %v6992_v36  ;;  %v3696_v40 = vpop.f32.mrb[193].mxu1 }
 0x745   :  { %v3697_v29 = vadd.f32 %v3696_v40, %v6997_v5  ;;  %v3698_v55 = vpop.f32.mrb[194].mxu1 }
 0x746   :  { %3827 = vst [vmem:[#allocation11 + $0x390] sm:$0xff] %v3695_v4  ;;  %v3699_v42 = vadd.f32 %v3698_v55, %v6992_v36  ;;  %v3700_v60 = vpop.f32.mrb[195].mxu1 }
 0x747   :  { %3828 = vst [vmem:[#allocation11 + $0x398] sm:$0xff] %v3697_v29  ;;  %v3701_v54 = vadd.f32 %v3700_v60, %v6997_v5 }
 0x748   :  { %3831 = vst [vmem:[#allocation11 + $0x3b0] sm:$0xff] %v3699_v42 }
 0x749   :  { %3832 = vst [vmem:[#allocation11 + $0x3b8] sm:$0xff] %v3701_v54 }
 0x74b   :  { %v3704_v61 = vpop.f32.mrb[196].mxu1 }
 0x74c   :  { %v3705_v23 = vadd.f32 %v3704_v61, %v6992_v36  ;;  %v3706_v13 = vpop.f32.mrb[197].mxu1 }
 0x74d   :  { %v3707_v33 = vadd.f32 %v3706_v13, %v6997_v5  ;;  %v3708_v26 = vpop.f32.mrb[198].mxu1 }
 0x74e   :  { %3835 = vst [vmem:[#allocation11 + $0x3d0] sm:$0xff] %v3705_v23  ;;  %v3709_v2 = vadd.f32 %v3708_v26, %v6992_v36  ;;  %v3710_v27 = vpop.f32.mrb[199].mxu1 }
 0x74f   :  { %3836 = vst [vmem:[#allocation11 + $0x3d8] sm:$0xff] %v3707_v33  ;;  %v3711_v48 = vadd.f32 %v3710_v27, %v6997_v5 }
 0x750   :  { %3839 = vst [vmem:[#allocation11 + $0x3f0] sm:$0xff] %v3709_v2 }
 0x751   :  { %3840 = vst [vmem:[#allocation11 + $0x3f8] sm:$0xff] %v3711_v48 }
 0x752   :  { %4628 = shalt.err (!%p4625_p2)
}
 0x753   :  { %s4629_s25 = scalar_lea.hbm %s7154_s12, 16384 }
 0x754   :  { %p4630_p3 = scmp.ne.s32.totalorder %s7154_s12, %s4629_s25  ;;  %p4633_p4 = scmp.lt.u32.totalorder %s4629_s25, %s7154_s12 }
 0x756   :  { %p4635_p5 = pnand %p4633_p4, %p4630_p3 }
 0x758   :  { %4638 = shalt.err (!%p4635_p5)
}
 0x759   :  { %3852 = dma.vmem_to_hbm [thread:$0]  %s3847_s23, 16384, %s7154_s12, [#allocation4], %s4652_s7, %s4652_s7, %s4653_s13  }
 0x75a   :  { %4645 = dma.done.wait [#allocation4], 16384  }
 0x75b   :  { %4646 = vsyncadd [#allocation4], 4294950912 }
 0x75c   :  { %3856 = vsyncpa [#allocation3], 1 }
 0x75d   :  { %3857 = vsyncpa [#allocation6], 1 }
 0x75e   :  { %3858 = vsyncpa [#allocation9], 1 }
 0x75f   :  { %3859 = vsyncpa [#allocation4], 1 }

</bundles_post_ra>
